<compile_context>
chip_gen: v5e
topology: v5e:2x2
jax: 0.10.0
libtpu: 0.0.40
codegen_flags: <defaults>
</compile_context>

<pallas_src>
import functools

import jax
import jax.numpy as jnp
from jax import lax
from jax.experimental import pallas as pl
from jax.experimental.pallas import tpu as pltpu

EPS = 1e-6


def patch_embed_kernel(patches_ref, w1_ref, cvec_ref, gmat_ref, gmat_t_ref,
                       w2_ref, b2_ref, out_ref, *, nc, n_chunks):
    bt, n, k1 = patches_ref.shape
    c_mid = w1_ref.shape[1]
    g = gmat_ref.shape[1]
    e = w2_ref.shape[1]
    gs = c_mid // g
    count = float(n * gs)            # GroupNorm normalizes over (group channels x N)

    w1 = w1_ref[...]
    cv = cvec_ref[...]               # (3, c_mid): [conv1 bias, gamma, beta]
    b1 = cv[0:1, :]
    gamma = cv[1:2, :]
    beta = cv[2:3, :]

    def conv1_chunk(c):
        """Patchify-conv for one N-chunk as a single MXU matmul (bias NOT added)."""
        start = pl.multiple_of(c * nc, nc)
        p = patches_ref[:, pl.ds(start, nc), :].reshape(bt * nc, k1)
        h = jnp.dot(p, w1, preferred_element_type=jnp.float32)       # f32 accumulate
        return start, h.reshape(bt, nc, c_mid)

    # ---- pass A: fused single-read sum / sum-of-squares accumulation over N-chunks ----
    def stats_body(c, carry):
        s, ss = carry
        _, h3 = conv1_chunk(c)
        s = s + jnp.sum(h3, axis=1)
        ss = ss + jnp.sum(h3 * h3, axis=1)
        return s, ss

    zeros = jnp.zeros((bt, c_mid), jnp.float32)
    sum_raw, sumsq_raw = lax.fori_loop(0, n_chunks, stats_body, (zeros, zeros),
                                       unroll=n_chunks <= 8)

    # fold the conv1 bias into the per-channel sums analytically
    sum_c = sum_raw + float(n) * b1
    sumsq_c = sumsq_raw + b1 * (2.0 * sum_raw + float(n) * b1)

    # per-group reduce / per-channel broadcast via tiny membership matmuls
    sum_g = jnp.dot(sum_c, gmat_ref[...], preferred_element_type=jnp.float32)     # (bt, g)
    sumsq_g = jnp.dot(sumsq_c, gmat_ref[...], preferred_element_type=jnp.float32)
    mean_g = sum_g / count
    var_g = jnp.maximum(sumsq_g / count - mean_g * mean_g, 0.0)   # single-pass var, clamped
    inv_g = lax.rsqrt(var_g + EPS)
    mean_c = jnp.dot(mean_g, gmat_t_ref[...], preferred_element_type=jnp.float32)  # (bt, c_mid)
    inv_c = jnp.dot(inv_g, gmat_t_ref[...], preferred_element_type=jnp.float32)

    # GroupNorm apply collapses to one per-channel FMA (conv1 bias folded into b_c)
    a_c = inv_c * gamma
    b_c = (b1 - mean_c) * a_c + beta

    w2 = w2_ref[...]
    b2 = b2_ref[...]

    # ---- pass B: recompute conv1 chunk (cheap), GroupNorm FMA, conv2, store chunk ----
    def apply_body(c, carry):
        start, h3 = conv1_chunk(c)
        hg = h3 * a_c[:, None, :] + b_c[:, None, :]
        hg2 = hg.reshape(bt * nc, c_mid).astype(w2.dtype)
        o = jnp.dot(hg2, w2, preferred_element_type=jnp.float32) + b2
        out_ref[:, pl.ds(start, nc), :] = o.reshape(bt, nc, e).astype(out_ref.dtype)
        return carry

    lax.fori_loop(0, n_chunks, apply_body, 0, unroll=n_chunks <= 8)


def _divisors(n):
    return [d for d in range(1, n + 1) if n % d == 0]


def _vmem_budget_bytes():
    phys = 128 * 1024 * 1024
    try:
        info = pltpu.get_tpu_info()
        phys = int(getattr(info, "vmem_capacity_bytes", phys))
    except Exception:
        pass
    # generation-aware: ~90 MiB on v5e/v6e (128 MiB physical), ~45 MiB on v7x (64 MiB)
    return min(int(phys * 0.70), 96 * 1024 * 1024)


def _pick_tiles(B, N, K1, C_mid, E, G, in_bytes, out_bytes, budget):
    """Pick (batch tile Bt, in-kernel N chunk Nc) that fit the VMEM budget."""
    nc_cands = sorted([d for d in _divisors(N) if d % 8 == 0 and d <= 512],
                      reverse=True) or [N]
    # cap Bt at B//2 so the grid has >= 2 parallel steps (uses both v7x TensorCores)
    max_bt = max(1, B // 2)
    if N % 8 != 0:
        max_bt = 1                     # keep the (Bt*Nc, K1) flatten a pure squeeze
    bt_cands = sorted([d for d in _divisors(B) if d <= max_bt], reverse=True)

    def step_bytes(bt, nc):
        const = ((K1 * C_mid + C_mid * E) * in_bytes                    # w1, w2 (x1: Buffered(1))
                 + (8 * C_mid + C_mid * G + 32 * C_mid + 8 * E) * 4)    # cvec/gmat/gmat_t/b2 padded
        blocks = 2 * bt * N * K1 * in_bytes + 2 * bt * N * E * out_bytes  # double-buffered blocks
        temps = bt * nc * (3 * C_mid * 4 + C_mid * in_bytes + E * 4 + K1 * in_bytes) \
                + 4 * bt * C_mid * 4
        return const + blocks + temps

    for nc in nc_cands:                # prefer the largest chunk (bigger MXU M per matmul)
        for bt in bt_cands:            # then the largest batch tile that still fits
            if step_bytes(bt, nc) <= budget:
                return bt, nc
    raise ValueError(
        "PatchEmbed Pallas kernel: even the minimal tiling (Bt=1, Nc="
        f"{nc_cands[-1]}) exceeds the VMEM budget of {budget} bytes for these shapes.")


def patch_embed_pallas(x, params, patch_size, num_groups, *,
                       compute_dtype=jnp.bfloat16, out_dtype=jnp.float32):
    ph, pw = patch_size
    B, C, H, W = x.shape
    assert H % ph == 0 and W % pw == 0
    Hp, Wp = H // ph, W // pw
    N = Hp * Wp
    K1 = C * ph * pw

    w1, b1 = params["w1"], params["b1"]            # (C_mid, C, ph, pw), (C_mid,)
    gamma, beta = params["gamma"], params["beta"]  # (C_mid,), (C_mid,)
    w2, b2 = params["w2"], params["b2"]            # (E, C_mid, 1, 1), (E,)
    C_mid = w1.shape[0]
    E = w2.shape[0]
    G = num_groups
    assert C_mid % G == 0

    # glue: patchify directly in compute_dtype (single cast, no extra HBM round trip).
    # TODO(synk): for very large inputs, move the patchify into the kernel by indexing the
    # NCHW input with an (Hp, Wp) BlockSpec instead of materializing `patches` in HBM.
    patches = (x.reshape(B, C, Hp, ph, Wp, pw)
                 .transpose(0, 2, 4, 1, 3, 5)
                 .reshape(B, N, K1)).astype(compute_dtype)

    w1_mat = w1.reshape(C_mid, K1).T.astype(compute_dtype)     # (K1, C_mid), (c,kh,kw) order
    w2_mat = w2.reshape(E, C_mid).T.astype(compute_dtype)      # (C_mid, E)
    cvec = jnp.stack([b1, gamma, beta]).astype(jnp.float32)    # (3, C_mid): one DMA descriptor
    b2_row = b2.reshape(1, E).astype(jnp.float32)

    group_size = C_mid // G
    gmat = (jnp.arange(C_mid)[:, None] // group_size ==
            jnp.arange(G)[None, :]).astype(jnp.float32)        # (C_mid, G) group membership
    gmat_t = gmat.T                                            # (G, C_mid)

    in_bytes = jnp.dtype(compute_dtype).itemsize
    out_bytes = jnp.dtype(out_dtype).itemsize
    budget = _vmem_budget_bytes()
    Bt, Nc = _pick_tiles(B, N, K1, C_mid, E, G, in_bytes, out_bytes, budget)
    n_chunks = N // Nc
    grid = (B // Bt,)

    kernel = functools.partial(patch_embed_kernel, nc=Nc, n_chunks=n_chunks)
    const = dict(pipeline_mode=pl.Buffered(1))                 # single-buffer constant blocks

    return pl.pallas_call(
        kernel,
        out_shape=jax.ShapeDtypeStruct((B, N, E), out_dtype),
        grid_spec=pltpu.PrefetchScalarGridSpec(
            num_scalar_prefetch=0,
            grid=grid,
            in_specs=[
                pl.BlockSpec((Bt, N, K1), lambda i: (i, 0, 0)),
                pl.BlockSpec((K1, C_mid), lambda i: (0, 0), **const),
                pl.BlockSpec((3, C_mid), lambda i: (0, 0), **const),
                pl.BlockSpec((C_mid, G), lambda i: (0, 0), **const),
                pl.BlockSpec((G, C_mid), lambda i: (0, 0), **const),
                pl.BlockSpec((C_mid, E), lambda i: (0, 0), **const),
                pl.BlockSpec((1, E), lambda i: (0, 0), **const),
            ],
            out_specs=pl.BlockSpec((Bt, N, E), lambda i: (i, 0, 0)),
        ),
        compiler_params=pltpu.CompilerParams(
            dimension_semantics=("parallel",),
            vmem_limit_bytes=budget),
    )(patches, w1_mat, cvec, gmat, gmat_t, w2_mat, b2_row)


def patch_embed_ref(x, params, patch_size, num_groups):
    """Pure-JAX reference matching PyTorch semantics (NCHW conv + GroupNorm + 1x1 conv)."""
    w1, b1 = params["w1"], params["b1"]
    gamma, beta = params["gamma"], params["beta"]
    w2, b2 = params["w2"], params["b2"]
    h = lax.conv_general_dilated(x, w1, window_strides=patch_size, padding="VALID",
                                 dimension_numbers=("NCHW", "OIHW", "NCHW"))
    h = h + b1[None, :, None, None]
    B, C_mid, Hp, Wp = h.shape
    gs = C_mid // num_groups
    hg = h.reshape(B, num_groups, gs, Hp, Wp)
    mean = hg.mean(axis=(2, 3, 4), keepdims=True)
    var = hg.var(axis=(2, 3, 4), keepdims=True)                 # biased, like torch GroupNorm
    hn = ((hg - mean) / jnp.sqrt(var + EPS)).reshape(B, C_mid, Hp, Wp)
    hn = hn * gamma[None, :, None, None] + beta[None, :, None, None]
    E = w2.shape[0]
    out = jnp.einsum("bchw,ec->behw", hn, w2.reshape(E, C_mid)) + b2[None, :, None, None]
    return out.reshape(B, E, Hp * Wp).transpose(0, 2, 1)


if __name__ == "__main__":
    # Small shapes consistent with PatchEmbed: height=16, width=32, patch=(16,1),
    # in_channels=4 -> mid channels = 4*256 = 1024, num_groups=32, embed_dim=128.
    B, C, H, W = 2, 4, 16, 32
    patch_size = (16, 1)
    num_groups = 32
    C_mid = C * 256
    E = 128

    key = jax.random.PRNGKey(0)
    k = jax.random.split(key, 7)
    x = jax.random.normal(k[0], (B, C, H, W), jnp.float32)
    params = {
        "w1": 0.05 * jax.random.normal(k[1], (C_mid, C, patch_size[0], patch_size[1]), jnp.float32),
        "b1": 0.05 * jax.random.normal(k[2], (C_mid,), jnp.float32),
        "gamma": 1.0 + 0.1 * jax.random.normal(k[3], (C_mid,), jnp.float32),
        "beta": 0.1 * jax.random.normal(k[4], (C_mid,), jnp.float32),
        "w2": 0.05 * jax.random.normal(k[5], (E, C_mid, 1, 1), jnp.float32),
        "b2": 0.05 * jax.random.normal(k[6], (E,), jnp.float32),
    }

    ref = jax.block_until_ready(patch_embed_ref(x, params, patch_size, num_groups))
    N = (H // patch_size[0]) * (W // patch_size[1])

    # Exact path (f32 MXU inputs, f32 output): tight tolerance vs PyTorch-equivalent ref.
    out_f32 = jax.block_until_ready(
        patch_embed_pallas(x, params, patch_size, num_groups,
                           compute_dtype=jnp.float32, out_dtype=jnp.float32))
    assert out_f32.shape == (B, N, E)
    assert jnp.allclose(out_f32, ref, rtol=2e-3, atol=2e-3), \
        f"f32 max abs err {jnp.max(jnp.abs(out_f32 - ref))}"

    # Fast path (bf16 MXU inputs + bf16 output, f32 accumulation & stats): looser tolerance.
    out_bf16 = jax.block_until_ready(
        patch_embed_pallas(x, params, patch_size, num_groups,
                           compute_dtype=jnp.bfloat16, out_dtype=jnp.bfloat16))
    assert out_bf16.shape == (B, N, E)
    assert jnp.allclose(out_bf16.astype(jnp.float32), ref, rtol=5e-2, atol=5e-2), \
        f"bf16 max abs err {jnp.max(jnp.abs(out_bf16.astype(jnp.float32) - ref))}"

    print("KERNEL_OK")
</pallas_src>

<mosaic_0001>
module attributes {stable_mosaic.version = 11 : i64} {
  func.func @patch_embed_kernel(%arg0: i32, %arg1: memref<1x32x64xf32, #tpu.memory_space<vmem>>, %arg2: memref<64x1024xf32, #tpu.memory_space<vmem>>, %arg3: memref<3x1024xf32, #tpu.memory_space<vmem>>, %arg4: memref<1024x32xf32, #tpu.memory_space<vmem>>, %arg5: memref<32x1024xf32, #tpu.memory_space<vmem>>, %arg6: memref<1024x128xf32, #tpu.memory_space<vmem>>, %arg7: memref<1x128xf32, #tpu.memory_space<vmem>>, %arg8: memref<1x32x128xf32, #tpu.memory_space<vmem>>) attributes {dimension_semantics = [#tpu.dimension_semantics<parallel>], iteration_bounds = array<i64: 2>, scalar_prefetch = 0 : i64, scratch_operands = 0 : i64, tpu.core_type = #tpu.core_type<tc>, window_params = [{transform_indices = @transform_0, window_bounds = array<i64: 1, 32, 64>}, {pipeline_mode = #tpu.pipeline_mode<synchronous>, transform_indices = @transform_1, window_bounds = array<i64: 64, 1024>}, {pipeline_mode = #tpu.pipeline_mode<synchronous>, transform_indices = @transform_2, window_bounds = array<i64: 3, 1024>}, {pipeline_mode = #tpu.pipeline_mode<synchronous>, transform_indices = @transform_3, window_bounds = array<i64: 1024, 32>}, {pipeline_mode = #tpu.pipeline_mode<synchronous>, transform_indices = @transform_4, window_bounds = array<i64: 32, 1024>}, {pipeline_mode = #tpu.pipeline_mode<synchronous>, transform_indices = @transform_5, window_bounds = array<i64: 1024, 128>}, {pipeline_mode = #tpu.pipeline_mode<synchronous>, transform_indices = @transform_6, window_bounds = array<i64: 1, 128>}, {transform_indices = @transform_7, window_bounds = array<i64: 1, 32, 128>}]} {
    %c0 = arith.constant 0 : index
    %c0_0 = arith.constant 0 : index
    %0 = vector.load %arg2[%c0, %c0_0] : memref<64x1024xf32, #tpu.memory_space<vmem>>, vector<64x1024xf32>
    %c0_1 = arith.constant 0 : index
    %c0_2 = arith.constant 0 : index
    %1 = vector.load %arg3[%c0_1, %c0_2] : memref<3x1024xf32, #tpu.memory_space<vmem>>, vector<3x1024xf32>
    %2 = vector.extract_strided_slice %1 {offsets = [0, 0], sizes = [1, 1024], strides = [1, 1]} : vector<3x1024xf32> to vector<1x1024xf32>
    %3 = vector.extract_strided_slice %1 {offsets = [1, 0], sizes = [1, 1024], strides = [1, 1]} : vector<3x1024xf32> to vector<1x1024xf32>
    %4 = vector.extract_strided_slice %1 {offsets = [2, 0], sizes = [1, 1024], strides = [1, 1]} : vector<3x1024xf32> to vector<1x1024xf32>
    %cst = arith.constant 0.000000e+00 : f32
    %5 = vector.broadcast %cst : f32 to vector<1x1024xf32>
    %c0_i32 = arith.constant 0 : i32
    %c32_i32 = arith.constant 32 : i32
    %6 = arith.muli %c0_i32, %c32_i32 : i32
    %7 = tpu.assume_multiple %6, 32 : i32
    %c0_3 = arith.constant 0 : index
    %8 = arith.index_cast %7 : i32 to index
    %c0_4 = arith.constant 0 : index
    %9 = vector.load %arg1[%c0_3, %8, %c0_4] : memref<1x32x64xf32, #tpu.memory_space<vmem>>, vector<1x32x64xf32>
    %10 = vector.shape_cast %9 : vector<1x32x64xf32> to vector<32x64xf32>
    %cst_5 = arith.constant dense<0.000000e+00> : vector<32x1024xf32>
    %11 = tpu.matmul %10, %0, %cst_5 {dimension_numbers = #tpu.dot_dimension_numbers<[1], [0], [0], [1], [0, 0, 1, 1], [], []>} : vector<32x64xf32>, vector<64x1024xf32>, vector<32x1024xf32> -> vector<32x1024xf32>
    %12 = vector.shape_cast %11 : vector<32x1024xf32> to vector<1x32x1024xf32>
    %cst_6 = arith.constant dense<0.000000e+00> : vector<1x1024xf32>
    %13 = vector.multi_reduction <add>, %12, %cst_6 [1] : vector<1x32x1024xf32> to vector<1x1024xf32>
    %14 = arith.addf %5, %13 : vector<1x1024xf32>
    %15 = arith.mulf %12, %12 : vector<1x32x1024xf32>
    %cst_7 = arith.constant dense<0.000000e+00> : vector<1x1024xf32>
    %16 = vector.multi_reduction <add>, %15, %cst_7 [1] : vector<1x32x1024xf32> to vector<1x1024xf32>
    %17 = arith.addf %5, %16 : vector<1x1024xf32>
    %c1_i32 = arith.constant 1 : i32
    %cst_8 = arith.constant 3.200000e+01 : f32
    %18 = vector.broadcast %cst_8 : f32 to vector<1x1024xf32>
    %19 = arith.mulf %18, %2 : vector<1x1024xf32>
    %20 = arith.addf %14, %19 : vector<1x1024xf32>
    %cst_9 = arith.constant 2.000000e+00 : f32
    %21 = vector.broadcast %cst_9 : f32 to vector<1x1024xf32>
    %22 = arith.mulf %21, %14 : vector<1x1024xf32>
    %cst_10 = arith.constant 3.200000e+01 : f32
    %23 = vector.broadcast %cst_10 : f32 to vector<1x1024xf32>
    %24 = arith.mulf %23, %2 : vector<1x1024xf32>
    %25 = arith.addf %22, %24 : vector<1x1024xf32>
    %26 = arith.mulf %2, %25 : vector<1x1024xf32>
    %27 = arith.addf %17, %26 : vector<1x1024xf32>
    %c0_11 = arith.constant 0 : index
    %c0_12 = arith.constant 0 : index
    %28 = vector.load %arg4[%c0_11, %c0_12] : memref<1024x32xf32, #tpu.memory_space<vmem>>, vector<1024x32xf32>
    %cst_13 = arith.constant dense<0.000000e+00> : vector<1x32xf32>
    %29 = tpu.matmul %20, %28, %cst_13 {dimension_numbers = #tpu.dot_dimension_numbers<[1], [0], [0], [1], [0, 0, 1, 1], [], []>} : vector<1x1024xf32>, vector<1024x32xf32>, vector<1x32xf32> -> vector<1x32xf32>
    %c0_14 = arith.constant 0 : index
    %c0_15 = arith.constant 0 : index
    %30 = vector.load %arg4[%c0_14, %c0_15] : memref<1024x32xf32, #tpu.memory_space<vmem>>, vector<1024x32xf32>
    %cst_16 = arith.constant dense<0.000000e+00> : vector<1x32xf32>
    %31 = tpu.matmul %27, %30, %cst_16 {dimension_numbers = #tpu.dot_dimension_numbers<[1], [0], [0], [1], [0, 0, 1, 1], [], []>} : vector<1x1024xf32>, vector<1024x32xf32>, vector<1x32xf32> -> vector<1x32xf32>
    %cst_17 = arith.constant 1.024000e+03 : f32
    %32 = vector.broadcast %cst_17 : f32 to vector<1x32xf32>
    %33 = arith.divf %29, %32 : vector<1x32xf32>
    %cst_18 = arith.constant 1.024000e+03 : f32
    %34 = vector.broadcast %cst_18 : f32 to vector<1x32xf32>
    %35 = arith.divf %31, %34 : vector<1x32xf32>
    %36 = arith.mulf %33, %33 : vector<1x32xf32>
    %37 = arith.subf %35, %36 : vector<1x32xf32>
    %cst_19 = arith.constant 0.000000e+00 : f32
    %38 = vector.broadcast %cst_19 : f32 to vector<1x32xf32>
    %39 = arith.maximumf %37, %38 : vector<1x32xf32>
    %cst_20 = arith.constant 9.99999997E-7 : f32
    %40 = vector.broadcast %cst_20 : f32 to vector<1x32xf32>
    %41 = arith.addf %39, %40 : vector<1x32xf32>
    %42 = math.rsqrt %41 : vector<1x32xf32>
    %c0_21 = arith.constant 0 : index
    %c0_22 = arith.constant 0 : index
    %43 = vector.load %arg5[%c0_21, %c0_22] : memref<32x1024xf32, #tpu.memory_space<vmem>>, vector<32x1024xf32>
    %cst_23 = arith.constant dense<0.000000e+00> : vector<1x1024xf32>
    %44 = tpu.matmul %33, %43, %cst_23 {dimension_numbers = #tpu.dot_dimension_numbers<[1], [0], [0], [1], [0, 0, 1, 1], [], []>} : vector<1x32xf32>, vector<32x1024xf32>, vector<1x1024xf32> -> vector<1x1024xf32>
    %c0_24 = arith.constant 0 : index
    %c0_25 = arith.constant 0 : index
    %45 = vector.load %arg5[%c0_24, %c0_25] : memref<32x1024xf32, #tpu.memory_space<vmem>>, vector<32x1024xf32>
    %cst_26 = arith.constant dense<0.000000e+00> : vector<1x1024xf32>
    %46 = tpu.matmul %42, %45, %cst_26 {dimension_numbers = #tpu.dot_dimension_numbers<[1], [0], [0], [1], [0, 0, 1, 1], [], []>} : vector<1x32xf32>, vector<32x1024xf32>, vector<1x1024xf32> -> vector<1x1024xf32>
    %47 = arith.mulf %46, %3 : vector<1x1024xf32>
    %48 = arith.subf %2, %44 : vector<1x1024xf32>
    %49 = arith.mulf %48, %47 : vector<1x1024xf32>
    %50 = arith.addf %49, %4 : vector<1x1024xf32>
    %c0_27 = arith.constant 0 : index
    %c0_28 = arith.constant 0 : index
    %51 = vector.load %arg6[%c0_27, %c0_28] : memref<1024x128xf32, #tpu.memory_space<vmem>>, vector<1024x128xf32>
    %c0_29 = arith.constant 0 : index
    %c0_30 = arith.constant 0 : index
    %52 = vector.load %arg7[%c0_29, %c0_30] : memref<1x128xf32, #tpu.memory_space<vmem>>, vector<1x128xf32>
    %c0_i32_31 = arith.constant 0 : i32
    %c32_i32_32 = arith.constant 32 : i32
    %53 = arith.muli %c0_i32_31, %c32_i32_32 : i32
    %54 = tpu.assume_multiple %53, 32 : i32
    %c0_33 = arith.constant 0 : index
    %55 = arith.index_cast %54 : i32 to index
    %c0_34 = arith.constant 0 : index
    %56 = vector.load %arg1[%c0_33, %55, %c0_34] : memref<1x32x64xf32, #tpu.memory_space<vmem>>, vector<1x32x64xf32>
    %57 = vector.shape_cast %56 : vector<1x32x64xf32> to vector<32x64xf32>
    %cst_35 = arith.constant dense<0.000000e+00> : vector<32x1024xf32>
    %58 = tpu.matmul %57, %0, %cst_35 {dimension_numbers = #tpu.dot_dimension_numbers<[1], [0], [0], [1], [0, 0, 1, 1], [], []>} : vector<32x64xf32>, vector<64x1024xf32>, vector<32x1024xf32> -> vector<32x1024xf32>
    %59 = vector.shape_cast %58 : vector<32x1024xf32> to vector<1x32x1024xf32>
    %60 = vector.shape_cast %47 : vector<1x1024xf32> to vector<1x1x1024xf32>
    %61 = vector.broadcast %60 : vector<1x1x1024xf32> to vector<1x32x1024xf32>
    %62 = arith.mulf %59, %61 : vector<1x32x1024xf32>
    %63 = vector.shape_cast %50 : vector<1x1024xf32> to vector<1x1x1024xf32>
    %64 = vector.broadcast %63 : vector<1x1x1024xf32> to vector<1x32x1024xf32>
    %65 = arith.addf %62, %64 : vector<1x32x1024xf32>
    %66 = vector.shape_cast %65 : vector<1x32x1024xf32> to vector<32x1024xf32>
    %cst_36 = arith.constant dense<0.000000e+00> : vector<32x128xf32>
    %67 = tpu.matmul %66, %51, %cst_36 {dimension_numbers = #tpu.dot_dimension_numbers<[1], [0], [0], [1], [0, 0, 1, 1], [], []>} : vector<32x1024xf32>, vector<1024x128xf32>, vector<32x128xf32> -> vector<32x128xf32>
    %68 = vector.broadcast %52 : vector<1x128xf32> to vector<32x128xf32>
    %69 = arith.addf %67, %68 : vector<32x128xf32>
    %70 = vector.shape_cast %69 : vector<32x128xf32> to vector<1x32x128xf32>
    %c0_37 = arith.constant 0 : index
    %71 = arith.index_cast %54 : i32 to index
    %c0_38 = arith.constant 0 : index
    %72 = vector.load %arg8[%c0_37, %71, %c0_38] : memref<1x32x128xf32, #tpu.memory_space<vmem>>, vector<1x32x128xf32>
    tpu.vector_store %arg8[%c0_37, %71, %c0_38], %70 {strides = array<i32>} : memref<1x32x128xf32, #tpu.memory_space<vmem>>, vector<1x32x128xf32>,
    %c1_i32_39 = arith.constant 1 : i32
    return
  }
  func.func @transform_0(%arg0: i32) -> (i32, i32, i32) {
    %c0_i32 = arith.constant 0 : i32
    %c0_i32_0 = arith.constant 0 : i32
    %c0_i32_1 = arith.constant 0 : i32
    return %arg0, %c0_i32, %c0_i32_0 : i32, i32, i32
  }
  func.func @transform_1(%arg0: i32) -> (i32, i32) {
    %c0_i32 = arith.constant 0 : i32
    %c0_i32_0 = arith.constant 0 : i32
    %c0_i32_1 = arith.constant 0 : i32
    return %c0_i32, %c0_i32_0 : i32, i32
  }
  func.func @transform_2(%arg0: i32) -> (i32, i32) {
    %c0_i32 = arith.constant 0 : i32
    %c0_i32_0 = arith.constant 0 : i32
    %c0_i32_1 = arith.constant 0 : i32
    return %c0_i32, %c0_i32_0 : i32, i32
  }
  func.func @transform_3(%arg0: i32) -> (i32, i32) {
    %c0_i32 = arith.constant 0 : i32
    %c0_i32_0 = arith.constant 0 : i32
    %c0_i32_1 = arith.constant 0 : i32
    return %c0_i32, %c0_i32_0 : i32, i32
  }
  func.func @transform_4(%arg0: i32) -> (i32, i32) {
    %c0_i32 = arith.constant 0 : i32
    %c0_i32_0 = arith.constant 0 : i32
    %c0_i32_1 = arith.constant 0 : i32
    return %c0_i32, %c0_i32_0 : i32, i32
  }
  func.func @transform_5(%arg0: i32) -> (i32, i32) {
    %c0_i32 = arith.constant 0 : i32
    %c0_i32_0 = arith.constant 0 : i32
    %c0_i32_1 = arith.constant 0 : i32
    return %c0_i32, %c0_i32_0 : i32, i32
  }
  func.func @transform_6(%arg0: i32) -> (i32, i32) {
    %c0_i32 = arith.constant 0 : i32
    %c0_i32_0 = arith.constant 0 : i32
    %c0_i32_1 = arith.constant 0 : i32
    return %c0_i32, %c0_i32_0 : i32, i32
  }
  func.func @transform_7(%arg0: i32) -> (i32, i32, i32) {
    %c0_i32 = arith.constant 0 : i32
    %c0_i32_0 = arith.constant 0 : i32
    %c0_i32_1 = arith.constant 0 : i32
    return %arg0, %c0_i32, %c0_i32_0 : i32, i32, i32
  }
}

</mosaic_0001>

<bundles_post_ra>
// kernel: tpu_custom_call.1
= control target key start
LH: loop header
LB: loop body
LE: loop exit
PB: predicated region body
PF: predicated region fallthrough
CT: control target
= control target key end

     0   :  { %s4983_s0 = inlined_call_operand.hbm [shape: f32[2,32,64], index: 0, kind: input, shape index: {}]   ;;  %s4984_s1 = inlined_call_operand.hbm [shape: f32[64,1024], index: 1, kind: input, shape index: {}]   ;;  %s4985_s2 = inlined_call_operand.hbm [shape: f32[3,1024], index: 2, kind: input, shape index: {}]   ;;  %s4986_s3 = inlined_call_operand.vmem [shape: f32[1024,32], index: 3, kind: input, shape index: {}]   ;;  %s4987_s4 = inlined_call_operand.vmem [shape: f32[32,1024], index: 4, kind: input, shape index: {}]   ;;  %s4988_s5 = inlined_call_operand.vmem [shape: f32[1024,128], index: 5, kind: input, shape index: {}]   ;;  %s4989_s6 = inlined_call_operand.vmem [shape: f32[1,128], index: 6, kind: input, shape index: {}]   ;;  %s4990_s7 = inlined_call_operand.hbm [shape: f32[2,32,128], index: 7, kind: output, shape index: {}]  }
   0x1   :  { %5121 = sst [smem:[#allocation135_spill]] %s4984_s1 }
   0x2   :  { %12 = vsyncpa [#allocation3], 0 }
   0x3   :  { %14 = vsyncpa [#allocation3 + $0x1], 0 }
   0x4   :  { %15 = vsyncpa [#allocation6], 0 }
   0x5   :  { %16 = vsyncpa [#allocation4], 0 }
   0x6   :  { %18 = vsyncpa [#allocation4 + $0x1], 0  ;;  %s2804_s24 = smov 0   ;;  %s2806_s25 = smov 0  }
   0x7   :  { %s2808_s26 = smov 0   ;;  %s2810_s27 = smov 0  }
   0x8 LB: > { %s2825_s28 = sadd.s32 4294967295, %s2753_s27   ;;  %s2438_s29 = sadd.s32 4294967294, %s2753_s27   ;;  %s2753_s27 = sphi %s2810_s27, %s5393_s27   ;;  %s2749_s26 = sphi %s2808_s26, %s5392_s26   ;;  %s2745_s25 = sphi %s2806_s25, %s5391_s25   ;;  %s2741_s24 = sphi %s2804_s24, %s5390_s24  }
   0x9   : > { %p44_p0 = scmp.ne.s32.totalorder %s2745_s25, %s2741_s24  ;;  %p45_p1 = scmp.eq.s32.totalorder %s2825_s28, 0 }
   0xa   : > { %p194_p2 = scmp.eq.s32.totalorder %s2825_s28, 1  ;;  %p200_p3 = scmp.eq.s32.totalorder %s2438_s29, 1 }
   0xb   : > { %p2834_p4 = por %p45_p1, %p44_p0  ;;  %p2439_p5 = scmp.ge.s32.totalorder %s2753_s27, 1 }
   0xc   : > { %p2839_p6 = por %p200_p3, %p44_p0  ;;  %p207_p7 = scmp.lt.s32.totalorder %s2753_s27, 3 }
   0xd   : > { %s5124_s1 = sld [smem:[#allocation135_spill]]  ;;  %s2755_s13 = smov [#allocation5]  }
   0xe   : > { %p2847_p8 = pnand %p2439_p5, %p207_p7  ;;  %s220_s14 = sshll.u32 %s2755_s13, 4  ;;  %s221_s14 = int_to_ptr.vmem [resolvable:$true] %s220_s14 }
   0xf   : > { %s233_s17 = sshll.u32 %s4985_s2, 4  ;;  %s2756_s18 = smov 1024   ;;  %s234_s17 = int_to_ptr.hbm [resolvable:$true] %s233_s17 }
  0x10   : > { %p2522_p9 = pneg %p2847_p8  ;;  %s2757_s19 = smov 64  }
  0x11   : > { %s2758_s20 = smov [#allocation7]   ;;  %s2860_s22 = sadd.s32 1, %s2753_s27  }
  0x12   : > { %p2523_p10 = pnand %p2522_p9, %p45_p1  ;;  %s235_s21 = sshll.u32 %s2758_s20, 4  ;;  %s236_s21 = int_to_ptr.vmem [resolvable:$true] %s235_s21 }
  0x13   : > { %s218_s11 = sshll.u32 %s5124_s1, 4  ;;  %s31_s23 = sadd.s32 1, %s2749_s26  ;;  %s219_s11 = int_to_ptr.hbm [resolvable:$true] %s218_s11 }
  0x14   : > { %2525 = dma.hbm_to_vmem [thread:$0]  (!%p2523_p10), %s219_s11, 8192, %s221_s14, [#allocation6], %s2756_s18, %s2756_s18, %s2757_s19  }
  0x15   : > { %2528 = dma.hbm_to_vmem [thread:$0]  (!%p2523_p10), %s234_s17, 512, %s236_s21, [#allocation6]  }
  0x16   : > { %s28_s29 = ssub.s32 %s2753_s27, %s2860_s22  ;;  %p38_p12 = scmp.ne.s32.totalorder %s2749_s26, %s2745_s25 }
  0x17   : > { %p29_p13 = scmp.eq.s32.totalorder %s28_s29, 0  ;;  %p39_p0 = scmp.eq.s32.totalorder %s2753_s27, 0 }
  0x18   : > { %p2870_p3 = por %p194_p2, %p38_p12  ;;  %p2539_p5 = scmp.lt.s32.totalorder %s2753_s27, 2 }
  0x19   : > { %s2876_s10 = scalar_select %p29_p13, %s2749_s26, %s31_s23  }
  0x1a   : > { %p40_p7 = por %p39_p0, %p38_p12  ;;  %s258_s11 = sand.u32 1, %s2749_s26  }
  0x1b   : > { %s2443_s13 = sshll.u32 %s258_s11, 5  ;;  %s2508_s14 = sshll.u32 %s2753_s27, 5 }
  0x1c   : > { %s267_s17 = scalar_lea.hbm %s4983_s0, %s2508_s14  ;;  %s262_s18 = scalar_lea.vmem [#allocation2], %s2443_s13 }
  0x1d   : > { %s270_s19 = sshll.u32 %s262_s18, 4  ;;  %s268_s20 = sshll.u32 %s267_s17, 4  ;;  %s271_s19 = int_to_ptr.vmem [resolvable:$true] %s270_s19  ;;  %s269_s20 = int_to_ptr.hbm [resolvable:$true] %s268_s20 }
  0x1e   : > { %p2883_p2 = pnand %p2539_p5, %p40_p7  ;;  %s259_s23 = scalar_lea.sflag [#allocation3], %s258_s11 }
  0x1f   : > { %s2653_s29 = sshra.s32 %s269_s20, 4  ;;  %s2660_s15 = scalar_lea.hbm %s4983_s0, 64  ;;  %s2654_s29 = int_to_ptr.hbm [resolvable:$true] %s2653_s29 }
  0x20   : > { %s2655_s1 = scalar_lea.hbm %s2654_s29, 32  ;;  %p2657_p10 = pneg %p2883_p2 }
  0x21   : > { %p2656_p9 = scmp.ne.s32.totalorder %s2654_s29, %s2655_s1  ;;  %p2661_p0 = scmp.lt.s32.totalorder %s2654_s29, %s4983_s0 }
  0x22   : > { %p2662_p5 = scmp.lt.s32.totalorder %s2660_s15, %s2655_s1 }
  0x23   : > { %p2658_p12 = pnand %p2657_p10, %p2656_p9 }
  0x24   : > { %p2663_p7 = por %p2662_p5, %p2661_p0 }
  0x25   : > { %p2659_p13 = pneg %p2658_p12 }
  0x27   : > { %p2664_p11 = pnand %p2663_p7, %p2659_p13 }
  0x29   : > { %2667 = shalt.err (!%p2664_p11)
}
  0x2a   : > { %s2759_s11 = smov 128   ;;  %s2760_s18 = smov 8  }
  0x2b   : > { %2532 = dma.hbm_to_vmem [thread:$0]  (!%p2883_p2), %s269_s20, 512, %s271_s19, %s259_s23, %s2759_s11, %s2759_s11, %s2760_s18  }
  0x2c   : > { %282 = sbr.rel (%p2847_p8) target bundleno = 822 (0x336), region = 48 }
  0x31   : > { %s2900_s14 = sand.u32 1, %s2745_s25  }
  0x32   : > { %s2447_s29 = sshll.u32 %s2900_s14, 5  ;;  %s285_s1 = scalar_lea.sflag [#allocation3], %s2900_s14 }
  0x33   : > { %s2906_s13 = scalar_lea.vmem [#allocation2], %s2447_s29 }
  0x34   : > { %2728 = dma.done.wait (%p2834_p4), %s285_s1, 512  }
  0x35   : > { %2730 = vsyncadd (%p2834_p4), %s285_s1, 4294966784 }
  0x36   : > { %2732 = dma.done.wait (%p45_p1), [#allocation6], 8704  }
  0x37   : > { %2734 = vsyncadd (%p45_p1), [#allocation6], 4294958592  ;;  %v386_v0 = vld [vmem:[#allocation5 + $0x1c0] sm:$0xff]  ;;  %v387_v1 = vld [vmem:[#allocation5 + $0x1c8] sm:$0xff]  ;;  %vm402_vm0 = vcmask 523264   ;;  %vm899_vm1 = vcmask 1043456  }
  0x38   : > { %v388_v2 = vld [vmem:[#allocation5 + $0x1d0] sm:$0xff]  ;;  %423 = vmatpush.msra.mxu0 %v386_v0  ;;  %452 = vmatpush.msra.mxu1 %v387_v1  ;;  %v389_v3 = vld [vmem:[#allocation5 + $0x1d8] sm:$0xff]  ;;  %v378_v4 = vld [vmem:[#allocation5 + $0x180] sm:$0xff]  ;;  %vm1443_vm3 = vcmask 261120   ;;  %s4943_s15 = scalar_lea.vmem [#allocation8], %s2447_s29  ;;  %s2509_s29 = sshll.u32 %s2825_s28, 5 }
  0x39   : > { %v379_v5 = vld [vmem:[#allocation5 + $0x188] sm:$0xff]  ;;  %481 = vmatpush.msra.mxu2 %v388_v2  ;;  %510 = vmatpush.msra.mxu3 %v389_v3  ;;  %v380_v6 = vld [vmem:[#allocation5 + $0x190] sm:$0xff]  ;;  %v381_v7 = vld [vmem:[#allocation5 + $0x198] sm:$0xff]  ;;  %s2342_s11 = scalar_lea.hbm %s4990_s7, %s2509_s29  ;;  %s2343_s18 = sshll.u32 %s4943_s15, 4  ;;  %s2344_s18 = int_to_ptr.vmem [resolvable:$true] %s2343_s18 }
  0x3a   : > { %v370_v8 = vld [vmem:[#allocation5 + $0x140] sm:$0xff]  ;;  %424 = vmatpush.msra.mxu0 %v378_v4  ;;  %453 = vmatpush.msra.mxu1 %v379_v5  ;;  %v371_v9 = vld [vmem:[#allocation5 + $0x148] sm:$0xff]  ;;  %v372_v10 = vld [vmem:[#allocation5 + $0x150] sm:$0xff]  ;;  %s2345_s1 = sshll.u32 %s2342_s11, 4  ;;  %s2331_s28 = scalar_lea.sflag [#allocation4], %s2900_s14  ;;  %s2346_s1 = int_to_ptr.hbm [resolvable:$true] %s2345_s1 }
  0x3b   : > { %v373_v11 = vld [vmem:[#allocation5 + $0x158] sm:$0xff]  ;;  %482 = vmatpush.msra.mxu2 %v380_v6  ;;  %511 = vmatpush.msra.mxu3 %v381_v7  ;;  %v362_v12 = vld [vmem:[#allocation5 + $0x100] sm:$0xff]  ;;  %v363_v13 = vld [vmem:[#allocation5 + $0x108] sm:$0xff]  ;;  %s2703_s20 = scalar_lea.hbm %s4990_s7, 64 }
  0x3c   : > { %425 = vmatpush.msra.mxu0 %v370_v8  ;;  %454 = vmatpush.msra.mxu1 %v371_v9  ;;  %v364_v14 = vld [vmem:[#allocation5 + $0x110] sm:$0xff]  ;;  %v365_v15 = vld [vmem:[#allocation5 + $0x118] sm:$0xff]  ;;  %v354_v16 = vld [vmem:[#allocation5 + $0xc0] sm:$0xff] }
  0x3d   : > { %483 = vmatpush.msra.mxu2 %v372_v10  ;;  %512 = vmatpush.msra.mxu3 %v373_v11  ;;  %v355_v17 = vld [vmem:[#allocation5 + $0xc8] sm:$0xff]  ;;  %v356_v18 = vld [vmem:[#allocation5 + $0xd0] sm:$0xff]  ;;  %v357_v19 = vld [vmem:[#allocation5 + $0xd8] sm:$0xff] }
  0x3e   : > { %426 = vmatpush.msra.mxu0 %v362_v12  ;;  %455 = vmatpush.msra.mxu1 %v363_v13  ;;  %v346_v20 = vld [vmem:[#allocation5 + $0x80] sm:$0xff]  ;;  %v347_v21 = vld [vmem:[#allocation5 + $0x88] sm:$0xff]  ;;  %v348_v22 = vld [vmem:[#allocation5 + $0x90] sm:$0xff] }
  0x3f   : > { %484 = vmatpush.msra.mxu2 %v364_v14  ;;  %513 = vmatpush.msra.mxu3 %v365_v15  ;;  %v349_v23 = vld [vmem:[#allocation5 + $0x98] sm:$0xff]  ;;  %v338_v24 = vld [vmem:[#allocation5 + $0x40] sm:$0xff]  ;;  %v339_v25 = vld [vmem:[#allocation5 + $0x48] sm:$0xff] }
  0x40   : > { %427 = vmatpush.msra.mxu0 %v354_v16  ;;  %456 = vmatpush.msra.mxu1 %v355_v17  ;;  %v340_v26 = vld [vmem:[#allocation5 + $0x50] sm:$0xff]  ;;  %v341_v27 = vld [vmem:[#allocation5 + $0x58] sm:$0xff]  ;;  %v330_v28 = vld [vmem:[#allocation5] sm:$0xff] }
  0x41   : > { %485 = vmatpush.msra.mxu2 %v356_v18  ;;  %514 = vmatpush.msra.mxu3 %v357_v19  ;;  %v331_v29 = vld [vmem:[#allocation5 + $0x8] sm:$0xff]  ;;  %v332_v30 = vld [vmem:[#allocation5 + $0x10] sm:$0xff]  ;;  %v333_v31 = vld [vmem:[#allocation5 + $0x18] sm:$0xff] }
  0x42   : > { %428 = vmatpush.msra.mxu0 %v346_v20  ;;  %457 = vmatpush.msra.mxu1 %v347_v21  ;;  %v2917_v32 = vld [vmem:[%s2906_s13] sm:$0xff]  ;;  %v392_v33 = vld [vmem:[#allocation5 + $0x1f0] sm:$0xff]  ;;  %v393_v34 = vld [vmem:[#allocation5 + $0x1f8] sm:$0xff] }
  0x43   : > { %486 = vmatpush.msra.mxu2 %v348_v22  ;;  %515 = vmatpush.msra.mxu3 %v349_v23  ;;  %v390_v35 = vld [vmem:[#allocation5 + $0x1e0] sm:$0xff]  ;;  %v391_v36 = vld [vmem:[#allocation5 + $0x1e8] sm:$0xff]  ;;  %v384_v37 = vld [vmem:[#allocation5 + $0x1b0] sm:$0xff] }
  0x44   : > { %429 = vmatpush.msra.mxu0 %v338_v24  ;;  %458 = vmatpush.msra.mxu1 %v339_v25  ;;  %v385_v38 = vld [vmem:[#allocation5 + $0x1b8] sm:$0xff]  ;;  %v382_v39 = vld [vmem:[#allocation5 + $0x1a0] sm:$0xff]  ;;  %v383_v40 = vld [vmem:[#allocation5 + $0x1a8] sm:$0xff] }
  0x45   : > { %487 = vmatpush.msra.mxu2 %v340_v26  ;;  %516 = vmatpush.msra.mxu3 %v341_v27  ;;  %v376_v41 = vld [vmem:[#allocation5 + $0x170] sm:$0xff]  ;;  %v377_v42 = vld [vmem:[#allocation5 + $0x178] sm:$0xff]  ;;  %v374_v43 = vld [vmem:[#allocation5 + $0x160] sm:$0xff] }
  0x46   : > { %430 = vmatpush.msra.mxu0 %v330_v28  ;;  %459 = vmatpush.msra.mxu1 %v331_v29  ;;  %v375_v44 = vld [vmem:[#allocation5 + $0x168] sm:$0xff]  ;;  %v368_v46 = vld [vmem:[#allocation5 + $0x130] sm:$0xff]  ;;  %v369_v47 = vld [vmem:[#allocation5 + $0x138] sm:$0xff] }
  0x47   : > { %488 = vmatpush.msra.mxu2 %v332_v30  ;;  %517 = vmatpush.msra.mxu3 %v333_v31  ;;  %v2928_v45 = vld [vmem:[%s2906_s13 + $0x8] sm:$0xff]  ;;  %v366_v48 = vld [vmem:[#allocation5 + $0x120] sm:$0xff]  ;;  %v360_v50 = vld [vmem:[#allocation5 + $0xf0] sm:$0xff] }
  0x48   : > { %2451 = vmatmul.msk.f32.vlgmr.msra.gmra.mxu0 %vm402_vm0, %v2917_v32  ;;  %2455 = vmatmul.msk.f32.vlgmr.msra.gmra.mxu1 %vm402_vm0, %v2917_v32  ;;  %v367_v49 = vld [vmem:[#allocation5 + $0x128] sm:$0xff]  ;;  %v361_v51 = vld [vmem:[#allocation5 + $0xf8] sm:$0xff]  ;;  %v358_v52 = vld [vmem:[#allocation5 + $0xe0] sm:$0xff] }
  0x49   : > { %2459 = vmatmul.msk.f32.vlgmr.msra.gmra.mxu2 %vm402_vm0, %v2917_v32  ;;  %2463 = vmatmul.msk.f32.vlgmr.msra.gmra.mxu3 %vm402_vm0, %v2917_v32  ;;  %v359_v53 = vld [vmem:[#allocation5 + $0xe8] sm:$0xff]  ;;  %v352_v54 = vld [vmem:[#allocation5 + $0xb0] sm:$0xff]  ;;  %v353_v55 = vld [vmem:[#allocation5 + $0xb8] sm:$0xff] }
  0x4a   : > { %597 = vmatpush.msrb.mxu2 %v392_v33  ;;  %626 = vmatpush.msrb.mxu3 %v393_v34  ;;  %v350_v56 = vld [vmem:[#allocation5 + $0xa0] sm:$0xff]  ;;  %v351_v57 = vld [vmem:[#allocation5 + $0xa8] sm:$0xff]  ;;  %v2939_v58 = vld [vmem:[%s2906_s13 + $0x10] sm:$0xff] }
  0x4b   : > { %539 = vmatpush.msrb.mxu0 %v390_v35  ;;  %568 = vmatpush.msrb.mxu1 %v391_v36  ;;  %v344_v59 = vld [vmem:[#allocation5 + $0x70] sm:$0xff]  ;;  %v345_v60 = vld [vmem:[#allocation5 + $0x78] sm:$0xff]  ;;  %v342_v61 = vld [vmem:[#allocation5 + $0x60] sm:$0xff] }
  0x4c   : > { %598 = vmatpush.msrb.mxu2 %v384_v37  ;;  %627 = vmatpush.msrb.mxu3 %v385_v38  ;;  %v343_v62 = vld [vmem:[#allocation5 + $0x68] sm:$0xff]  ;;  %v336_v63 = vld [vmem:[#allocation5 + $0x30] sm:$0xff]  ;;  %v337_v0 = vld [vmem:[#allocation5 + $0x38] sm:$0xff] }
  0x4d   : > { %540 = vmatpush.msrb.mxu0 %v382_v39  ;;  %569 = vmatpush.msrb.mxu1 %v383_v40  ;;  %v334_v1 = vld [vmem:[#allocation5 + $0x20] sm:$0xff]  ;;  %v335_v2 = vld [vmem:[#allocation5 + $0x28] sm:$0xff]  ;;  %v2950_v3 = vld [vmem:[%s2906_s13 + $0x18] sm:$0xff]  ;;  %s2697_s13 = sshra.s32 %s2346_s1, 4  ;;  %s2698_s13 = int_to_ptr.hbm [resolvable:$true] %s2697_s13 }
  0x4e   : > { %599 = vmatpush.msrb.mxu2 %v376_v41  ;;  %628 = vmatpush.msrb.mxu3 %v377_v42  ;;  %v2963_v4 = vld [vmem:[%s4986_s3 + $0x78] sm:$0xff]  ;;  %v2973_v6 = vld [vmem:[%s4986_s3 + $0x70] sm:$0xff]  ;;  %v2985_v8 = vld [vmem:[%s4986_s3 + $0x68] sm:$0xff]  ;;  %s2699_s30 = scalar_lea.hbm %s2698_s13, 32  ;;  %p2704_p11 = scmp.lt.s32.totalorder %s2698_s13, %s4990_s7 }
  0x4f   : > { %541 = vmatpush.msrb.mxu0 %v374_v43  ;;  %570 = vmatpush.msrb.mxu1 %v375_v44  ;;  %v2968_v5 = vld [vmem:[%s4986_s3 + $0xf8] sm:$0xff]  ;;  %v2980_v7 = vld [vmem:[%s4986_s3 + $0xf0] sm:$0xff]  ;;  %v2990_v9 = vld [vmem:[%s4986_s3 + $0xe8] sm:$0xff]  ;;  %p2700_p1 = scmp.ne.s32.totalorder %s2698_s13, %s2699_s30  ;;  %p2705_p2 = scmp.lt.s32.totalorder %s2703_s20, %s2699_s30 }
  0x50   : > { %2452 = vmatmul.msk.f32.gmra.mxu0 %vm402_vm0, %v2928_v45  ;;  %2456 = vmatmul.msk.f32.gmra.mxu1 %vm402_vm0, %v2928_v45  ;;  %v2995_v10 = vld [vmem:[%s4986_s3 + $0x178] sm:$0xff]  ;;  %v3009_v12 = vld [vmem:[%s4986_s3 + $0x170] sm:$0xff]  ;;  %v3021_v14 = vld [vmem:[%s4986_s3 + $0x60] sm:$0xff] }
  0x51   : > { %2460 = vmatmul.msk.f32.gmra.mxu2 %vm402_vm0, %v2928_v45  ;;  %2464 = vmatmul.msk.f32.gmra.mxu3 %vm402_vm0, %v2928_v45  ;;  %v3002_v11 = vld [vmem:[%s4986_s3 + $0x1f8] sm:$0xff]  ;;  %v3014_v13 = vld [vmem:[%s4986_s3 + $0x1f0] sm:$0xff]  ;;  %v3026_v15 = vld [vmem:[%s4986_s3 + $0xe0] sm:$0xff]  ;;  %p2701_p4 = pnand %p2700_p1, %p2870_p3  ;;  %p2706_p9 = por %p2705_p2, %p2704_p11 }
  0x52   : > { %600 = vmatpush.msrb.mxu2 %v368_v46  ;;  %629 = vmatpush.msrb.mxu3 %v369_v47  ;;  %v3037_v16 = vld [vmem:[%s4986_s3 + $0x168] sm:$0xff]  ;;  %v3051_v18 = vld [vmem:[%s4986_s3 + $0x58] sm:$0xff]  ;;  %v3063_v20 = vld [vmem:[%s4986_s3 + $0x160] sm:$0xff] }
  0x53   : > { %542 = vmatpush.msrb.mxu0 %v366_v48  ;;  %571 = vmatpush.msrb.mxu1 %v367_v49  ;;  %v3042_v17 = vld [vmem:[%s4986_s3 + $0x1e8] sm:$0xff]  ;;  %v3056_v19 = vld [vmem:[%s4986_s3 + $0xd8] sm:$0xff]  ;;  %v3068_v21 = vld [vmem:[%s4986_s3 + $0x1e0] sm:$0xff]  ;;  %p2702_p8 = pneg %p2701_p4 }
  0x54   : > { %601 = vmatpush.msrb.mxu2 %v360_v50  ;;  %630 = vmatpush.msrb.mxu3 %v361_v51  ;;  %v3073_v22 = vld [vmem:[%s4986_s3 + $0x50] sm:$0xff]  ;;  %v3087_v24 = vld [vmem:[%s4986_s3 + $0x158] sm:$0xff]  ;;  %v3101_v26 = vld [vmem:[%s4986_s3 + $0x48] sm:$0xff] }
  0x55   : > { %543 = vmatpush.msrb.mxu0 %v358_v52  ;;  %572 = vmatpush.msrb.mxu1 %v359_v53  ;;  %v3078_v23 = vld [vmem:[%s4986_s3 + $0xd0] sm:$0xff]  ;;  %5128 = vst [vmem:[#allocation12_spill] sm:$0xff] %v3087_v24  ;;  %v3092_v25 = vld [vmem:[%s4986_s3 + $0x1d8] sm:$0xff]  ;;  %v3106_v27 = vld [vmem:[%s4986_s3 + $0xc8] sm:$0xff]  ;;  %p2707_p10 = pnand %p2706_p9, %p2702_p8 }
  0x56   : > { %602 = vmatpush.msrb.mxu2 %v352_v54  ;;  %631 = vmatpush.msrb.mxu3 %v353_v55  ;;  %5129 = vst [vmem:[#allocation13_spill] sm:$0xff] %v3092_v25  ;;  %v3117_v28 = vld [vmem:[%s4986_s3 + $0x150] sm:$0xff]  ;;  %v3131_v30 = vld [vmem:[%s4986_s3 + $0x40] sm:$0xff]  ;;  %v3148_v33 = vld [vmem:[%s4986_s3 + $0x1c8] sm:$0xff] }
  0x57   : > { %544 = vmatpush.msrb.mxu0 %v350_v56  ;;  %573 = vmatpush.msrb.mxu1 %v351_v57  ;;  %5130 = vst [vmem:[#allocation14_spill] sm:$0xff] %v3117_v28  ;;  %v3122_v29 = vld [vmem:[%s4986_s3 + $0x1d0] sm:$0xff]  ;;  %v3136_v31 = vld [vmem:[%s4986_s3 + $0xc0] sm:$0xff]  ;;  %v3153_v34 = vld [vmem:[%s4986_s3 + $0x38] sm:$0xff] }
  0x58   : > { %2453 = vmatmul.msk.f32.gmra.mxu0 %vm402_vm0, %v2939_v58  ;;  %2457 = vmatmul.msk.f32.gmra.mxu1 %vm402_vm0, %v2939_v58  ;;  %5131 = vst [vmem:[#allocation15_spill] sm:$0xff] %v3122_v29  ;;  %v3158_v35 = vld [vmem:[%s4986_s3 + $0xb8] sm:$0xff]  ;;  %v3171_v36 = vld [vmem:[%s4986_s3 + $0x30] sm:$0xff]  ;;  %v3199_v38 = vld [vmem:[%s4986_s3 + $0x28] sm:$0xff] }
  0x59   : > { %2461 = vmatmul.msk.f32.gmra.mxu2 %vm402_vm0, %v2939_v58  ;;  %2465 = vmatmul.msk.f32.gmra.mxu3 %vm402_vm0, %v2939_v58  ;;  %5133 = vst [vmem:[#allocation17_spill] sm:$0xff] %v3148_v33  ;;  %v3176_v37 = vld [vmem:[%s4986_s3 + $0xb0] sm:$0xff]  ;;  %v3204_v39 = vld [vmem:[%s4986_s3 + $0xa8] sm:$0xff]  ;;  %v3209_v40 = vld [vmem:[%s4986_s3 + $0x140] sm:$0xff] }
  0x5a   : > { %603 = vmatpush.msrb.mxu2 %v344_v59  ;;  %632 = vmatpush.msrb.mxu3 %v345_v60  ;;  %5134 = vst [vmem:[#allocation18_spill] sm:$0xff] %v3153_v34  ;;  %v3216_v41 = vld [vmem:[%s4986_s3 + $0x1c0] sm:$0xff]  ;;  %v3233_v44 = vld [vmem:[%s4986_s3 + $0x138] sm:$0xff]  ;;  %v3255_v48 = vld [vmem:[%s4986_s3 + $0x130] sm:$0xff] }
  0x5b   : > { %545 = vmatpush.msrb.mxu0 %v342_v61  ;;  %574 = vmatpush.msrb.mxu1 %v343_v62  ;;  %5135 = vst [vmem:[#allocation19_spill] sm:$0xff] %v3158_v35  ;;  %v3221_v42 = vld [vmem:[%s4986_s3 + $0x20] sm:$0xff]  ;;  %v3243_v46 = vld [vmem:[%s4986_s3 + $0x18] sm:$0xff]  ;;  %v3260_v49 = vld [vmem:[%s4986_s3 + $0x1b0] sm:$0xff] }
  0x5c   : > { %604 = vmatpush.msrb.mxu2 %v336_v63  ;;  %633 = vmatpush.msrb.mxu3 %v337_v0  ;;  %5136 = vst [vmem:[#allocation20_spill] sm:$0xff] %v3171_v36  ;;  %v3226_v43 = vld [vmem:[%s4986_s3 + $0xa0] sm:$0xff]  ;;  %v3250_v47 = vld [vmem:[%s4986_s3 + $0x98] sm:$0xff]  ;;  %v3271_v50 = vld [vmem:[%s4986_s3 + $0x10] sm:$0xff] }
  0x5d   : > { %546 = vmatpush.msrb.mxu0 %v334_v1  ;;  %575 = vmatpush.msrb.mxu1 %v335_v2  ;;  %5137 = vst [vmem:[#allocation21_spill] sm:$0xff] %v3176_v37  ;;  %v3276_v51 = vld [vmem:[%s4986_s3 + $0x90] sm:$0xff]  ;;  %v3281_v52 = vld [vmem:[%s4986_s3 + $0x128] sm:$0xff]  ;;  %v3305_v56 = vld [vmem:[%s4986_s3 + $0x120] sm:$0xff] }
  0x5e   : > { %1108 = vmatpush.msra.mxu2 %v2995_v10  ;;  %1128 = vmatpush.msra.mxu3 %v3002_v11  ;;  %5138 = vst [vmem:[#allocation22_spill] sm:$0xff] %v3199_v38  ;;  %v3288_v53 = vld [vmem:[%s4986_s3 + $0x1a8] sm:$0xff]  ;;  %v3312_v57 = vld [vmem:[%s4986_s3 + $0x1a0] sm:$0xff]  ;;  %v3329_v60 = vld [vmem:[%s4986_s3 + $0x118] sm:$0xff] }
  0x5f   : > { %1068 = vmatpush.msra.mxu0 %v2963_v4  ;;  %1088 = vmatpush.msra.mxu1 %v2968_v5  ;;  %5139 = vst [vmem:[#allocation23_spill] sm:$0xff] %v3204_v39  ;;  %v3295_v54 = vld [vmem:[%s4986_s3 + $0x8] sm:$0xff]  ;;  %v3324_v59 = vld [vmem:[%s4986_s3 + $0x80] sm:$0xff]  ;;  %v3336_v61 = vld [vmem:[%s4986_s3 + $0x198] sm:$0xff] }
  0x60   : > { %2454 = vmatmul.msk.f32.gmra.mxu0 %vm402_vm0, %v2950_v3  ;;  %2458 = vmatmul.msk.f32.gmra.mxu1 %vm402_vm0, %v2950_v3  ;;  %5140 = vst [vmem:[#allocation24_spill] sm:$0xff] %v3209_v40  ;;  %v3300_v55 = vld [vmem:[%s4986_s3 + $0x88] sm:$0xff]  ;;  %v3341_v62 = vld [vmem:[%s4986_s3 + $0x278] sm:$0xff]  ;;  %v3353_v0 = vld [vmem:[%s4986_s3 + $0x110] sm:$0xff] }
  0x61   : > { %2462 = vmatmul.msk.f32.gmra.mxu2 %vm402_vm0, %v2950_v3  ;;  %2466 = vmatmul.msk.f32.gmra.mxu3 %vm402_vm0, %v2950_v3  ;;  %5141 = vst [vmem:[#allocation25_spill] sm:$0xff] %v3216_v41  ;;  %v3346_v63 = vld [vmem:[%s4986_s3 + $0x2f8] sm:$0xff]  ;;  %v3358_v1 = vld [vmem:[%s4986_s3 + $0x190] sm:$0xff] }
  0x62   : > { %1069 = vmatpush.msra.mxu0 %v2973_v6  ;;  %1089 = vmatpush.msra.mxu1 %v2980_v7  ;;  %5142 = vst [vmem:[#allocation26_spill] sm:$0xff] %v3221_v42  ;;  %v3363_v2 = vld [vmem:[%s4986_s3 + $0x270] sm:$0xff] }
  0x63   : > { %1109 = vmatpush.msra.mxu2 %v3009_v12  ;;  %1129 = vmatpush.msra.mxu3 %v3014_v13  ;;  %5143 = vst [vmem:[#allocation27_spill] sm:$0xff] %v3226_v43 }
  0x64   : > { %1070 = vmatpush.msra.mxu0 %v2985_v8  ;;  %1090 = vmatpush.msra.mxu1 %v2990_v9  ;;  %5144 = vst [vmem:[#allocation28_spill] sm:$0xff] %v3233_v44 }
  0x65   : > { %1110 = vmatpush.msra.mxu2 %v3037_v16  ;;  %1130 = vmatpush.msra.mxu3 %v3042_v17  ;;  %5146 = vst [vmem:[#allocation30_spill] sm:$0xff] %v3243_v46 }
  0x66   : > { %1071 = vmatpush.msra.mxu0 %v3021_v14  ;;  %1091 = vmatpush.msra.mxu1 %v3026_v15  ;;  %5147 = vst [vmem:[#allocation31_spill] sm:$0xff] %v3250_v47 }
  0x67   : > { %1111 = vmatpush.msra.mxu2 %v3063_v20  ;;  %1131 = vmatpush.msra.mxu3 %v3068_v21  ;;  %5148 = vst [vmem:[#allocation32_spill] sm:$0xff] %v3255_v48 }
  0x68   : > { %2467 = vmatmul.msk.f32.vlgmr.msrb.gmra.mxu0 %vm402_vm0, %v2917_v32  ;;  %2471 = vmatmul.msk.f32.vlgmr.msrb.gmra.mxu1 %vm402_vm0, %v2917_v32  ;;  %5149 = vst [vmem:[#allocation33_spill] sm:$0xff] %v3260_v49 }
  0x69   : > { %2475 = vmatmul.msk.f32.vlgmr.msrb.gmra.mxu2 %vm402_vm0, %v2917_v32  ;;  %2479 = vmatmul.msk.f32.vlgmr.msrb.gmra.mxu3 %vm402_vm0, %v2917_v32  ;;  %v3143_v32 = vld [vmem:[%s4986_s3 + $0x148] sm:$0xff]  ;;  %5150 = vst [vmem:[#allocation34_spill] sm:$0xff] %v3271_v50 }
  0x6a   : > { %1072 = vmatpush.msra.mxu0 %v3051_v18  ;;  %1092 = vmatpush.msra.mxu1 %v3056_v19  ;;  %5132 = vst [vmem:[#allocation16_spill] sm:$0xff] %v3143_v32 }
  0x6b   : > { %1112 = vmatpush.msra.mxu2 %v3087_v24  ;;  %1132 = vmatpush.msra.mxu3 %v3092_v25  ;;  %5151 = vst [vmem:[#allocation35_spill] sm:$0xff] %v3276_v51 }
  0x6c   : > { %1073 = vmatpush.msra.mxu0 %v3073_v22  ;;  %1093 = vmatpush.msra.mxu1 %v3078_v23  ;;  %5152 = vst [vmem:[#allocation36_spill] sm:$0xff] %v3281_v52 }
  0x6d   : > { %1113 = vmatpush.msra.mxu2 %v3117_v28  ;;  %1133 = vmatpush.msra.mxu3 %v3122_v29  ;;  %5153 = vst [vmem:[#allocation37_spill] sm:$0xff] %v3288_v53 }
  0x6e   : > { %1074 = vmatpush.msra.mxu0 %v3101_v26  ;;  %1094 = vmatpush.msra.mxu1 %v3106_v27  ;;  %5154 = vst [vmem:[#allocation38_spill] sm:$0xff] %v3295_v54 }
  0x6f   : > { %1114 = vmatpush.msra.mxu2 %v3143_v32  ;;  %1134 = vmatpush.msra.mxu3 %v3148_v33  ;;  %5155 = vst [vmem:[#allocation39_spill] sm:$0xff] %v3300_v55 }
  0x70   : > { %2468 = vmatmul.msk.f32.gmra.mxu0 %vm402_vm0, %v2928_v45  ;;  %2472 = vmatmul.msk.f32.gmra.mxu1 %vm402_vm0, %v2928_v45  ;;  %5156 = vst [vmem:[#allocation40_spill] sm:$0xff] %v3305_v56 }
  0x71   : > { %2476 = vmatmul.msk.f32.gmra.mxu2 %vm402_vm0, %v2928_v45  ;;  %2480 = vmatmul.msk.f32.gmra.mxu3 %vm402_vm0, %v2928_v45  ;;  %v3238_v45 = vld [vmem:[%s4986_s3 + $0x1b8] sm:$0xff]  ;;  %5157 = vst [vmem:[#allocation41_spill] sm:$0xff] %v3312_v57 }
  0x72   : > { %1075 = vmatpush.msra.mxu0 %v3131_v30  ;;  %1095 = vmatpush.msra.mxu1 %v3136_v31  ;;  %5145 = vst [vmem:[#allocation29_spill] sm:$0xff] %v3238_v45 }
  0x73   : > { %1115 = vmatpush.msra.mxu2 %v3209_v40  ;;  %1135 = vmatpush.msra.mxu3 %v3216_v41  ;;  %5159 = vst [vmem:[#allocation43_spill] sm:$0xff] %v3324_v59 }
  0x74   : > { %1076 = vmatpush.msra.mxu0 %v3153_v34  ;;  %1096 = vmatpush.msra.mxu1 %v3158_v35  ;;  %5160 = vst [vmem:[#allocation44_spill] sm:$0xff] %v3329_v60 }
  0x75   : > { %1116 = vmatpush.msra.mxu2 %v3233_v44  ;;  %1136 = vmatpush.msra.mxu3 %v3238_v45  ;;  %5161 = vst [vmem:[#allocation45_spill] sm:$0xff] %v3336_v61 }
  0x76   : > { %1077 = vmatpush.msra.mxu0 %v3171_v36  ;;  %1097 = vmatpush.msra.mxu1 %v3176_v37  ;;  %5162 = vst [vmem:[#allocation46_spill] sm:$0xff] %v3341_v62 }
  0x77   : > { %1117 = vmatpush.msra.mxu2 %v3255_v48  ;;  %1137 = vmatpush.msra.mxu3 %v3260_v49  ;;  %5163 = vst [vmem:[#allocation47_spill] sm:$0xff] %v3346_v63 }
  0x78   : > { %2469 = vmatmul.msk.f32.gmra.mxu0 %vm402_vm0, %v2939_v58  ;;  %2473 = vmatmul.msk.f32.gmra.mxu1 %vm402_vm0, %v2939_v58  ;;  %5164 = vst [vmem:[#allocation48_spill] sm:$0xff] %v3353_v0 }
  0x79   : > { %2477 = vmatmul.msk.f32.gmra.mxu2 %vm402_vm0, %v2939_v58  ;;  %2481 = vmatmul.msk.f32.gmra.mxu3 %vm402_vm0, %v2939_v58  ;;  %v3319_v58 = vld [vmem:[%s4986_s3] sm:$0xff]  ;;  %5165 = vst [vmem:[#allocation49_spill] sm:$0xff] %v3358_v1 }
  0x7a   : > { %1078 = vmatpush.msra.mxu0 %v3199_v38  ;;  %1098 = vmatpush.msra.mxu1 %v3204_v39  ;;  %5158 = vst [vmem:[#allocation42_spill] sm:$0xff] %v3319_v58 }
  0x7b   : > { %1118 = vmatpush.msra.mxu2 %v3281_v52  ;;  %1138 = vmatpush.msra.mxu3 %v3288_v53  ;;  %5166 = vst [vmem:[#allocation50_spill] sm:$0xff] %v3363_v2  ;;  %v3770_v53 = vld [vmem:[%s4986_s3 + $0x300] sm:$0xff] }
  0x7c   : > { %1079 = vmatpush.msra.mxu0 %v3221_v42  ;;  %1099 = vmatpush.msra.mxu1 %v3226_v43  ;;  %5231 = vst [vmem:[#allocation115_spill] sm:$0xff] %v3770_v53 }
  0x7d   : > { %1119 = vmatpush.msra.mxu2 %v3305_v56  ;;  %1139 = vmatpush.msra.mxu3 %v3312_v57 }
  0x7e   : > { %1080 = vmatpush.msra.mxu0 %v3243_v46  ;;  %1100 = vmatpush.msra.mxu1 %v3250_v47 }
  0x7f   : > { %1120 = vmatpush.msra.mxu2 %v3329_v60  ;;  %1140 = vmatpush.msra.mxu3 %v3336_v61  ;;  %v3377_v61 = vld [vmem:[%s4986_s3 + $0x108] sm:$0xff]  ;;  %v3464_v60 = vld [vmem:[%s4986_s3 + $0x2d0] sm:$0xff] }
  0x80   : > { %2470 = vmatmul.msk.f32.gmra.mxu0 %vm402_vm0, %v2950_v3  ;;  %2474 = vmatmul.msk.f32.gmra.mxu1 %vm402_vm0, %v2950_v3  ;;  %5168 = vst [vmem:[#allocation52_spill] sm:$0xff] %v3377_v61 }
  0x81   : > { %2478 = vmatmul.msk.f32.gmra.mxu2 %vm402_vm0, %v2950_v3  ;;  %2482 = vmatmul.msk.f32.gmra.mxu3 %vm402_vm0, %v2950_v3  ;;  %v3370_v3 = vld [vmem:[%s4986_s3 + $0x2f0] sm:$0xff]  ;;  %5183 = vst [vmem:[#allocation67_spill] sm:$0xff] %v3464_v60 }
  0x82   : > { %1081 = vmatpush.msra.mxu0 %v3271_v50  ;;  %1101 = vmatpush.msra.mxu1 %v3276_v51  ;;  %5167 = vst [vmem:[#allocation51_spill] sm:$0xff] %v3370_v3 }
  0x83   : > { %1121 = vmatpush.msra.mxu2 %v3353_v0  ;;  %1141 = vmatpush.msra.mxu3 %v3358_v1  ;;  %v3389_v0 = vld [vmem:[%s4986_s3 + $0x268] sm:$0xff] }
  0x84   : > { %1082 = vmatpush.msra.mxu0 %v3295_v54  ;;  %1102 = vmatpush.msra.mxu1 %v3300_v55  ;;  %5170 = vst [vmem:[#allocation54_spill] sm:$0xff] %v3389_v0  ;;  %v3394_v1 = vld [vmem:[%s4986_s3 + $0x2e8] sm:$0xff] }
  0x85   : > { %5171 = vst [vmem:[#allocation55_spill] sm:$0xff] %v3394_v1  ;;  %1122 = vmatpush.msra.mxu2 %v3377_v61  ;;  %v3413_v61 = vld [vmem:[%s4986_s3 + $0x260] sm:$0xff] }
  0x86   : > { %1083 = vmatpush.msra.mxu0 %v3319_v58  ;;  %1103 = vmatpush.msra.mxu1 %v3324_v59  ;;  %5174 = vst [vmem:[#allocation58_spill] sm:$0xff] %v3413_v61  ;;  %v3609_v59 = vld [vmem:[%s4986_s3 + $0x220] sm:$0xff] }
  0x87   : > { %5207 = vst [vmem:[#allocation91_spill] sm:$0xff] %v3609_v59 }
  0x88   : > { %1148 = vmatpush.msrb.mxu0 %v3341_v62  ;;  %1168 = vmatpush.msrb.mxu1 %v3346_v63  ;;  %v3382_v62 = vld [vmem:[%s4986_s3 + $0x188] sm:$0xff]  ;;  %v3423_v63 = vld [vmem:[%s4986_s3 + $0x378] sm:$0xff] }
  0x89   : > { %5169 = vst [vmem:[#allocation53_spill] sm:$0xff] %v3382_v62  ;;  %1142 = vmatpush.msra.mxu3 %v3382_v62  ;;  %v3418_v62 = vld [vmem:[%s4986_s3 + $0x2e0] sm:$0xff] }
  0x8a   : > { %1149 = vmatpush.msrb.mxu0 %v3363_v2  ;;  %1169 = vmatpush.msrb.mxu1 %v3370_v3  ;;  %v3401_v2 = vld [vmem:[%s4986_s3 + $0x100] sm:$0xff]  ;;  %5175 = vst [vmem:[#allocation59_spill] sm:$0xff] %v3418_v62 }
  0x8b   : > { %5172 = vst [vmem:[#allocation56_spill] sm:$0xff] %v3401_v2  ;;  %v3406_v3 = vld [vmem:[%s4986_s3 + $0x180] sm:$0xff]  ;;  %1123 = vmatpush.msra.mxu2 %v3401_v2  ;;  %v3442_v2 = vld [vmem:[%s4986_s3 + $0x2d8] sm:$0xff] }
  0x8c   : > { %5173 = vst [vmem:[#allocation57_spill] sm:$0xff] %v3406_v3  ;;  %1150 = vmatpush.msrb.mxu0 %v3389_v0  ;;  %1170 = vmatpush.msrb.mxu1 %v3394_v1  ;;  %v3430_v1 = vld [vmem:[%s4986_s3 + $0x3f8] sm:$0xff] }
  0x8d   : > { %5176 = vst [vmem:[#allocation60_spill] sm:$0xff] %v3423_v63  ;;  %1143 = vmatpush.msra.mxu3 %v3406_v3  ;;  %v3437_v0 = vld [vmem:[%s4986_s3 + $0x258] sm:$0xff]  ;;  %v3447_v3 = vld [vmem:[%s4986_s3 + $0x370] sm:$0xff]  ;;  %1188 = vmatpush.msrb.mxu2 %v3423_v63  ;;  %v3476_v63 = vld [vmem:[%s4986_s3 + $0x3e8] sm:$0xff] }
  0x8e   : > { %5177 = vst [vmem:[#allocation61_spill] sm:$0xff] %v3430_v1  ;;  %1151 = vmatpush.msrb.mxu0 %v3413_v61  ;;  %1171 = vmatpush.msrb.mxu1 %v3418_v62  ;;  %v3454_v62 = vld [vmem:[%s4986_s3 + $0x3f0] sm:$0xff] }
  0x8f   : > { %5178 = vst [vmem:[#allocation62_spill] sm:$0xff] %v3437_v0  ;;  %1208 = vmatpush.msrb.mxu3 %v3430_v1  ;;  %v3459_v61 = vld [vmem:[%s4986_s3 + $0x250] sm:$0xff]  ;;  %v3471_v1 = vld [vmem:[%s4986_s3 + $0x368] sm:$0xff]  ;;  %1189 = vmatpush.msrb.mxu2 %v3447_v3 }
  0x90   : > { %5179 = vst [vmem:[#allocation63_spill] sm:$0xff] %v3442_v2  ;;  %1152 = vmatpush.msrb.mxu0 %v3437_v0  ;;  %1172 = vmatpush.msrb.mxu1 %v3442_v2  ;;  %v3485_v2 = vld [vmem:[%s4986_s3 + $0x248] sm:$0xff] }
  0x91   : > { %5180 = vst [vmem:[#allocation64_spill] sm:$0xff] %v3447_v3  ;;  %1209 = vmatpush.msrb.mxu3 %v3454_v62  ;;  %v3490_v0 = vld [vmem:[%s4986_s3 + $0x2c8] sm:$0xff]  ;;  %v3495_v3 = vld [vmem:[%s4986_s3 + $0x360] sm:$0xff]  ;;  %1190 = vmatpush.msrb.mxu2 %v3471_v1 }
  0x92   : > { %5181 = vst [vmem:[#allocation65_spill] sm:$0xff] %v3454_v62  ;;  %1153 = vmatpush.msrb.mxu0 %v3459_v61  ;;  %1173 = vmatpush.msrb.mxu1 %v3464_v60  ;;  %v3502_v60 = vld [vmem:[%s4986_s3 + $0x3e0] sm:$0xff] }
  0x93   : > { %5182 = vst [vmem:[#allocation66_spill] sm:$0xff] %v3459_v61  ;;  %1210 = vmatpush.msrb.mxu3 %v3476_v63  ;;  %v3509_v61 = vld [vmem:[%s4986_s3 + $0x240] sm:$0xff]  ;;  %1191 = vmatpush.msrb.mxu2 %v3495_v3 }
  0x94   : > { %5184 = vst [vmem:[#allocation68_spill] sm:$0xff] %v3471_v1  ;;  %1154 = vmatpush.msrb.mxu0 %v3485_v2  ;;  %1174 = vmatpush.msrb.mxu1 %v3490_v0  ;;  %v3514_v1 = vld [vmem:[%s4986_s3 + $0x2c0] sm:$0xff] }
  0x95   : > { %5185 = vst [vmem:[#allocation69_spill] sm:$0xff] %v3476_v63  ;;  %v3519_v63 = vld [vmem:[%s4986_s3 + $0x358] sm:$0xff]  ;;  %1211 = vmatpush.msrb.mxu3 %v3502_v60 }
  0x96   : > { %5186 = vst [vmem:[#allocation70_spill] sm:$0xff] %v3485_v2  ;;  %1155 = vmatpush.msrb.mxu0 %v3509_v61  ;;  %1175 = vmatpush.msrb.mxu1 %v3514_v1  ;;  %v3533_v2 = vld [vmem:[%s4986_s3 + $0x238] sm:$0xff] }
  0x97   : > { %5187 = vst [vmem:[#allocation71_spill] sm:$0xff] %v3490_v0  ;;  %v3526_v0 = vld [vmem:[%s4986_s3 + $0x3d8] sm:$0xff]  ;;  %1192 = vmatpush.msrb.mxu2 %v3519_v63 }
  0x98   : > { %5188 = vst [vmem:[#allocation72_spill] sm:$0xff] %v3495_v3  ;;  %v3538_v3 = vld [vmem:[%s4986_s3 + $0x2b8] sm:$0xff]  ;;  %1212 = vmatpush.msrb.mxu3 %v3526_v0  ;;  %1156 = vmatpush.msrb.mxu0 %v3533_v2 }
  0x99   : > { %5189 = vst [vmem:[#allocation73_spill] sm:$0xff] %v3502_v60  ;;  %v3543_v60 = vld [vmem:[%s4986_s3 + $0x350] sm:$0xff]  ;;  %1176 = vmatpush.msrb.mxu1 %v3538_v3 }
  0x9a   : > { %5190 = vst [vmem:[#allocation74_spill] sm:$0xff] %v3509_v61  ;;  %v3557_v61 = vld [vmem:[%s4986_s3 + $0x230] sm:$0xff]  ;;  %1193 = vmatpush.msrb.mxu2 %v3543_v60 }
  0x9b   : > { %5191 = vst [vmem:[#allocation75_spill] sm:$0xff] %v3514_v1  ;;  %v3550_v1 = vld [vmem:[%s4986_s3 + $0x3d0] sm:$0xff]  ;;  %1157 = vmatpush.msrb.mxu0 %v3557_v61 }
  0x9c   : > { %5192 = vst [vmem:[#allocation76_spill] sm:$0xff] %v3519_v63  ;;  %v3562_v63 = vld [vmem:[%s4986_s3 + $0x2b0] sm:$0xff]  ;;  %1213 = vmatpush.msrb.mxu3 %v3550_v1 }
  0x9d   : > { %5193 = vst [vmem:[#allocation77_spill] sm:$0xff] %v3526_v0  ;;  %v3567_v0 = vld [vmem:[%s4986_s3 + $0x348] sm:$0xff]  ;;  %1177 = vmatpush.msrb.mxu1 %v3562_v63 }
  0x9e   : > { %5194 = vst [vmem:[#allocation78_spill] sm:$0xff] %v3533_v2  ;;  %v3581_v2 = vld [vmem:[%s4986_s3 + $0x228] sm:$0xff]  ;;  %1194 = vmatpush.msrb.mxu2 %v3567_v0 }
  0x9f   : > { %5195 = vst [vmem:[#allocation79_spill] sm:$0xff] %v3538_v3  ;;  %v3574_v3 = vld [vmem:[%s4986_s3 + $0x3c8] sm:$0xff]  ;;  %1158 = vmatpush.msrb.mxu0 %v3581_v2 }
  0xa0   : > { %5196 = vst [vmem:[#allocation80_spill] sm:$0xff] %v3543_v60  ;;  %v3586_v60 = vld [vmem:[%s4986_s3 + $0x2a8] sm:$0xff]  ;;  %1214 = vmatpush.msrb.mxu3 %v3574_v3 }
  0xa1   : > { %5197 = vst [vmem:[#allocation81_spill] sm:$0xff] %v3550_v1  ;;  %v3591_v1 = vld [vmem:[%s4986_s3 + $0x340] sm:$0xff]  ;;  %1178 = vmatpush.msrb.mxu1 %v3586_v60  ;;  %1159 = vmatpush.msrb.mxu0 %v3609_v59  ;;  %v3657_v59 = vld [vmem:[%s4986_s3 + $0x210] sm:$0xff] }
  0xa2   : > { %5198 = vst [vmem:[#allocation82_spill] sm:$0xff] %v3557_v61  ;;  %1195 = vmatpush.msrb.mxu2 %v3591_v1 }
  0xa3   : > { %5199 = vst [vmem:[#allocation83_spill] sm:$0xff] %v3562_v63  ;;  %v3602_v63 = vld [vmem:[%s4986_s3 + $0x3c0] sm:$0xff] }
  0xa4   : > { %5200 = vst [vmem:[#allocation84_spill] sm:$0xff] %v3567_v0  ;;  %v3614_v0 = vld [vmem:[%s4986_s3 + $0x2a0] sm:$0xff]  ;;  %1215 = vmatpush.msrb.mxu3 %v3602_v63 }
  0xa5   : > { %5201 = vst [vmem:[#allocation85_spill] sm:$0xff] %v3574_v3  ;;  %v3619_v3 = vld [vmem:[%s4986_s3 + $0x338] sm:$0xff]  ;;  %1179 = vmatpush.msrb.mxu1 %v3614_v0 }
  0xa6   : > { %5202 = vst [vmem:[#allocation86_spill] sm:$0xff] %v3581_v2  ;;  %v3633_v2 = vld [vmem:[%s4986_s3 + $0x218] sm:$0xff]  ;;  %1196 = vmatpush.msrb.mxu2 %v3619_v3 }
  0xa7   : > { %5203 = vst [vmem:[#allocation87_spill] sm:$0xff] %v3586_v60  ;;  %v3626_v60 = vld [vmem:[%s4986_s3 + $0x3b8] sm:$0xff]  ;;  %1160 = vmatpush.msrb.mxu0 %v3633_v2 }
  0xa8   : > { %5204 = vst [vmem:[#allocation88_spill] sm:$0xff] %v3591_v1  ;;  %v3638_v1 = vld [vmem:[%s4986_s3 + $0x298] sm:$0xff]  ;;  %1216 = vmatpush.msrb.mxu3 %v3626_v60 }
  0xa9   : > { %5206 = vst [vmem:[#allocation90_spill] sm:$0xff] %v3602_v63  ;;  %v3643_v63 = vld [vmem:[%s4986_s3 + $0x330] sm:$0xff]  ;;  %1180 = vmatpush.msrb.mxu1 %v3638_v1  ;;  %1161 = vmatpush.msrb.mxu0 %v3657_v59 }
  0xaa   : > { %5208 = vst [vmem:[#allocation92_spill] sm:$0xff] %v3614_v0  ;;  %v3650_v0 = vld [vmem:[%s4986_s3 + $0x3b0] sm:$0xff]  ;;  %1197 = vmatpush.msrb.mxu2 %v3643_v63 }
  0xab   : > { %5209 = vst [vmem:[#allocation93_spill] sm:$0xff] %v3619_v3  ;;  %v3662_v3 = vld [vmem:[%s4986_s3 + $0x290] sm:$0xff]  ;;  %1217 = vmatpush.msrb.mxu3 %v3650_v0 }
  0xac   : > { %5210 = vst [vmem:[#allocation94_spill] sm:$0xff] %v3626_v60  ;;  %v3667_v60 = vld [vmem:[%s4986_s3 + $0x328] sm:$0xff]  ;;  %1181 = vmatpush.msrb.mxu1 %v3662_v3 }
  0xad   : > { %5211 = vst [vmem:[#allocation95_spill] sm:$0xff] %v3633_v2  ;;  %1198 = vmatpush.msrb.mxu2 %v3667_v60 }
  0xae   : > { %5212 = vst [vmem:[#allocation96_spill] sm:$0xff] %v3638_v1  ;;  %v3674_v1 = vld [vmem:[%s4986_s3 + $0x3a8] sm:$0xff] }
  0xaf   : > { %5213 = vst [vmem:[#allocation97_spill] sm:$0xff] %v3643_v63  ;;  %1218 = vmatpush.msrb.mxu3 %v3674_v1  ;;  %v3696_v63 = vld [vmem:[%s4986_s3 + $0x288] sm:$0xff] }
  0xb0   : > { %5214 = vst [vmem:[#allocation98_spill] sm:$0xff] %v3650_v0  ;;  %v3691_v0 = vld [vmem:[%s4986_s3 + $0x208] sm:$0xff]  ;;  %1182 = vmatpush.msrb.mxu1 %v3696_v63 }
  0xb1   : > { %5215 = vst [vmem:[#allocation99_spill] sm:$0xff] %v3657_v59  ;;  %1162 = vmatpush.msrb.mxu0 %v3691_v0  ;;  %v3725_v59 = vld [vmem:[%s4986_s3 + $0x318] sm:$0xff] }
  0xb2   : > { %5216 = vst [vmem:[#allocation100_spill] sm:$0xff] %v3662_v3  ;;  %v3701_v3 = vld [vmem:[%s4986_s3 + $0x320] sm:$0xff] }
  0xb3   : > { %5217 = vst [vmem:[#allocation101_spill] sm:$0xff] %v3667_v60  ;;  %1199 = vmatpush.msrb.mxu2 %v3701_v3  ;;  %v3715_v60 = vld [vmem:[%s4986_s3 + $0x200] sm:$0xff] }
  0xb4   : > { %5218 = vst [vmem:[#allocation102_spill] sm:$0xff] %v3674_v1  ;;  %v3707_v1 = vld [vmem:[%s4986_s3 + $0x3a0] sm:$0xff]  ;;  %1163 = vmatpush.msrb.mxu0 %v3715_v60 }
  0xb5   : > { %5219 = vst [vmem:[#allocation103_spill] sm:$0xff] %v3691_v0  ;;  %1219 = vmatpush.msrb.mxu3 %v3707_v1  ;;  %v3720_v0 = vld [vmem:[%s4986_s3 + $0x280] sm:$0xff]  ;;  %1200 = vmatpush.msrb.mxu2 %v3725_v59 }
  0xb6   : > { %5220 = vst [vmem:[#allocation104_spill] sm:$0xff] %v3696_v63  ;;  %1183 = vmatpush.msrb.mxu1 %v3720_v0 }
  0xb7   : > { %5221 = vst [vmem:[#allocation105_spill] sm:$0xff] %v3701_v3  ;;  %v3739_v3 = vld [vmem:[%s4986_s3 + $0x310] sm:$0xff] }
  0xb8   : > { %5222 = vst [vmem:[#allocation106_spill] sm:$0xff] %v3707_v1  ;;  %v3732_v1 = vld [vmem:[%s4986_s3 + $0x398] sm:$0xff]  ;;  %1201 = vmatpush.msrb.mxu2 %v3739_v3 }
  0xb9   : > { %5223 = vst [vmem:[#allocation107_spill] sm:$0xff] %v3715_v60  ;;  %1220 = vmatpush.msrb.mxu3 %v3732_v1  ;;  %v3744_v60 = vld [vmem:[%s4986_s3 + $0x390] sm:$0xff] }
  0xba   : > { %5224 = vst [vmem:[#allocation108_spill] sm:$0xff] %v3720_v0  ;;  %v3749_v0 = vld [vmem:[%s4986_s3 + $0x308] sm:$0xff] }
  0xbb   : > { %5225 = vst [vmem:[#allocation109_spill] sm:$0xff] %v3725_v59  ;;  %1221 = vmatpush.msrb.mxu3 %v3744_v60  ;;  %1202 = vmatpush.msrb.mxu2 %v3749_v0 }
  0xbc   : > { %5226 = vst [vmem:[#allocation110_spill] sm:$0xff] %v3732_v1  ;;  %v3760_v1 = vld [vmem:[%s4986_s3 + $0x388] sm:$0xff] }
  0xbd   : > { %5227 = vst [vmem:[#allocation111_spill] sm:$0xff] %v3739_v3  ;;  %1222 = vmatpush.msrb.mxu3 %v3760_v1  ;;  %1203 = vmatpush.msrb.mxu2 %v3770_v53 }
  0xbe   : > { %5228 = vst [vmem:[#allocation112_spill] sm:$0xff] %v3744_v60  ;;  %v3775_v60 = vld [vmem:[%s4986_s3 + $0x380] sm:$0xff] }
  0xbf   : > { %5229 = vst [vmem:[#allocation113_spill] sm:$0xff] %v3749_v0  ;;  %1223 = vmatpush.msrb.mxu3 %v3775_v60 }
  0xc0   : > { %5230 = vst [vmem:[#allocation114_spill] sm:$0xff] %v3760_v1 }
  0xc1   : > { %5232 = vst [vmem:[#allocation116_spill] sm:$0xff] %v3775_v60 }
  0xc5   : > { %v3593_v62 = vpop.f32.mrf.mxu0  ;;  %v3595_v61 = vpop.f32.mrf.mxu1 }
  0xc6   : > { %5205 = vst [vmem:[#allocation89_spill] sm:$0xff] %v3593_v62 }
  0xcc   : > { %v3676_v2 = vpop.f32.mrf.mxu2  ;;  %v3678_v58 = vpop.f32.mrf.mxu3 }
  0xcd   : > { %v3682_v57 = vpop.f32.mrf.mxu0  ;;  %v3684_v56 = vpop.f32.mrf.mxu1 }
  0xce   : > { %v647_v3 = vadd.f32 %v3682_v57, %v3593_v62  ;;  %v656_v0 = vadd.f32 %v3684_v56, %v3595_v61 }
  0xd4   : > { %v3751_v63 = vpop.f32.mrf.mxu2  ;;  %v3753_v59 = vpop.f32.mrf.mxu3 }
  0xd5   : > { %v3762_v55 = vpop.f32.mrf.mxu0  ;;  %v3764_v54 = vpop.f32.mrf.mxu1  ;;  %v665_v45 = vadd.f32 %v3751_v63, %v3676_v2 }
  0xd6   : > { %v648_v52 = vadd.f32 %v647_v3, %v3762_v55  ;;  %v657_v51 = vadd.f32 %v656_v0, %v3764_v54  ;;  %v674_v0 = vadd.f32 %v3753_v59, %v3678_v58  ;;  %v3800_v3 = vld [vmem:[#allocation7] sm:$0x77] }
  0xd7   : > { %5233 = vst [vmem:[#allocation117_spill] sm:$0xff] %v3800_v3  ;;  %v3809_v38 = vmul.f32 32.0, %v3800_v3 }
  0xd9   : > { %v5096_v28 = vperm.slane %v3809_v38, 0  ;;  %v5098_v3 = vperm.slane %v3809_v38, 4 }
  0xdc   : > { %v3786_v50 = vpop.f32.mrf.mxu2  ;;  %v3788_v49 = vpop.f32.mrf.mxu3 }
  0xdd   : > { %v3790_v48 = vpop.f32.mrf.mxu0  ;;  %v3792_v1 = vpop.f32.mrf.mxu1  ;;  %v666_v42 = vadd.f32 %v665_v45, %v3786_v50  ;;  %v675_v41 = vadd.f32 %v674_v0, %v3788_v49  ;;  %v3817_v0 = vld [vmem:[#allocation7 + $0x8] sm:$0x77] }
  0xde   : > { %v649_v60 = vadd.f32 %v648_v52, %v3790_v48  ;;  %v658_v53 = vadd.f32 %v657_v51, %v3792_v1  ;;  %5238 = vst [vmem:[#allocation122_spill] sm:$0xff] %v3817_v0  ;;  %v3826_v25 = vmul.f32 32.0, %v3817_v0 }
  0xe0   : > { %v650_v47 = vrot.slane %v649_v60, 4  ;;  %v659_v46 = vrot.slane %v658_v53, 4 }
  0xe2   : > { %v651_v44 = vadd.f32 %v650_v47, %v649_v60  ;;  %v660_v43 = vadd.f32 %v659_v46, %v658_v53 }
  0xe4   : > { %v652_v40 = vrot.slane %v651_v44, 2  ;;  %v661_v52 = vrot.slane %v660_v43, 2  ;;  %v3804_v39 = vpop.f32.mrf.mxu2  ;;  %v3806_v51 = vpop.f32.mrf.mxu3 }
  0xe5   : > { %5234 = vst [vmem:[#allocation118_spill] sm:$0xff] %v3804_v39  ;;  %v667_v33 = vadd.f32 %v666_v42, %v3804_v39  ;;  %v676_v32 = vadd.f32 %v675_v41, %v3806_v51  ;;  %v3813_v37 = vpop.f32.mrf.mxu0  ;;  %v3815_v46 = vpop.f32.mrf.mxu1 }
  0xe6   : > { %5235 = vst [vmem:[#allocation119_spill] sm:$0xff] %v3806_v51  ;;  %v653_v45 = vadd.f32 %v652_v40, %v651_v44  ;;  %v662_v47 = vadd.f32 %v661_v52, %v660_v43 }
  0xe7   : > { %5236 = vst [vmem:[#allocation120_spill] sm:$0xff] %v3813_v37  ;;  %v668_v53 = vrot.slane %v667_v33, 4  ;;  %v677_v60 = vrot.slane %v676_v32, 4 }
  0xe8   : > { %5237 = vst [vmem:[#allocation121_spill] sm:$0xff] %v3815_v46  ;;  %v654_v36 = vrot.slane %v653_v45, 1  ;;  %v663_v29 = vrot.slane %v662_v47, 1 }
  0xe9   : > { %v669_v35 = vadd.f32 %v668_v53, %v667_v33  ;;  %v678_v42 = vadd.f32 %v677_v60, %v676_v32  ;;  %v735_v33 = vmul.f32 %v3682_v57, %v3682_v57  ;;  %v5100_v60 = vperm.slane %v3826_v25, 0 }
  0xea   : > { %v3821_v34 = vadd.f32 %v654_v36, %v653_v45  ;;  %v3823_v41 = vadd.f32 %v663_v29, %v662_v47  ;;  %v727_v29 = vmul.f32 %v3593_v62, %v3593_v62  ;;  %v744_v62 = vmul.f32 %v3764_v54, %v3764_v54 }
  0xeb   : > { %v670_v40 = vrot.slane %v669_v35, 2  ;;  %v679_v43 = vrot.slane %v678_v42, 2 }
  0xec   : > { %v3828_v44 = vpop.f32.mrf.mxu2  ;;  %v3830_v52 = vpop.f32.mrf.mxu3  ;;  %v863_v24 = vadd.f32 %v5096_v28, %v3821_v34  ;;  %v864_v32 = vadd.f32 %v5098_v3, %v3823_v41  ;;  %v743_v28 = vmul.f32 %v3762_v55, %v3762_v55 }
  0xed   : > { %5239 = vst [vmem:[#allocation123_spill] sm:$0xff] %v3828_v44  ;;  %v671_v36 = vadd.f32 %v670_v40, %v669_v35  ;;  %v680_v45 = vadd.f32 %v679_v43, %v678_v42  ;;  %v3842_v47 = vpop.f32.mrf.mxu0  ;;  %v3844_v53 = vpop.f32.mrf.mxu1  ;;  %v728_v35 = vmul.f32 %v3595_v61, %v3595_v61  ;;  %v736_v42 = vmul.f32 %v3684_v56, %v3684_v56 }
  0xee   : > { %5240 = vst [vmem:[#allocation124_spill] sm:$0xff] %v3830_v52  ;;  %1084 = vmatmul.f32.vlgmr.msra.gmra.mxu0 %v863_v24  ;;  %1104 = vmatmul.f32.vlgmr.msra.gmra.mxu1 %v864_v32  ;;  %v759_v24 = vadd.f32 %v735_v33, %v727_v29  ;;  %v751_v40 = vmul.f32 %v3790_v48, %v3790_v48  ;;  %v5243_v29 = vperm.slane %v3826_v25, 4 }
  0xef   : > { %5241 = vst [vmem:[#allocation125_spill] sm:$0xff] %v3842_v47  ;;  %v672_v0 = vrot.slane %v671_v36, 1  ;;  %v681_v3 = vrot.slane %v680_v45, 1  ;;  %1228 = vmatpush.msra.mxu0 %v2963_v4  ;;  %1248 = vmatpush.msra.mxu1 %v2968_v5  ;;  %v752_v33 = vmul.f32 %v3792_v1, %v3792_v1 }
  0xf0   : > { %5242 = vst [vmem:[#allocation126_spill] sm:$0xff] %v3844_v53  ;;  %v760_v4 = vadd.f32 %v759_v24, %v743_v28  ;;  %v738_v24 = vmul.f32 %v3753_v59, %v3753_v59 }
  0xf1   : > { %1229 = vmatpush.msra.mxu0 %v2973_v6  ;;  %v3859_v43 = vadd.f32 %v672_v0, %v671_v36  ;;  %v3861_v32 = vadd.f32 %v681_v3, %v680_v45  ;;  %1249 = vmatpush.msra.mxu1 %v2980_v7  ;;  %v768_v7 = vadd.f32 %v736_v42, %v728_v35 }
  0xf2   : > { %v761_v28 = vadd.f32 %v760_v4, %v751_v40  ;;  %v737_v45 = vmul.f32 %v3751_v63, %v3751_v63  ;;  %v730_v35 = vmul.f32 %v3678_v58, %v3678_v58  ;;  %v745_v42 = vmul.f32 %v3786_v50, %v3786_v50 }
  0xf3   : > { %1230 = vmatpush.msra.mxu0 %v2985_v8  ;;  %v865_v5 = vadd.f32 %v5100_v60, %v3859_v43  ;;  %v866_v6 = vadd.f32 %v5243_v29, %v3861_v32  ;;  %1250 = vmatpush.msra.mxu1 %v2990_v9  ;;  %v769_v29 = vadd.f32 %v768_v7, %v744_v62  ;;  %v5267_v60 = vld [vmem:[#allocation24_spill] sm:$0xff] }
  0xf4   : > { %v3873_v0 = vpop.f32.mrf.mxu2  ;;  %v3875_v3 = vpop.f32.mrf.mxu3  ;;  %v729_v9 = vmul.f32 %v3676_v2, %v3676_v2  ;;  %v746_v40 = vmul.f32 %v3788_v49, %v3788_v49  ;;  %v762_v4 = vrot.slane %v761_v28, 4 }
  0xf5   : > { %5244 = vst [vmem:[#allocation127_spill] sm:$0xff] %v3873_v0  ;;  %1124 = vmatmul.f32.vlgmr.msra.gmra.mxu2 %v865_v5  ;;  %v3880_v8 = vpop.f32.mrf.mxu0  ;;  %v3882_v36 = vpop.f32.mrf.mxu1  ;;  %1144 = vmatmul.f32.vlgmr.msra.gmra.mxu3 %v866_v6  ;;  %v770_v62 = vadd.f32 %v769_v29, %v752_v33  ;;  %v683_v5 = vadd.f32 %v3842_v47, %v3813_v37 }
  0xf6   : > { %5245 = vst [vmem:[#allocation128_spill] sm:$0xff] %v3875_v3  ;;  %1231 = vmatpush.msra.mxu0 %v3021_v14  ;;  %1251 = vmatpush.msra.mxu1 %v3026_v15  ;;  %v777_v14 = vadd.f32 %v737_v45, %v729_v9  ;;  %v692_v15 = vadd.f32 %v3844_v53, %v3815_v46 }
  0xf7   : > { %5246 = vst [vmem:[#allocation129_spill] sm:$0xff] %v3880_v8  ;;  %1268 = vmatpush.msra.mxu2 %v2995_v10  ;;  %1288 = vmatpush.msra.mxu3 %v3002_v11  ;;  %v786_v10 = vadd.f32 %v738_v24, %v730_v35  ;;  %v753_v6 = vmul.f32 %v3804_v39, %v3804_v39  ;;  %v771_v29 = vrot.slane %v770_v62, 4 }
  0xf8   : > { %5247 = vst [vmem:[#allocation130_spill] sm:$0xff] %v3882_v36  ;;  %1232 = vmatpush.msra.mxu0 %v3051_v18  ;;  %1252 = vmatpush.msra.mxu1 %v3056_v19  ;;  %v754_v11 = vmul.f32 %v3806_v51, %v3806_v51  ;;  %v684_v18 = vadd.f32 %v683_v5, %v3880_v8  ;;  %v5254_v5 = vld [vmem:[#allocation18_spill] sm:$0xff] }
  0xf9   : > { %1269 = vmatpush.msra.mxu2 %v3009_v12  ;;  %1289 = vmatpush.msra.mxu3 %v3014_v13  ;;  %v693_v7 = vadd.f32 %v692_v15, %v3882_v36  ;;  %v778_v33 = vadd.f32 %v777_v14, %v745_v42  ;;  %v787_v45 = vadd.f32 %v786_v10, %v746_v40  ;;  %v5252_v40 = vld [vmem:[#allocation12_spill] sm:$0xff]  ;;  %v5255_v15 = vld [vmem:[#allocation19_spill] sm:$0xff]  ;;  %v872_v10 = vmul.f32 2.0, %v3823_v41 }
  0xfa   : > { %1233 = vmatpush.msra.mxu0 %v3073_v22  ;;  %1253 = vmatpush.msra.mxu1 %v3078_v23  ;;  %v763_v24 = vadd.f32 %v762_v4, %v761_v28  ;;  %v5253_v4 = vld [vmem:[#allocation13_spill] sm:$0xff] }
  0xfb   : > { %1270 = vmatpush.msra.mxu2 %v3037_v16  ;;  %1290 = vmatpush.msra.mxu3 %v3042_v17  ;;  %v779_v9 = vadd.f32 %v778_v33, %v753_v6  ;;  %v788_v35 = vadd.f32 %v787_v45, %v754_v11  ;;  %v5256_v11 = vld [vmem:[#allocation14_spill] sm:$0xff] }
  0xfc   : > { %v3917_v12 = vpop.f32.mrf.mxu2  ;;  %v3919_v19 = vpop.f32.mrf.mxu3  ;;  %1234 = vmatpush.msra.mxu0 %v3101_v26  ;;  %1254 = vmatpush.msra.mxu1 %v3106_v27  ;;  %v764_v42 = vrot.slane %v763_v24, 2  ;;  %v772_v26 = vadd.f32 %v771_v29, %v770_v62  ;;  %v701_v27 = vadd.f32 %v3873_v0, %v3828_v44  ;;  %v5258_v29 = vld [vmem:[#allocation20_spill] sm:$0xff] }
  0xfd   : > { %5248 = vst [vmem:[#allocation131_spill] sm:$0xff] %v3917_v12  ;;  %v3922_v13 = vpop.f32.mrf.mxu0  ;;  %v3924_v22 = vpop.f32.mrf.mxu1  ;;  %1271 = vmatpush.msra.mxu2 %v3063_v20  ;;  %1291 = vmatpush.msra.mxu3 %v3068_v21  ;;  %v710_v20 = vadd.f32 %v3875_v3, %v3830_v52  ;;  %v789_v62 = vrot.slane %v788_v35, 4 }
  0xfe   : > { %5249 = vst [vmem:[#allocation132_spill] sm:$0xff] %v3919_v19  ;;  %v685_v16 = vadd.f32 %v684_v18, %v3922_v13  ;;  %v694_v23 = vadd.f32 %v693_v7, %v3924_v22  ;;  %1235 = vmatpush.msra.mxu0 %v3131_v30  ;;  %1255 = vmatpush.msra.mxu1 %v3136_v31  ;;  %v3942_v30 = vld [vmem:[#allocation7 + $0x10] sm:$0x77]  ;;  %v780_v31 = vrot.slane %v779_v9, 4  ;;  %v5257_v18 = vld [vmem:[#allocation15_spill] sm:$0xff]  ;;  %v773_v41 = vrot.slane %v772_v26, 2 }
  0xff   : > { %5250 = vst [vmem:[#allocation133_spill] sm:$0xff] %v3922_v13  ;;  %1272 = vmatpush.msra.mxu2 %v5252_v40  ;;  %1292 = vmatpush.msra.mxu3 %v5253_v4  ;;  %v702_v6 = vadd.f32 %v701_v27, %v3917_v12  ;;  %v711_v7 = vadd.f32 %v710_v20, %v3919_v19  ;;  %v5262_v27 = vld [vmem:[#allocation16_spill] sm:$0xff]  ;;  %v5263_v40 = vld [vmem:[#allocation17_spill] sm:$0xff]  ;;  %v3961_v20 = vmul.f32 32.0, %v3942_v30 }
 0x100   : > { %5251 = vst [vmem:[#allocation134_spill] sm:$0xff] %v3924_v22  ;;  %v686_v28 = vrot.slane %v685_v16, 4  ;;  %v695_v17 = vrot.slane %v694_v23, 4  ;;  %1236 = vmatpush.msra.mxu0 %v5254_v5  ;;  %1256 = vmatpush.msra.mxu1 %v5255_v15 }
 0x101   : > { %1273 = vmatpush.msra.mxu2 %v5256_v11  ;;  %1293 = vmatpush.msra.mxu3 %v5257_v18  ;;  %v5264_v18 = vld [vmem:[#allocation22_spill] sm:$0xff] }
 0x102   : > { %v687_v14 = vadd.f32 %v686_v28, %v685_v16  ;;  %v696_v21 = vadd.f32 %v695_v17, %v694_v23  ;;  %1237 = vmatpush.msra.mxu0 %v5258_v29  ;;  %v5259_v16 = vld [vmem:[#allocation21_spill] sm:$0xff]  ;;  %v3955_v17 = vadd.f32 %v764_v42, %v763_v24  ;;  %v5265_v29 = vld [vmem:[#allocation23_spill] sm:$0xff]  ;;  %v781_v24 = vadd.f32 %v780_v31, %v779_v9  ;;  %v5271_v31 = vld [vmem:[#allocation28_spill] sm:$0xff] }
 0x103   : > { %1257 = vmatpush.msra.mxu1 %v5259_v16  ;;  %1274 = vmatpush.msra.mxu2 %v5262_v27  ;;  %v790_v42 = vadd.f32 %v789_v62, %v788_v35  ;;  %v5266_v16 = vperm.slane %v3809_v38, 4  ;;  %v871_v9 = vmul.f32 2.0, %v3821_v34  ;;  %v5272_v62 = vld [vmem:[#allocation29_spill] sm:$0xff]  ;;  %v731_v34 = vmul.f32 %v3813_v37, %v3813_v37 }
 0x104   : > { %v688_v33 = vrot.slane %v687_v14, 2  ;;  %v697_v45 = vrot.slane %v696_v21, 2  ;;  %v3951_v23 = vpop.f32.mrf.mxu2  ;;  %v3953_v28 = vpop.f32.mrf.mxu3  ;;  %1294 = vmatpush.msra.mxu3 %v5263_v40  ;;  %1238 = vmatpush.msra.mxu0 %v5264_v18  ;;  %v5270_v18 = vld [vmem:[#allocation27_spill] sm:$0xff] }
 0x105   : > { %5260 = vst [vmem:[#allocation12_spill] sm:$0xff] %v3951_v23  ;;  %v703_v4 = vadd.f32 %v702_v6, %v3951_v23  ;;  %v712_v11 = vadd.f32 %v711_v7, %v3953_v28  ;;  %1258 = vmatpush.msra.mxu1 %v5265_v29  ;;  %v880_v27 = vadd.f32 %v872_v10, %v5266_v16  ;;  %v5268_v6 = vld [vmem:[#allocation25_spill] sm:$0xff]  ;;  %v5274_v16 = vld [vmem:[#allocation31_spill] sm:$0xff] }
 0x106   : > { %5261 = vst [vmem:[#allocation13_spill] sm:$0xff] %v3953_v28  ;;  %v689_v5 = vadd.f32 %v688_v33, %v687_v14  ;;  %v698_v15 = vadd.f32 %v697_v45, %v696_v21  ;;  %1275 = vmatpush.msra.mxu2 %v5267_v60  ;;  %1295 = vmatpush.msra.mxu3 %v5268_v6  ;;  %v874_v14 = vmul.f32 2.0, %v3861_v32  ;;  %v5269_v45 = vld [vmem:[#allocation26_spill] sm:$0xff]  ;;  %v5281_v60 = vld [vmem:[#allocation36_spill] sm:$0xff] }
 0x107   : > { %v704_v40 = vrot.slane %v703_v4, 4  ;;  %v713_v7 = vrot.slane %v712_v11, 4  ;;  %1239 = vmatpush.msra.mxu0 %v5269_v45  ;;  %1259 = vmatpush.msra.mxu1 %v5270_v18  ;;  %v3973_v29 = vadd.f32 %v773_v41, %v772_v26  ;;  %v5273_v32 = vld [vmem:[#allocation30_spill] sm:$0xff]  ;;  %v3986_v41 = vld [vmem:[#allocation7 + $0x18] sm:$0x77]  ;;  %v5276_v18 = vld [vmem:[#allocation33_spill] sm:$0xff] }
 0x108   : > { %v690_v21 = vrot.slane %v689_v5, 1  ;;  %v699_v33 = vrot.slane %v698_v15, 1  ;;  %1276 = vmatpush.msra.mxu2 %v5271_v31  ;;  %1296 = vmatpush.msra.mxu3 %v5272_v62  ;;  %v5278_v62 = vld [vmem:[#allocation34_spill] sm:$0xff] }
 0x109   : > { %v705_v35 = vadd.f32 %v704_v40, %v703_v4  ;;  %v714_v10 = vadd.f32 %v713_v7, %v712_v11  ;;  %1240 = vmatpush.msra.mxu0 %v5273_v32  ;;  %1260 = vmatpush.msra.mxu1 %v5274_v16  ;;  %v732_v4 = vmul.f32 %v3815_v46, %v3815_v46  ;;  %v895_v40 = vrot.slane %v880_v27, 4  ;;  %v5275_v7 = vld [vmem:[#allocation32_spill] sm:$0xff]  ;;  %v5279_v32 = vld [vmem:[#allocation35_spill] sm:$0xff] }
 0x10a   : > { %v3981_v6 = vadd.f32 %v690_v21, %v689_v5  ;;  %v3983_v45 = vadd.f32 %v699_v33, %v698_v15  ;;  %1277 = vmatpush.msra.mxu2 %v5275_v7  ;;  %1297 = vmatpush.msra.mxu3 %v5276_v18  ;;  %v782_v5 = vrot.slane %v781_v24, 2  ;;  %v791_v21 = vrot.slane %v790_v42, 2  ;;  %v5282_v18 = vld [vmem:[#allocation37_spill] sm:$0xff] }
 0x10b   : > { %v706_v11 = vrot.slane %v705_v35, 2  ;;  %v5277_v15 = vperm.slane %v3826_v25, 4  ;;  %v715_v31 = vrot.slane %v714_v10, 2  ;;  %1241 = vmatpush.msra.mxu0 %v5278_v62  ;;  %1261 = vmatpush.msra.mxu1 %v5279_v32  ;;  %v4000_v16 = vmul.f32 %v3828_v44, %v3828_v44  ;;  %v5283_v62 = vld [vmem:[#allocation38_spill] sm:$0xff]  ;;  %v5284_v32 = vld [vmem:[#allocation39_spill] sm:$0xff] }
 0x10c   : > { %v5280_v27 = vperm.slane %v3809_v38, 0  ;;  %1278 = vmatpush.msra.mxu2 %v5281_v60  ;;  %1298 = vmatpush.msra.mxu3 %v5282_v18  ;;  %v4007_v46 = vmul.f32 32.0, %v3986_v41  ;;  %v5285_v44 = vperm.slane %v3961_v20, 0  ;;  %v4020_v60 = vmul.f32 %v3830_v52, %v3830_v52  ;;  %v5290_v52 = vld [vmem:[#allocation43_spill] sm:$0xff] }
 0x10d   : > { %v882_v33 = vadd.f32 %v874_v14, %v5277_v15  ;;  %v707_v7 = vadd.f32 %v706_v11, %v705_v35  ;;  %v873_v14 = vmul.f32 2.0, %v3859_v43  ;;  %v716_v15 = vadd.f32 %v715_v31, %v714_v10  ;;  %1242 = vmatpush.msra.mxu0 %v5283_v62  ;;  %1262 = vmatpush.msra.mxu1 %v5284_v32  ;;  %v5287_v11 = vld [vmem:[#allocation40_spill] sm:$0xff]  ;;  %v5288_v31 = vld [vmem:[#allocation41_spill] sm:$0xff] }
 0x10e   : > { %v879_v26 = vadd.f32 %v871_v9, %v5280_v27  ;;  %v867_v38 = vadd.f32 %v5285_v44, %v3981_v6  ;;  %v5286_v9 = vperm.slane %v3961_v20, 4  ;;  %v739_v43 = vmul.f32 %v3842_v47, %v3842_v47  ;;  %1279 = vmatpush.msra.mxu2 %v5287_v11  ;;  %1299 = vmatpush.msra.mxu3 %v5288_v31  ;;  %v5291_v47 = vld [vmem:[#allocation44_spill] sm:$0xff]  ;;  %v5292_v11 = vld [vmem:[#allocation45_spill] sm:$0xff] }
 0x10f   : > { %v708_v10 = vrot.slane %v707_v7, 1  ;;  %v4027_v18 = vadd.f32 %v782_v5, %v781_v24  ;;  %v740_v44 = vmul.f32 %v3844_v53, %v3844_v53  ;;  %v896_v62 = vrot.slane %v882_v33, 4  ;;  %1263 = vmatpush.msra.mxu1 %v5290_v52  ;;  %v5294_v52 = vld [vmem:[#allocation117_spill] sm:$0xff] }
 0x110   : > { %v868_v35 = vadd.f32 %v5286_v9, %v3983_v45  ;;  %v900_v27 = vsel %vm899_vm1, %v879_v26, %v895_v40  ;;  %v717_v32 = vrot.slane %v716_v15, 1  ;;  %v5289_v9 = vld [vmem:[#allocation42_spill] sm:$0xff]  ;;  %v4033_v37 = vadd.f32 %v791_v21, %v790_v42  ;;  %1280 = vmatpush.msra.mxu2 %v5291_v47  ;;  %1300 = vmatpush.msra.mxu3 %v5292_v11 }
 0x111   : > { %1243 = vmatpush.msra.mxu0 %v5289_v9  ;;  %v4037_v31 = vadd.f32 %v708_v10, %v707_v7  ;;  %v5106_v24 = vperm.slane %v4007_v46, 0  ;;  %v5107_v26 = vperm.slane %v4007_v46, 4  ;;  %v5293_v40 = vperm.slane %v3826_v25, 0  ;;  %v5295_v10 = vld [vmem:[#allocation46_spill] sm:$0xff]  ;;  %v5296_v9 = vld [vmem:[#allocation47_spill] sm:$0xff]  ;;  %v5297_v25 = vld [vmem:[#allocation48_spill] sm:$0xff] }
 0x112   : > { %1164 = vmatmul.f32.vlgmr.msrb.gmra.mxu0 %v867_v38  ;;  %1184 = vmatmul.f32.vlgmr.msrb.gmra.mxu1 %v868_v35  ;;  %v4043_v33 = vadd.f32 %v717_v32, %v716_v15  ;;  %v908_v42 = vmul.f32 %v900_v27, %v5294_v52  ;;  %v795_v21 = vadd.f32 %v739_v43, %v731_v34  ;;  %v766_v15 = vrot.slane %v3955_v17, 1  ;;  %v5299_v43 = vld [vmem:[#allocation50_spill] sm:$0xff]  ;;  %v5300_v27 = vld [vmem:[#allocation51_spill] sm:$0xff] }
 0x113   : > { %v881_v5 = vadd.f32 %v873_v14, %v5293_v40  ;;  %v747_v47 = vmul.f32 %v3880_v8, %v3880_v8  ;;  %v748_v7 = vmul.f32 %v3882_v36, %v3882_v36  ;;  %1308 = vmatpush.msrb.mxu0 %v5295_v10  ;;  %1328 = vmatpush.msrb.mxu1 %v5296_v9  ;;  %v5298_v14 = vld [vmem:[#allocation49_spill] sm:$0xff]  ;;  %v775_v38 = vrot.slane %v3973_v29, 1  ;;  %v5301_v40 = vld [vmem:[#allocation52_spill] sm:$0xff] }
 0x114   : > { %v804_v11 = vadd.f32 %v740_v44, %v732_v4  ;;  %1281 = vmatpush.msra.mxu2 %v5297_v25  ;;  %1301 = vmatpush.msra.mxu3 %v5298_v14  ;;  %v755_v35 = vmul.f32 %v3922_v13, %v3922_v13  ;;  %v869_v4 = vadd.f32 %v5106_v24, %v4037_v31  ;;  %v916_v52 = vperm.slane %v908_v42, 0  ;;  %v5305_v24 = vld [vmem:[#allocation56_spill] sm:$0xff] }
 0x115   : > { %v901_v34 = vsel %vm899_vm1, %v881_v5, %v896_v62  ;;  %1309 = vmatpush.msrb.mxu0 %v5299_v43  ;;  %1329 = vmatpush.msrb.mxu1 %v5300_v27  ;;  %v870_v44 = vadd.f32 %v5107_v26, %v4043_v33  ;;  %v741_v32 = vmul.f32 %v3873_v0, %v3873_v0  ;;  %v5302_v5 = vld [vmem:[#allocation53_spill] sm:$0xff]  ;;  %v917_v10 = vperm.slane %v908_v42, 4  ;;  %v5303_v43 = vld [vmem:[#allocation54_spill] sm:$0xff]  ;;  %v5304_v27 = vld [vmem:[#allocation55_spill] sm:$0xff] }
 0x116   : > { %v756_v62 = vmul.f32 %v3924_v22, %v3924_v22  ;;  %1282 = vmatpush.msra.mxu2 %v5301_v40  ;;  %1302 = vmatpush.msra.mxu3 %v5302_v5  ;;  %v742_v9 = vmul.f32 %v3875_v3, %v3875_v3  ;;  %v796_v25 = vadd.f32 %v795_v21, %v747_v47  ;;  %v5306_v26 = vld [vmem:[#allocation57_spill] sm:$0xff]  ;;  %v5307_v5 = vld [vmem:[#allocation122_spill] sm:$0xff] }
 0x117   : > { %v805_v14 = vadd.f32 %v804_v11, %v748_v7  ;;  %1310 = vmatpush.msrb.mxu0 %v5303_v43  ;;  %1330 = vmatpush.msrb.mxu1 %v5304_v27  ;;  %v767_v22 = vadd.f32 %v766_v15, %v3955_v17  ;;  %v776_v40 = vadd.f32 %v775_v38, %v3973_v29  ;;  %v5308_v11 = vld [vmem:[#allocation58_spill] sm:$0xff]  ;;  %v5310_v15 = vld [vmem:[#allocation60_spill] sm:$0xff]  ;;  %v5311_v38 = vld [vmem:[#allocation61_spill] sm:$0xff]  ;;  %v793_v43 = vrot.slane %v4033_v37, 1 }
 0x118   : > { %1283 = vmatpush.msra.mxu2 %v5305_v24  ;;  %1303 = vmatpush.msra.mxu3 %v5306_v26  ;;  %v909_v13 = vmul.f32 %v901_v34, %v5307_v5  ;;  %v749_v42 = vmul.f32 %v3917_v12, %v3917_v12  ;;  %v750_v21 = vmul.f32 %v3919_v19, %v3919_v19  ;;  %v5309_v24 = vld [vmem:[#allocation59_spill] sm:$0xff]  ;;  %v784_v34 = vrot.slane %v4027_v18, 1  ;;  %v5315_v27 = vld [vmem:[#allocation65_spill] sm:$0xff] }
 0x119   : > { %v797_v47 = vadd.f32 %v796_v25, %v755_v35  ;;  %1204 = vmatmul.f32.vlgmr.msrb.gmra.mxu2 %v869_v4  ;;  %1224 = vmatmul.f32.vlgmr.msrb.gmra.mxu3 %v870_v44  ;;  %v806_v7 = vadd.f32 %v805_v14, %v756_v62  ;;  %v932_v26 = vadd.f32 %v916_v52, %v767_v22  ;;  %v876_v22 = vmul.f32 2.0, %v3983_v45  ;;  %v5317_v5 = vld [vmem:[#allocation67_spill] sm:$0xff] }
 0x11a   : > { %1311 = vmatpush.msrb.mxu0 %v5308_v11  ;;  %1331 = vmatpush.msrb.mxu1 %v5309_v24  ;;  %v933_v17 = vadd.f32 %v917_v10, %v776_v40  ;;  %v813_v29 = vadd.f32 %v741_v32, %v4000_v16  ;;  %v822_v35 = vadd.f32 %v742_v9, %v4020_v60  ;;  %v5312_v16 = vld [vmem:[#allocation62_spill] sm:$0xff]  ;;  %v5313_v32 = vld [vmem:[#allocation63_spill] sm:$0xff]  ;;  %v918_v62 = vperm.slane %v909_v13, 0  ;;  %v5314_v9 = vld [vmem:[#allocation64_spill] sm:$0xff] }
 0x11b   : > { %1348 = vmatpush.msrb.mxu2 %v5310_v15  ;;  %1368 = vmatpush.msrb.mxu3 %v5311_v38  ;;  %v757_v4 = vmul.f32 %v3951_v23, %v3951_v23  ;;  %v758_v44 = vmul.f32 %v3953_v28, %v3953_v28  ;;  %v919_v52 = vperm.slane %v909_v13, 4  ;;  %v798_v14 = vrot.slane %v797_v47, 4  ;;  %v5316_v40 = vld [vmem:[#allocation66_spill] sm:$0xff]  ;;  %v5319_v13 = vld [vmem:[#allocation69_spill] sm:$0xff]  ;;  %v5322_v15 = vld [vmem:[#allocation71_spill] sm:$0xff] }
 0x11c   : > { %1244 = vmatmul.f32.vlgmr.msra.gmra.mxu0 %v932_v26  ;;  %1264 = vmatmul.f32.vlgmr.msra.gmra.mxu1 %v933_v17  ;;  %v814_v10 = vadd.f32 %v813_v29, %v749_v42  ;;  %v823_v25 = vadd.f32 %v822_v35, %v750_v21  ;;  %v807_v60 = vrot.slane %v806_v7, 4  ;;  %v785_v45 = vadd.f32 %v784_v34, %v4027_v18  ;;  %v5318_v17 = vld [vmem:[#allocation68_spill] sm:$0xff]  ;;  %v5321_v29 = vld [vmem:[#allocation70_spill] sm:$0xff] }
 0x11d   : > { %1312 = vmatpush.msrb.mxu0 %v5312_v16  ;;  %1332 = vmatpush.msrb.mxu1 %v5313_v32  ;;  %v794_v11 = vadd.f32 %v793_v43, %v4033_v37  ;;  %v5320_v42 = vperm.slane %v3961_v20, 4  ;;  %v799_v16 = vadd.f32 %v798_v14, %v797_v47  ;;  %v5323_v18 = vld [vmem:[#allocation72_spill] sm:$0xff]  ;;  %v5324_v37 = vld [vmem:[#allocation73_spill] sm:$0xff]  ;;  %v875_v34 = vmul.f32 2.0, %v3981_v6  ;;  %v5329_v14 = vld [vmem:[#allocation78_spill] sm:$0xff] }
 0x11e   : > { %1349 = vmatpush.msrb.mxu2 %v5314_v9  ;;  %1369 = vmatpush.msrb.mxu3 %v5315_v27  ;;  %v815_v24 = vadd.f32 %v814_v10, %v757_v4  ;;  %v824_v26 = vadd.f32 %v823_v25, %v758_v44  ;;  %v934_v38 = vadd.f32 %v918_v62, %v785_v45  ;;  %v878_v43 = vmul.f32 2.0, %v4043_v33  ;;  %v5326_v10 = vld [vmem:[#allocation75_spill] sm:$0xff]  ;;  %v5328_v47 = vld [vmem:[#allocation77_spill] sm:$0xff] }
 0x11f   : > { %1313 = vmatpush.msrb.mxu0 %v5316_v40  ;;  %1333 = vmatpush.msrb.mxu1 %v5317_v5  ;;  %v884_v21 = vadd.f32 %v876_v22, %v5320_v42  ;;  %v935_v35 = vadd.f32 %v919_v52, %v794_v11  ;;  %v808_v32 = vadd.f32 %v807_v60, %v806_v7  ;;  %v5325_v22 = vld [vmem:[#allocation74_spill] sm:$0xff]  ;;  %v5327_v52 = vld [vmem:[#allocation76_spill] sm:$0xff]  ;;  %v800_v7 = vrot.slane %v799_v16, 2  ;;  %v5330_v6 = vld [vmem:[#allocation79_spill] sm:$0xff] }
 0x120   : > { %1350 = vmatpush.msrb.mxu2 %v5318_v17  ;;  %1370 = vmatpush.msrb.mxu3 %v5319_v13  ;;  %v816_v4 = vrot.slane %v815_v24, 4  ;;  %v825_v44 = vrot.slane %v824_v26, 4  ;;  %v5331_v33 = vperm.slane %v3961_v20, 0  ;;  %v5332_v9 = vperm.slane %v4007_v46, 4  ;;  %v5333_v40 = vld [vmem:[#allocation80_spill] sm:$0xff]  ;;  %v5334_v5 = vld [vmem:[#allocation81_spill] sm:$0xff] }
 0x121   : > { %1314 = vmatpush.msrb.mxu0 %v5321_v29  ;;  %1334 = vmatpush.msrb.mxu1 %v5322_v15  ;;  %v897_v62 = vrot.slane %v884_v21, 4  ;;  %v809_v25 = vrot.slane %v808_v32, 2  ;;  %v5335_v17 = vld [vmem:[#allocation82_spill] sm:$0xff]  ;;  %v5336_v13 = vld [vmem:[#allocation83_spill] sm:$0xff]  ;;  %v877_v42 = vmul.f32 2.0, %v4037_v31  ;;  %v5337_v21 = vld [vmem:[#allocation84_spill] sm:$0xff]  ;;  %v801_v15 = vadd.f32 %v800_v7, %v799_v16 }
 0x122   : > { %1351 = vmatpush.msrb.mxu2 %v5323_v18  ;;  %1371 = vmatpush.msrb.mxu3 %v5324_v37  ;;  %v883_v60 = vadd.f32 %v875_v34, %v5331_v33  ;;  %v886_v27 = vadd.f32 %v878_v43, %v5332_v9  ;;  %v817_v45 = vadd.f32 %v816_v4, %v815_v24  ;;  %v5338_v29 = vld [vmem:[#allocation85_spill] sm:$0xff]  ;;  %v5340_v18 = vld [vmem:[#allocation87_spill] sm:$0xff]  ;;  %v5342_v37 = vld [vmem:[#allocation90_spill] sm:$0xff]  ;;  %v5345_v16 = vperm.slane %v4007_v46, 0 }
 0x123   : > { %1284 = vmatmul.f32.vlgmr.msra.gmra.mxu2 %v934_v38  ;;  %1304 = vmatmul.f32.vlgmr.msra.gmra.mxu3 %v935_v35  ;;  %v826_v11 = vadd.f32 %v825_v44, %v824_v26  ;;  %v810_v38 = vadd.f32 %v809_v25, %v808_v32  ;;  %v5339_v35 = vld [vmem:[#allocation86_spill] sm:$0xff]  ;;  %v5341_v26 = vld [vmem:[#allocation88_spill] sm:$0xff]  ;;  %v5343_v31 = vld [vmem:[#allocation91_spill] sm:$0xff] }
 0x124   : > { %1315 = vmatpush.msrb.mxu0 %v5325_v22  ;;  %1335 = vmatpush.msrb.mxu1 %v5326_v10  ;;  %v902_v20 = vsel %vm899_vm1, %v883_v60, %v897_v62  ;;  %v898_v24 = vrot.slane %v886_v27, 4  ;;  %v818_v34 = vrot.slane %v817_v45, 2  ;;  %v5344_v4 = vld [vmem:[#allocation92_spill] sm:$0xff]  ;;  %v885_v32 = vadd.f32 %v877_v42, %v5345_v16  ;;  %v5346_v22 = vld [vmem:[#allocation93_spill] sm:$0xff]  ;;  %v5347_v10 = vld [vmem:[#allocation94_spill] sm:$0xff] }
 0x125   : > { %1352 = vmatpush.msrb.mxu2 %v5327_v52  ;;  %1372 = vmatpush.msrb.mxu3 %v5328_v47  ;;  %v827_v43 = vrot.slane %v826_v11, 2  ;;  %v910_v44 = vmul.f32 %v902_v20, %v3942_v30  ;;  %v5348_v62 = vld [vmem:[#allocation95_spill] sm:$0xff]  ;;  %v5349_v52 = vld [vmem:[#allocation96_spill] sm:$0xff]  ;;  %v802_v47 = vrot.slane %v801_v15, 1  ;;  %v811_v7 = vrot.slane %v810_v38, 1  ;;  %v5350_v25 = vld [vmem:[#allocation97_spill] sm:$0xff] }
 0x126   : > { %1316 = vmatpush.msrb.mxu0 %v5329_v14  ;;  %1336 = vmatpush.msrb.mxu1 %v5330_v6  ;;  %v5351_v14 = vld [vmem:[#allocation98_spill] sm:$0xff]  ;;  %v903_v6 = vsel %vm899_vm1, %v885_v32, %v898_v24  ;;  %v819_v30 = vadd.f32 %v818_v34, %v817_v45  ;;  %v5352_v46 = vld [vmem:[#allocation99_spill] sm:$0xff]  ;;  %v5353_v60 = vld [vmem:[#allocation100_spill] sm:$0xff] }
 0x127   : > { %1353 = vmatpush.msrb.mxu2 %v5333_v40  ;;  %1373 = vmatpush.msrb.mxu3 %v5334_v5  ;;  %v828_v33 = vadd.f32 %v827_v43, %v826_v11  ;;  %v920_v9 = vperm.slane %v910_v44, 0  ;;  %v921_v27 = vperm.slane %v910_v44, 4  ;;  %v5354_v40 = vld [vmem:[#allocation101_spill] sm:$0xff]  ;;  %v5355_v5 = vld [vmem:[#allocation102_spill] sm:$0xff]  ;;  %v803_v42 = vadd.f32 %v802_v47, %v801_v15  ;;  %v5360_v20 = vld [vmem:[#allocation107_spill] sm:$0xff] }
 0x128   : > { %1317 = vmatpush.msrb.mxu0 %v5335_v17  ;;  %1337 = vmatpush.msrb.mxu1 %v5336_v13  ;;  %v5356_v17 = vld [vmem:[#allocation103_spill] sm:$0xff]  ;;  %v5357_v13 = vld [vmem:[#allocation104_spill] sm:$0xff]  ;;  %v5358_v45 = vld [vmem:[#allocation105_spill] sm:$0xff] }
 0x129   : > { %1354 = vmatpush.msrb.mxu2 %v5337_v21  ;;  %1374 = vmatpush.msrb.mxu3 %v5338_v29  ;;  %v812_v21 = vadd.f32 %v811_v7, %v810_v38  ;;  %v911_v29 = vmul.f32 %v903_v6, %v3986_v41  ;;  %v5359_v11 = vld [vmem:[#allocation106_spill] sm:$0xff]  ;;  %v5362_v34 = vld [vmem:[#allocation109_spill] sm:$0xff]  ;;  %v5364_v38 = vld [vmem:[#allocation111_spill] sm:$0xff] }
 0x12a   : > { %1318 = vmatpush.msrb.mxu0 %v5339_v35  ;;  %1338 = vmatpush.msrb.mxu1 %v5340_v18  ;;  %v5361_v35 = vld [vmem:[#allocation108_spill] sm:$0xff]  ;;  %v936_v18 = vadd.f32 %v920_v9, %v803_v42  ;;  %v5363_v43 = vld [vmem:[#allocation110_spill] sm:$0xff]  ;;  %v5366_v16 = vld [vmem:[#allocation113_spill] sm:$0xff] }
 0x12b   : > { %1355 = vmatpush.msrb.mxu2 %v5341_v26  ;;  %1375 = vmatpush.msrb.mxu3 %v5342_v37  ;;  %v937_v24 = vadd.f32 %v921_v27, %v812_v21  ;;  %v820_v26 = vrot.slane %v819_v30, 1  ;;  %v829_v37 = vrot.slane %v828_v33, 1  ;;  %v922_v15 = vperm.slane %v911_v29, 0  ;;  %v5367_v32 = vld [vmem:[#allocation114_spill] sm:$0xff]  ;;  %v4173_v47 = vld [vmem:[%s4987_s4 + $0xc0] sm:$0xff]  ;;  %v4178_v7 = vld [vmem:[%s4987_s4 + $0xc8] sm:$0xff] }
 0x12c   : > { %1319 = vmatpush.msrb.mxu0 %v5343_v31  ;;  %1339 = vmatpush.msrb.mxu1 %v5344_v4  ;;  %v923_v41 = vperm.slane %v911_v29, 4  ;;  %v5365_v31 = vld [vmem:[#allocation112_spill] sm:$0xff]  ;;  %v4224_v9 = vld [vmem:[%s4987_s4 + $0x48] sm:$0xff]  ;;  %v4229_v27 = vld [vmem:[%s4987_s4 + $0x50] sm:$0xff] }
 0x12d   : > { %1356 = vmatpush.msrb.mxu2 %v5346_v22  ;;  %1376 = vmatpush.msrb.mxu3 %v5347_v10  ;;  %v821_v4 = vadd.f32 %v820_v26, %v819_v30  ;;  %v830_v44 = vadd.f32 %v829_v37, %v828_v33  ;;  %v4195_v6 = vld [vmem:[%s4987_s4 + $0x80] sm:$0xff]  ;;  %v4200_v30 = vld [vmem:[%s4987_s4 + $0x88] sm:$0xff]  ;;  %v4207_v33 = vld [vmem:[%s4987_s4 + $0x90] sm:$0xff] }
 0x12e   : > { %1320 = vmatpush.msrb.mxu0 %v5348_v62  ;;  %1340 = vmatpush.msrb.mxu1 %v5349_v52  ;;  %v5368_v62 = vld [vmem:[#allocation115_spill] sm:$0xff]  ;;  %v5369_v52 = vld [vmem:[#allocation116_spill] sm:$0xff]  ;;  %v4253_v42 = vld [vmem:[%s4987_s4 + $0x10] sm:$0xff] }
 0x12f   : > { %1357 = vmatpush.msrb.mxu2 %v5350_v25  ;;  %1377 = vmatpush.msrb.mxu3 %v5351_v14  ;;  %v938_v22 = vadd.f32 %v922_v15, %v821_v4  ;;  %v939_v10 = vadd.f32 %v923_v41, %v830_v44  ;;  %v4183_v25 = vld [vmem:[%s4987_s4 + $0xd0] sm:$0xff]  ;;  %v4190_v14 = vld [vmem:[%s4987_s4 + $0xd8] sm:$0xff]  ;;  %v4269_v29 = vld [vmem:[%s4987_s4 + $0xe0] sm:$0xff] }
 0x130   : > { %1321 = vmatpush.msrb.mxu0 %v5352_v46  ;;  %1341 = vmatpush.msrb.mxu1 %v5353_v60  ;;  %v4212_v46 = vld [vmem:[%s4987_s4 + $0x98] sm:$0xff]  ;;  %v4217_v60 = vld [vmem:[%s4987_s4 + $0x40] sm:$0xff]  ;;  %v4303_v26 = vld [vmem:[%s4987_s4 + $0xb0] sm:$0xff] }
 0x131   : > { %1358 = vmatpush.msrb.mxu2 %v5354_v40  ;;  %1378 = vmatpush.msrb.mxu3 %v5355_v5  ;;  %v4234_v40 = vld [vmem:[%s4987_s4 + $0x58] sm:$0xff]  ;;  %v2761_v5 = vmov 1024.0   ;;  %v4320_v41 = vld [vmem:[%s4987_s4 + $0x68] sm:$0xff]  ;;  %v4337_v4 = vld [vmem:[%s4987_s4 + $0x20] sm:$0xff] }
 0x132   : > { %1322 = vmatpush.msrb.mxu0 %v5356_v17  ;;  %1342 = vmatpush.msrb.mxu1 %v5357_v13  ;;  %2585 = vrcp.f32 %v2761_v5  ;;  %v4241_v17 = vld [vmem:[%s4987_s4] sm:$0xff]  ;;  %v4246_v13 = vld [vmem:[%s4987_s4 + $0x8] sm:$0xff]  ;;  %v4258_v21 = vld [vmem:[%s4987_s4 + $0x18] sm:$0xff] }
 0x133   : > { %1359 = vmatpush.msrb.mxu2 %v5358_v45  ;;  %1379 = vmatpush.msrb.mxu3 %v5359_v11  ;;  %v4274_v45 = vld [vmem:[%s4987_s4 + $0xe8] sm:$0xff]  ;;  %v4279_v11 = vld [vmem:[%s4987_s4 + $0xf0] sm:$0xff]  ;;  %v4308_v37 = vld [vmem:[%s4987_s4 + $0xb8] sm:$0xff] }
 0x134   : > { %1323 = vmatpush.msrb.mxu0 %v5360_v20  ;;  %1343 = vmatpush.msrb.mxu1 %v5361_v35  ;;  %v4286_v20 = vld [vmem:[%s4987_s4 + $0xf8] sm:$0xff]  ;;  %v4291_v35 = vld [vmem:[%s4987_s4 + $0xa0] sm:$0xff]  ;;  %v4342_v44 = vld [vmem:[%s4987_s4 + $0x28] sm:$0xff] }
 0x135   : > { %1360 = vmatpush.msrb.mxu2 %v5362_v34  ;;  %1380 = vmatpush.msrb.mxu3 %v5363_v43  ;;  %v4313_v34 = vld [vmem:[%s4987_s4 + $0x60] sm:$0xff] }
 0x136   : > { %1324 = vmatmul.f32.vlgmr.msrb.gmra.mxu0 %v936_v18  ;;  %1344 = vmatmul.f32.vlgmr.msrb.gmra.mxu1 %v937_v24  ;;  %v4296_v18 = vld [vmem:[%s4987_s4 + $0xa8] sm:$0xff] }
 0x137   : > { %1361 = vmatpush.msrb.mxu2 %v5364_v38  ;;  %1381 = vmatpush.msrb.mxu3 %v5365_v31  ;;  %v4325_v38 = vld [vmem:[%s4987_s4 + $0x70] sm:$0xff]  ;;  %v4330_v31 = vld [vmem:[%s4987_s4 + $0x78] sm:$0xff] }
 0x138   : > { %1459 = vmatpush.msra.mxu0 %v4173_v47  ;;  %1479 = vmatpush.msra.mxu1 %v4178_v7  ;;  %v2586_v24 = vpop.eup %2585 }
 0x139   : > { %1362 = vmatpush.msrb.mxu2 %v5366_v16  ;;  %1382 = vmatpush.msrb.mxu3 %v5367_v32  ;;  %v1389_v32 = vmul.f32 1024.0, %v2586_v24  ;;  %vm1393_vm2 = vweird.f32 %v2586_v24 }
 0x13a   : > { %1460 = vmatpush.msra.mxu0 %v4195_v6  ;;  %1480 = vmatpush.msra.mxu1 %v4200_v30 }
 0x13b   : > { %1363 = vmatpush.msrb.mxu2 %v5368_v62  ;;  %1383 = vmatpush.msrb.mxu3 %v5369_v52  ;;  %v1390_v5 = vsub.f32 1.0, %v1389_v32  ;;  %v1889_v32 = vld [vmem:[%s4988_s5 + $0xd8] sm:$0xff] }
 0x13c   : > { %1364 = vmatmul.f32.vlgmr.msrb.gmra.mxu2 %v938_v22  ;;  %1384 = vmatmul.f32.vlgmr.msrb.gmra.mxu3 %v939_v10  ;;  %v4349_v22 = vld [vmem:[%s4987_s4 + $0x30] sm:$0xff]  ;;  %v4354_v10 = vld [vmem:[%s4987_s4 + $0x38] sm:$0xff] }
 0x13d   : > { %1499 = vmatpush.msra.mxu2 %v4183_v25  ;;  %1519 = vmatpush.msra.mxu3 %v4190_v14  ;;  %v1391_v12 = vmul.f32 %v2586_v24, %v1390_v5  ;;  %v1905_v5 = vld [vmem:[%s4988_s5 + $0x158] sm:$0xff] }
 0x13e   : > { %1461 = vmatpush.msra.mxu0 %v4217_v60  ;;  %1481 = vmatpush.msra.mxu1 %v4224_v9 }
 0x13f   : > { %1500 = vmatpush.msra.mxu2 %v4207_v33  ;;  %1520 = vmatpush.msra.mxu3 %v4212_v46 }
 0x140   : > { %1462 = vmatpush.msra.mxu0 %v4241_v17  ;;  %1482 = vmatpush.msra.mxu1 %v4246_v13 }
 0x141   : > { %1501 = vmatpush.msra.mxu2 %v4229_v27  ;;  %1521 = vmatpush.msra.mxu3 %v4234_v40 }
 0x142   : > { %1539 = vmatpush.msrb.mxu0 %v4269_v29  ;;  %1559 = vmatpush.msrb.mxu1 %v4274_v45 }
 0x143   : > { %1502 = vmatpush.msra.mxu2 %v4253_v42  ;;  %1522 = vmatpush.msra.mxu3 %v4258_v21 }
 0x144   : > { %1540 = vmatpush.msrb.mxu0 %v4291_v35  ;;  %1560 = vmatpush.msrb.mxu1 %v4296_v18 }
 0x145   : > { %1579 = vmatpush.msrb.mxu2 %v4279_v11  ;;  %1599 = vmatpush.msrb.mxu3 %v4286_v20 }
 0x146   : > { %1541 = vmatpush.msrb.mxu0 %v4313_v34  ;;  %1561 = vmatpush.msrb.mxu1 %v4320_v41 }
 0x147   : > { %1580 = vmatpush.msrb.mxu2 %v4303_v26  ;;  %1600 = vmatpush.msrb.mxu3 %v4308_v37 }
 0x148   : > { %1542 = vmatpush.msrb.mxu0 %v4337_v4  ;;  %1562 = vmatpush.msrb.mxu1 %v4342_v44 }
 0x149   : > { %1581 = vmatpush.msrb.mxu2 %v4325_v38  ;;  %1601 = vmatpush.msrb.mxu3 %v4330_v31 }
 0x14b   : > { %1582 = vmatpush.msrb.mxu2 %v4349_v22  ;;  %1602 = vmatpush.msrb.mxu3 %v4354_v10 }
 0x16b   : > { %v1085_v43 = vpop.f32.mrf.mxu0  ;;  %v1105_v15 = vpop.f32.mrf.mxu1 }
 0x16c   : > { %v1106_v62 = vadd.f32 %v1105_v15, %v1085_v43  ;;  %v1392_v15 = vadd.f32 %v2586_v24, %v1391_v12 }
 0x16e   : > { %v1394_v51 = vsel %vm1393_vm2, %v2586_v24, %v1392_v15  ;;  %v1909_v24 = vld [vmem:[%s4988_s5 + $0x178] sm:$0xff]  ;;  %v1871_v15 = vld [vmem:[%s4988_s5 + $0x48] sm:$0xff] }
 0x178   : > { %v1125_v16 = vpop.f32.mrf.mxu2  ;;  %v1145_v28 = vpop.f32.mrf.mxu3 }
 0x179   : > { %v1126_v52 = vadd.f32 %v1125_v16, %v1106_v62  ;;  %v1872_v62 = vld [vmem:[%s4988_s5 + $0x50] sm:$0xff] }
 0x17b   : > { %v1146_v19 = vadd.f32 %v1145_v28, %v1126_v52  ;;  %v1888_v52 = vld [vmem:[%s4988_s5 + $0xd0] sm:$0xff] }
 0x18f   : > { %v1165_v23 = vpop.f32.mrf.mxu0  ;;  %v1185_v43 = vpop.f32.mrf.mxu1 }
 0x190   : > { %v1166_v36 = vadd.f32 %v1165_v23, %v1146_v19 }
 0x192   : > { %v1186_v8 = vadd.f32 %v1185_v43, %v1166_v36  ;;  %v1921_v43 = vld [vmem:[%s4988_s5 + $0x1d8] sm:$0xff] }
 0x19c   : > { %v1205_v3 = vpop.f32.mrf.mxu2  ;;  %v1225_v53 = vpop.f32.mrf.mxu3 }
 0x19d   : > { %v1206_v0 = vadd.f32 %v1205_v3, %v1186_v8 }
 0x19f   : > { %v1226_v39 = vadd.f32 %v1225_v53, %v1206_v0  ;;  %v1265_v53 = vpop.f32.mrf.mxu1 }
 0x1a1   : > { %v1395_v16 = vmul.f32 %v1394_v51, %v1226_v39  ;;  %v1245_v39 = vpop.f32.mrf.mxu0 }
 0x1a2   : > { %v1266_v3 = vadd.f32 %v1265_v53, %v1245_v39  ;;  %v1870_v39 = vld [vmem:[%s4988_s5 + $0x40] sm:$0xff] }
 0x1a3   : > { %2483 = vmatmul.msk.f32.vlgmr.msra.gmra.mxu0 %vm1443_vm3, %v1395_v16  ;;  %2484 = vmatmul.msk.f32.vlgmr.msra.gmra.mxu1 %vm1443_vm3, %v1395_v16  ;;  %v1886_v53 = vld [vmem:[%s4988_s5 + $0xc0] sm:$0xff] }
 0x1a4   : > { %2485 = vmatmul.msk.f32.vlgmr.msra.gmra.mxu2 %vm1443_vm3, %v1395_v16  ;;  %2486 = vmatmul.msk.f32.vlgmr.msra.gmra.mxu3 %vm1443_vm3, %v1395_v16 }
 0x1a5   : > { %1682 = vmatpush.msra.mxu3 %v4190_v14  ;;  %1622 = vmatpush.msra.mxu0 %v4173_v47 }
 0x1a6   : > { %1642 = vmatpush.msra.mxu1 %v4178_v7  ;;  %1662 = vmatpush.msra.mxu2 %v4183_v25  ;;  %v1285_v0 = vpop.f32.mrf.mxu2  ;;  %v1305_v36 = vpop.f32.mrf.mxu3 }
 0x1a7   : > { %1683 = vmatpush.msra.mxu3 %v4212_v46  ;;  %1623 = vmatpush.msra.mxu0 %v4195_v6  ;;  %v1286_v8 = vadd.f32 %v1285_v0, %v1266_v3  ;;  %v1869_v0 = vld [vmem:[%s4988_s5 + $0x38] sm:$0xff] }
 0x1a8   : > { %1643 = vmatpush.msra.mxu1 %v4200_v30  ;;  %1663 = vmatpush.msra.mxu2 %v4207_v33  ;;  %v1397_v33 = vmul.f32 %v1395_v16, %v1395_v16  ;;  %v1885_v3 = vld [vmem:[%s4988_s5 + $0xb8] sm:$0xff] }
 0x1a9   : > { %1684 = vmatpush.msra.mxu3 %v4234_v40  ;;  %1624 = vmatpush.msra.mxu0 %v4217_v60  ;;  %v1306_v19 = vadd.f32 %v1305_v36, %v1286_v8  ;;  %v1904_v8 = vld [vmem:[%s4988_s5 + $0x150] sm:$0xff] }
 0x1aa   : > { %1644 = vmatpush.msra.mxu1 %v4224_v9  ;;  %1664 = vmatpush.msra.mxu2 %v4229_v27  ;;  %v1920_v36 = vld [vmem:[%s4988_s5 + $0x1d0] sm:$0xff] }
 0x1ab   : > { %2487 = vmatmul.msk.f32.vlgmr.msrb.gmra.mxu0 %vm1443_vm3, %v1395_v16  ;;  %2488 = vmatmul.msk.f32.vlgmr.msrb.gmra.mxu1 %vm1443_vm3, %v1395_v16 }
 0x1ac   : > { %2489 = vmatmul.msk.f32.vlgmr.msrb.gmra.mxu2 %vm1443_vm3, %v1395_v16  ;;  %2490 = vmatmul.msk.f32.vlgmr.msrb.gmra.mxu3 %vm1443_vm3, %v1395_v16  ;;  %v1887_v16 = vld [vmem:[%s4988_s5 + $0xc8] sm:$0xff] }
 0x1ad   : > { %1685 = vmatpush.msra.mxu3 %v4258_v21  ;;  %1625 = vmatpush.msra.mxu0 %v4241_v17 }
 0x1ae   : > { %1645 = vmatpush.msra.mxu1 %v4246_v13  ;;  %1665 = vmatpush.msra.mxu2 %v4253_v42 }
 0x1af   : > { %1702 = vmatpush.msrb.mxu0 %v4269_v29  ;;  %1762 = vmatpush.msrb.mxu3 %v4286_v20  ;;  %v1892_v20 = vld [vmem:[%s4988_s5 + $0xf0] sm:$0xff] }
 0x1b0   : > { %1722 = vmatpush.msrb.mxu1 %v4274_v45  ;;  %1742 = vmatpush.msrb.mxu2 %v4279_v11  ;;  %v1893_v45 = vld [vmem:[%s4988_s5 + $0xf8] sm:$0xff]  ;;  %v1876_v11 = vld [vmem:[%s4988_s5 + $0x70] sm:$0xff] }
 0x1b1   : > { %1703 = vmatpush.msrb.mxu0 %v4291_v35  ;;  %1763 = vmatpush.msrb.mxu3 %v4308_v37  ;;  %v1875_v35 = vld [vmem:[%s4988_s5 + $0x68] sm:$0xff]  ;;  %v1925_v37 = vld [vmem:[%s4988_s5 + $0x1f8] sm:$0xff] }
 0x1b2   : > { %1723 = vmatpush.msrb.mxu1 %v4296_v18  ;;  %1743 = vmatpush.msrb.mxu2 %v4303_v26  ;;  %v1891_v18 = vld [vmem:[%s4988_s5 + $0xe8] sm:$0xff]  ;;  %v1874_v26 = vld [vmem:[%s4988_s5 + $0x60] sm:$0xff] }
 0x1b3   : > { %1704 = vmatpush.msrb.mxu0 %v4313_v34  ;;  %1764 = vmatpush.msrb.mxu3 %v4330_v31  ;;  %v1325_v12 = vpop.f32.mrf.mxu0  ;;  %v1345_v28 = vpop.f32.mrf.mxu1  ;;  %v1890_v34 = vld [vmem:[%s4988_s5 + $0xe0] sm:$0xff]  ;;  %v1907_v31 = vld [vmem:[%s4988_s5 + $0x168] sm:$0xff] }
 0x1b4   : > { %1724 = vmatpush.msrb.mxu1 %v4320_v41  ;;  %1744 = vmatpush.msrb.mxu2 %v4325_v38  ;;  %v1326_v23 = vadd.f32 %v1325_v12, %v1306_v19  ;;  %v1908_v41 = vld [vmem:[%s4988_s5 + $0x170] sm:$0xff] }
 0x1b5   : > { %1705 = vmatpush.msrb.mxu0 %v4337_v4  ;;  %1765 = vmatpush.msrb.mxu3 %v4354_v10  ;;  %v1924_v38 = vld [vmem:[%s4988_s5 + $0x1f0] sm:$0xff]  ;;  %v1923_v4 = vld [vmem:[%s4988_s5 + $0x1e8] sm:$0xff]  ;;  %v1922_v10 = vld [vmem:[%s4988_s5 + $0x1e0] sm:$0xff] }
 0x1b6   : > { %1725 = vmatpush.msrb.mxu1 %v4342_v44  ;;  %1745 = vmatpush.msrb.mxu2 %v4349_v22  ;;  %v1346_v47 = vadd.f32 %v1345_v28, %v1326_v23  ;;  %v1873_v44 = vld [vmem:[%s4988_s5 + $0x58] sm:$0xff]  ;;  %v1906_v22 = vld [vmem:[%s4988_s5 + $0x160] sm:$0xff]  ;;  %v1868_v12 = vld [vmem:[%s4988_s5 + $0x30] sm:$0xff] }
 0x1b7   : > { %v1884_v19 = vld [vmem:[%s4988_s5 + $0xb0] sm:$0xff]  ;;  %v1903_v23 = vld [vmem:[%s4988_s5 + $0x148] sm:$0xff] }
 0x1b8   : > { %v1919_v28 = vld [vmem:[%s4988_s5 + $0x1c8] sm:$0xff] }
 0x1bf   : > { %v1365_v7 = vpop.f32.mrf.mxu2  ;;  %v1385_v14 = vpop.f32.mrf.mxu3 }
 0x1c0   : > { %v1366_v25 = vadd.f32 %v1365_v7, %v1346_v47  ;;  %v1867_v47 = vld [vmem:[%s4988_s5 + $0x28] sm:$0xff] }
 0x1c1   : > { %v1883_v7 = vld [vmem:[%s4988_s5 + $0xa8] sm:$0xff] }
 0x1c2   : > { %v1386_v6 = vadd.f32 %v1385_v14, %v1366_v25  ;;  %v1902_v25 = vld [vmem:[%s4988_s5 + $0x140] sm:$0xff] }
 0x1c3   : > { %v1918_v14 = vld [vmem:[%s4988_s5 + $0x1c0] sm:$0xff] }
 0x1c4   : > { %v1396_v30 = vmul.f32 %v1394_v51, %v1386_v6  ;;  %v1877_v51 = vld [vmem:[%s4988_s5 + $0x78] sm:$0xff]  ;;  %v1866_v6 = vld [vmem:[%s4988_s5 + $0x20] sm:$0xff] }
 0x1c6   : > { %v1398_v46 = vsub.f32 %v1396_v30, %v1397_v33  ;;  %v1882_v30 = vld [vmem:[%s4988_s5 + $0xa0] sm:$0xff]  ;;  %v1901_v33 = vld [vmem:[%s4988_s5 + $0x138] sm:$0xff] }
 0x1c8   : > { %v1399_v60 = vmax.f32 %v1398_v46, 0.0  ;;  %v1917_v46 = vld [vmem:[%s4988_s5 + $0x1b8] sm:$0xff] }
 0x1ca   : > { %v1400_v9 = vadd.f32 1e-06, %v1399_v60  ;;  %v1865_v60 = vld [vmem:[%s4988_s5 + $0x18] sm:$0xff] }
 0x1cc   : > { %2587 = vrsqrt.f32 %v1400_v9  ;;  %vm1407_vm5 = vweird.f32 %v1400_v9 }
 0x1d2   : > { %v2588_v27 = vpop.eup %2587 }
 0x1d3   : > { %v1402_v40 = vmul.f32 %v2588_v27, %v1400_v9  ;;  %vm1408_vm4 = vweird.f32 %v2588_v27  ;;  %v1881_v9 = vld [vmem:[%s4988_s5 + $0x98] sm:$0xff] }
 0x1d4   : > { %vm1409_vm6 = vmor %vm1407_vm5, %vm1408_vm4 }
 0x1d5   : > { %v1403_v17 = vmul.f32 %v2588_v27, %v1402_v40 }
 0x1d7   : > { %v1404_v13 = vmul.f32 0.5, %v1403_v17 }
 0x1d9   : > { %v1405_v42 = vsub.f32 1.5, %v1404_v13  ;;  %v1916_v13 = vld [vmem:[%s4988_s5 + $0x1b0] sm:$0xff] }
 0x1db   : > { %v1406_v21 = vmul.f32 %v2588_v27, %v1405_v42  ;;  %v1864_v42 = vld [vmem:[%s4988_s5 + $0x10] sm:$0xff] }
 0x1dd   : > { %v1410_v29 = vsel %vm1409_vm6, %v2588_v27, %v1406_v21  ;;  %v1900_v27 = vld [vmem:[%s4988_s5 + $0x130] sm:$0xff] }
 0x1de   : > { %2491 = vmatmul.msk.f32.vlgmr.msra.gmra.mxu0 %vm1443_vm3, %v1410_v29  ;;  %2492 = vmatmul.msk.f32.vlgmr.msra.gmra.mxu1 %vm1443_vm3, %v1410_v29  ;;  %v1880_v21 = vld [vmem:[%s4988_s5 + $0x90] sm:$0xff] }
 0x1df   : > { %2493 = vmatmul.msk.f32.vlgmr.msra.gmra.mxu2 %vm1443_vm3, %v1410_v29  ;;  %2494 = vmatmul.msk.f32.vlgmr.msra.gmra.mxu3 %vm1443_vm3, %v1410_v29 }
 0x1e0   : > { %2094 = vmatpush.msra.mxu0 %v1877_v51  ;;  %2123 = vmatpush.msra.mxu1 %v1893_v45  ;;  %v1915_v51 = vld [vmem:[%s4988_s5 + $0x1a8] sm:$0xff] }
 0x1e1   : > { %2152 = vmatpush.msra.mxu2 %v1909_v24  ;;  %2181 = vmatpush.msra.mxu3 %v1925_v37  ;;  %v1863_v45 = vld [vmem:[%s4988_s5 + $0x8] sm:$0xff]  ;;  %v1878_v24 = vld [vmem:[%s4988_s5 + $0x80] sm:$0xff]  ;;  %v1913_v37 = vld [vmem:[%s4988_s5 + $0x198] sm:$0xff] }
 0x1e2   : > { %2095 = vmatpush.msra.mxu0 %v1876_v11  ;;  %2124 = vmatpush.msra.mxu1 %v1892_v20  ;;  %v1879_v11 = vld [vmem:[%s4988_s5 + $0x88] sm:$0xff]  ;;  %v1898_v20 = vld [vmem:[%s4988_s5 + $0x120] sm:$0xff] }
 0x1e3   : > { %2153 = vmatpush.msra.mxu2 %v1908_v41  ;;  %2182 = vmatpush.msra.mxu3 %v1924_v38  ;;  %v1896_v38 = vld [vmem:[%s4988_s5 + $0x110] sm:$0xff] }
 0x1e4   : > { %2096 = vmatpush.msra.mxu0 %v1875_v35  ;;  %2125 = vmatpush.msra.mxu1 %v1891_v18  ;;  %v1914_v35 = vld [vmem:[%s4988_s5 + $0x1a0] sm:$0xff] }
 0x1e5   : > { %2154 = vmatpush.msra.mxu2 %v1907_v31  ;;  %2183 = vmatpush.msra.mxu3 %v1923_v4  ;;  %v1862_v18 = vld [vmem:[%s4988_s5] sm:$0xff]  ;;  %v1912_v31 = vld [vmem:[%s4988_s5 + $0x190] sm:$0xff]  ;;  %v1941_v4 = vld [vmem:[%s4988_s5 + $0x278] sm:$0xff] }
 0x1e6   : > { %2495 = vmatmul.msk.f32.vlgmr.msrb.gmra.mxu0 %vm1443_vm3, %v1410_v29  ;;  %2496 = vmatmul.msk.f32.vlgmr.msrb.gmra.mxu1 %vm1443_vm3, %v1410_v29 }
 0x1e7   : > { %2497 = vmatmul.msk.f32.vlgmr.msrb.gmra.mxu2 %vm1443_vm3, %v1410_v29  ;;  %2498 = vmatmul.msk.f32.vlgmr.msrb.gmra.mxu3 %vm1443_vm3, %v1410_v29  ;;  %v1899_v29 = vld [vmem:[%s4988_s5 + $0x128] sm:$0xff] }
 0x1e8   : > { %2097 = vmatpush.msra.mxu0 %v1874_v26  ;;  %2126 = vmatpush.msra.mxu1 %v1890_v34  ;;  %v1897_v26 = vld [vmem:[%s4988_s5 + $0x118] sm:$0xff] }
 0x1e9   : > { %2155 = vmatpush.msra.mxu2 %v1906_v22  ;;  %2184 = vmatpush.msra.mxu3 %v1922_v10  ;;  %v1911_v22 = vld [vmem:[%s4988_s5 + $0x188] sm:$0xff]  ;;  %v1940_v10 = vld [vmem:[%s4988_s5 + $0x270] sm:$0xff] }
 0x1ea   : > { %2098 = vmatpush.msra.mxu0 %v1873_v44  ;;  %2127 = vmatpush.msra.mxu1 %v1889_v32  ;;  %v1957_v44 = vld [vmem:[%s4988_s5 + $0x2f8] sm:$0xff]  ;;  %v1895_v32 = vld [vmem:[%s4988_s5 + $0x108] sm:$0xff] }
 0x1eb   : > { %2156 = vmatpush.msra.mxu2 %v1905_v5  ;;  %2185 = vmatpush.msra.mxu3 %v1921_v43  ;;  %v1956_v5 = vld [vmem:[%s4988_s5 + $0x2f0] sm:$0xff]  ;;  %v1894_v43 = vld [vmem:[%s4988_s5 + $0x100] sm:$0xff] }
 0x1ec   : > { %2099 = vmatpush.msra.mxu0 %v1872_v62  ;;  %2128 = vmatpush.msra.mxu1 %v1888_v52 }
 0x1ed   : > { %2157 = vmatpush.msra.mxu2 %v1904_v8  ;;  %2186 = vmatpush.msra.mxu3 %v1920_v36  ;;  %v1989_v8 = vld [vmem:[%s4988_s5 + $0x3f8] sm:$0xff]  ;;  %v1972_v36 = vld [vmem:[%s4988_s5 + $0x370] sm:$0xff] }
 0x1ee   : > { %2100 = vmatpush.msra.mxu0 %v1871_v15  ;;  %2129 = vmatpush.msra.mxu1 %v1887_v16  ;;  %v1910_v15 = vld [vmem:[%s4988_s5 + $0x180] sm:$0xff]  ;;  %v1939_v16 = vld [vmem:[%s4988_s5 + $0x268] sm:$0xff] }
 0x1ef   : > { %2158 = vmatpush.msra.mxu2 %v1903_v23  ;;  %2187 = vmatpush.msra.mxu3 %v1919_v28  ;;  %v4651_v23 = vld [vmem:[#allocation7] sm:$0x77] }
 0x1f0   : > { %2101 = vmatpush.msra.mxu0 %v1870_v39  ;;  %2130 = vmatpush.msra.mxu1 %v1886_v53  ;;  %v1955_v39 = vld [vmem:[%s4988_s5 + $0x2e8] sm:$0xff]  ;;  %v1973_v53 = vld [vmem:[%s4988_s5 + $0x378] sm:$0xff]  ;;  %v1775_v28 = vperm.slane %v4651_v23, 5 }
 0x1f1   : > { %2159 = vmatpush.msra.mxu2 %v1902_v25  ;;  %2188 = vmatpush.msra.mxu3 %v1918_v14  ;;  %v1971_v25 = vld [vmem:[%s4988_s5 + $0x368] sm:$0xff]  ;;  %v1936_v14 = vld [vmem:[%s4988_s5 + $0x250] sm:$0xff] }
 0x1f2   : > { %2102 = vmatpush.msra.mxu0 %v1869_v0  ;;  %2131 = vmatpush.msra.mxu1 %v1885_v3  ;;  %v1938_v0 = vld [vmem:[%s4988_s5 + $0x260] sm:$0xff] }
 0x1f3   : > { %2160 = vmatpush.msra.mxu2 %v1901_v33  ;;  %2189 = vmatpush.msra.mxu3 %v1917_v46  ;;  %v1954_v3 = vld [vmem:[%s4988_s5 + $0x2e0] sm:$0xff]  ;;  %v1774_v46 = vperm.slane %v4651_v23, 1 }
 0x1f4   : > { %2103 = vmatpush.msra.mxu0 %v1868_v12  ;;  %2132 = vmatpush.msra.mxu1 %v1884_v19  ;;  %v1937_v12 = vld [vmem:[%s4988_s5 + $0x258] sm:$0xff] }
 0x1f5   : > { %2161 = vmatpush.msra.mxu2 %v1900_v27  ;;  %2190 = vmatpush.msra.mxu3 %v1916_v13  ;;  %v1935_v13 = vld [vmem:[%s4988_s5 + $0x248] sm:$0xff] }
 0x1f6   : > { %2104 = vmatpush.msra.mxu0 %v1867_v47  ;;  %2133 = vmatpush.msra.mxu1 %v1883_v7  ;;  %v1953_v47 = vld [vmem:[%s4988_s5 + $0x2d8] sm:$0xff]  ;;  %v1988_v7 = vld [vmem:[%s4988_s5 + $0x3f0] sm:$0xff] }
 0x1f7   : > { %2162 = vmatpush.msra.mxu2 %v1899_v29  ;;  %2191 = vmatpush.msra.mxu3 %v1915_v51  ;;  %v1951_v51 = vld [vmem:[%s4988_s5 + $0x2c8] sm:$0xff] }
 0x1f8   : > { %2105 = vmatpush.msra.mxu0 %v1866_v6  ;;  %2134 = vmatpush.msra.mxu1 %v1882_v30  ;;  %v1987_v6 = vld [vmem:[%s4988_s5 + $0x3e8] sm:$0xff] }
 0x1f9   : > { %2163 = vmatpush.msra.mxu2 %v1898_v20  ;;  %2192 = vmatpush.msra.mxu3 %v1914_v35 }
 0x1fa   : > { %2106 = vmatpush.msra.mxu0 %v1865_v60  ;;  %2135 = vmatpush.msra.mxu1 %v1881_v9  ;;  %v1952_v60 = vld [vmem:[%s4988_s5 + $0x2d0] sm:$0xff]  ;;  %v1970_v9 = vld [vmem:[%s4988_s5 + $0x360] sm:$0xff] }
 0x1fb   : > { %2164 = vmatpush.msra.mxu2 %v1897_v26  ;;  %2193 = vmatpush.msra.mxu3 %v1913_v37  ;;  %v2499_v37 = vrot.slane %v4651_v23, 10 }
 0x1fc   : > { %2107 = vmatpush.msra.mxu0 %v1864_v42  ;;  %2136 = vmatpush.msra.mxu1 %v1880_v21  ;;  %v1986_v42 = vld [vmem:[%s4988_s5 + $0x3e0] sm:$0xff] }
 0x1fd   : > { %2165 = vmatpush.msra.mxu2 %v1896_v38  ;;  %2194 = vmatpush.msra.mxu3 %v1912_v31  ;;  %v4706_v38 = vld [vmem:[#allocation7 + $0x8] sm:$0x77] }
 0x1fe   : > { %2108 = vmatpush.msra.mxu0 %v1863_v45  ;;  %2137 = vmatpush.msra.mxu1 %v1879_v11  ;;  %v1969_v45 = vld [vmem:[%s4988_s5 + $0x358] sm:$0xff]  ;;  %v1934_v11 = vld [vmem:[%s4988_s5 + $0x240] sm:$0xff]  ;;  %v1777_v31 = vperm.slane %v4706_v38, 5 }
 0x1ff   : > { %2166 = vmatpush.msra.mxu2 %v1895_v32  ;;  %2195 = vmatpush.msra.mxu3 %v1911_v22  ;;  %v1984_v22 = vld [vmem:[%s4988_s5 + $0x3d0] sm:$0xff] }
 0x200   : > { %2109 = vmatpush.msra.mxu0 %v1862_v18  ;;  %2138 = vmatpush.msra.mxu1 %v1878_v24  ;;  %v1985_v18 = vld [vmem:[%s4988_s5 + $0x3d8] sm:$0xff] }
 0x201   : > { %2167 = vmatpush.msra.mxu2 %v1894_v43  ;;  %2196 = vmatpush.msra.mxu3 %v1910_v15  ;;  %v1967_v43 = vld [vmem:[%s4988_s5 + $0x348] sm:$0xff]  ;;  %v1932_v15 = vld [vmem:[%s4988_s5 + $0x230] sm:$0xff] }
 0x202   : > { %2210 = vmatpush.msrb.mxu0 %v1941_v4  ;;  %2239 = vmatpush.msrb.mxu1 %v1957_v44  ;;  %v1968_v4 = vld [vmem:[%s4988_s5 + $0x350] sm:$0xff]  ;;  %v1933_v44 = vld [vmem:[%s4988_s5 + $0x238] sm:$0xff] }
 0x203   : > { %2268 = vmatpush.msrb.mxu2 %v1973_v53  ;;  %2297 = vmatpush.msrb.mxu3 %v1989_v8 }
 0x204   : > { %2211 = vmatpush.msrb.mxu0 %v1940_v10  ;;  %2240 = vmatpush.msrb.mxu1 %v1956_v5  ;;  %v1776_v5 = vperm.slane %v4706_v38, 1 }
 0x205   : > { %2269 = vmatpush.msrb.mxu2 %v1972_v36  ;;  %2298 = vmatpush.msrb.mxu3 %v1988_v7 }
 0x206   : > { %2212 = vmatpush.msrb.mxu0 %v1939_v16  ;;  %2241 = vmatpush.msrb.mxu1 %v1955_v39 }
 0x207   : > { %2270 = vmatpush.msrb.mxu2 %v1971_v25  ;;  %2299 = vmatpush.msrb.mxu3 %v1987_v6 }
 0x208   : > { %2213 = vmatpush.msrb.mxu0 %v1938_v0  ;;  %2242 = vmatpush.msrb.mxu1 %v1954_v3  ;;  %v1948_v0 = vld [vmem:[%s4988_s5 + $0x2b0] sm:$0xff]  ;;  %v1983_v3 = vld [vmem:[%s4988_s5 + $0x3c8] sm:$0xff] }
 0x209   : > { %2271 = vmatpush.msrb.mxu2 %v1970_v9  ;;  %2300 = vmatpush.msrb.mxu3 %v1986_v42  ;;  %v2500_v9 = vrot.slane %v4706_v38, 10 }
 0x20a   : > { %2214 = vmatpush.msrb.mxu0 %v1937_v12  ;;  %2243 = vmatpush.msrb.mxu1 %v1953_v47  ;;  %v1982_v47 = vld [vmem:[%s4988_s5 + $0x3c0] sm:$0xff] }
 0x20b   : > { %2272 = vmatpush.msrb.mxu2 %v1969_v45  ;;  %2301 = vmatpush.msrb.mxu3 %v1985_v18  ;;  %v1946_v45 = vld [vmem:[%s4988_s5 + $0x2a0] sm:$0xff] }
 0x20c   : > { %2215 = vmatpush.msrb.mxu0 %v1936_v14  ;;  %2244 = vmatpush.msrb.mxu1 %v1952_v60 }
 0x20d   : > { %2273 = vmatpush.msrb.mxu2 %v1968_v4  ;;  %2302 = vmatpush.msrb.mxu3 %v1984_v22  ;;  %v1929_v4 = vld [vmem:[%s4988_s5 + $0x218] sm:$0xff] }
 0x20e   : > { %2216 = vmatpush.msrb.mxu0 %v1935_v13  ;;  %2245 = vmatpush.msrb.mxu1 %v1951_v51  ;;  %v1930_v13 = vld [vmem:[%s4988_s5 + $0x220] sm:$0xff] }
 0x20f   : > { %2274 = vmatpush.msrb.mxu2 %v1967_v43  ;;  %2303 = vmatpush.msrb.mxu3 %v1983_v3  ;;  %v1944_v43 = vld [vmem:[%s4988_s5 + $0x290] sm:$0xff] }
 0x210   : > { %2217 = vmatpush.msrb.mxu0 %v1934_v11 }
 0x211   : > { %2304 = vmatpush.msrb.mxu3 %v1982_v47  ;;  %v4830_v47 = vld [vmem:[#allocation7 + $0x18] sm:$0x77] }
 0x212   : > { %2218 = vmatpush.msrb.mxu0 %v1933_v44  ;;  %v1945_v44 = vld [vmem:[%s4988_s5 + $0x298] sm:$0xff] }
 0x214   : > { %2219 = vmatpush.msrb.mxu0 %v1932_v15 }
 0x220   : > { %v4545_v40 = vpop.f32.mrf.mxu0  ;;  %v4547_v17 = vpop.f32.mrf.mxu1 }
 0x221   : > { %v1806_v19 = vrot.slane %v4547_v17, 4 }
 0x223   : > { %v1810_v21 = vsel %vm899_vm1, %v4545_v40, %v1806_v19  ;;  %v1950_v40 = vld [vmem:[%s4988_s5 + $0x2c0] sm:$0xff] }
 0x224   : > { %v1818_v24 = vsub.f32 %v4651_v23, %v1810_v21  ;;  %2246 = vmatpush.msrb.mxu1 %v1950_v40  ;;  %v1966_v23 = vld [vmem:[%s4988_s5 + $0x340] sm:$0xff] }
 0x225   : > { %2275 = vmatpush.msrb.mxu2 %v1966_v23 }
 0x227   : > { %v4588_v34 = vpop.f32.mrf.mxu2  ;;  %v4590_v41 = vpop.f32.mrf.mxu3 }
 0x228   : > { %v4613_v62 = vpop.f32.mrf.mxu0  ;;  %v4615_v52 = vpop.f32.mrf.mxu1  ;;  %v1807_v26 = vrot.slane %v4590_v41, 4  ;;  %v1949_v41 = vld [vmem:[%s4988_s5 + $0x2b8] sm:$0xff] }
 0x229   : > { %2247 = vmatpush.msrb.mxu1 %v1949_v41  ;;  %v1963_v41 = vld [vmem:[%s4988_s5 + $0x328] sm:$0xff]  ;;  %v1808_v15 = vrot.slane %v4615_v52, 4  ;;  %v1962_v52 = vld [vmem:[%s4988_s5 + $0x320] sm:$0xff] }
 0x22a   : > { %v1811_v8 = vsel %vm899_vm1, %v4588_v34, %v1807_v26  ;;  %v1947_v34 = vld [vmem:[%s4988_s5 + $0x2a8] sm:$0xff] }
 0x22b   : > { %2248 = vmatpush.msrb.mxu1 %v1948_v0  ;;  %v1819_v60 = vsub.f32 %v4706_v38, %v1811_v8 }
 0x22d   : > { %2249 = vmatpush.msrb.mxu1 %v1947_v34 }
 0x22f   : > { %v4669_v30 = vpop.f32.mrf.mxu2  ;;  %v4671_v33 = vpop.f32.mrf.mxu3  ;;  %2250 = vmatpush.msrb.mxu1 %v1946_v45 }
 0x231   : > { %2251 = vmatpush.msrb.mxu1 %v1945_v44 }
 0x233   : > { %2252 = vmatpush.msrb.mxu1 %v1944_v43 }
 0x25b   : > { %v1627_v27 = vpop.f32.mrf.mxu0  ;;  %v1647_v17 = vpop.f32.mrf.mxu1 }
 0x25c   : > { %v1791_v29 = vmul.f32 %v1775_v28, %v1647_v17  ;;  %v1790_v20 = vmul.f32 %v1774_v46, %v1627_v27  ;;  %v1931_v28 = vld [vmem:[%s4988_s5 + $0x228] sm:$0xff]  ;;  %v1965_v46 = vld [vmem:[%s4988_s5 + $0x338] sm:$0xff] }
 0x25d   : > { %v5370_v27 = vld [vmem:[#allocation89_spill] sm:$0xff]  ;;  %2220 = vmatpush.msrb.mxu0 %v1931_v28  ;;  %2276 = vmatpush.msrb.mxu2 %v1965_v46 }
 0x25e   : > { %v1830_v35 = vrot.slane %v1791_v29, 4  ;;  %v4729_v16 = vperm.slane %v1790_v20, 0  ;;  %v4739_v12 = vperm.slane %v1791_v29, 0 }
 0x25f   : > { %2221 = vmatpush.msrb.mxu0 %v1930_v13 }
 0x260   : > { %v1834_v32 = vsel %vm899_vm1, %v1790_v20, %v1830_v35  ;;  %v1999_v17 = vmul.f32 %v4729_v16, %v5370_v27  ;;  %v2000_v51 = vmul.f32 %v4739_v12, %v3595_v61  ;;  %v4773_v20 = vld [vmem:[#allocation7 + $0x10] sm:$0x77]  ;;  %v1981_v61 = vld [vmem:[%s4988_s5 + $0x3b8] sm:$0xff]  ;;  %v2008_v23 = vmul.f32 %v4739_v12, %v3684_v56  ;;  %v1927_v56 = vld [vmem:[%s4988_s5 + $0x208] sm:$0xff] }
 0x261   : > { %v1842_v10 = vmul.f32 %v1834_v32, %v1818_v24  ;;  %v1779_v35 = vperm.slane %v4773_v20, 5  ;;  %v1964_v24 = vld [vmem:[%s4988_s5 + $0x330] sm:$0xff]  ;;  %2305 = vmatpush.msrb.mxu3 %v1981_v61  ;;  %2222 = vmatpush.msrb.mxu0 %v1929_v4  ;;  %v1778_v28 = vperm.slane %v4773_v20, 1  ;;  %v1961_v27 = vld [vmem:[%s4988_s5 + $0x318] sm:$0xff]  ;;  %v2501_v4 = vrot.slane %v4773_v20, 10 }
 0x262   : > { %v1667_v39 = vpop.f32.mrf.mxu2  ;;  %v1687_v53 = vpop.f32.mrf.mxu3  ;;  %v1980_v32 = vld [vmem:[%s4988_s5 + $0x3b0] sm:$0xff]  ;;  %2277 = vmatpush.msrb.mxu2 %v1964_v24  ;;  %v1959_v24 = vld [vmem:[%s4988_s5 + $0x308] sm:$0xff] }
 0x263   : > { %v1858_v36 = vadd.f32 %v2499_v37, %v1842_v10  ;;  %v1793_v19 = vmul.f32 %v1777_v31, %v1687_v53  ;;  %v1792_v14 = vmul.f32 %v1776_v5, %v1667_v39  ;;  %v1727_v31 = vpop.f32.mrf.mxu1  ;;  %v1928_v5 = vld [vmem:[%s4988_s5 + $0x210] sm:$0xff]  ;;  %v1979_v53 = vld [vmem:[%s4988_s5 + $0x3a8] sm:$0xff]  ;;  %2306 = vmatpush.msrb.mxu3 %v1980_v32  ;;  %v1707_v34 = vpop.f32.mrf.mxu0 }
 0x264   : > { %v4807_v39 = vmul.f32 %v1779_v35, %v1727_v31  ;;  %2278 = vmatpush.msrb.mxu2 %v1963_v41  ;;  %2223 = vmatpush.msrb.mxu0 %v1928_v5  ;;  %v1794_v13 = vmul.f32 %v1778_v28, %v1707_v34  ;;  %v1976_v61 = vld [vmem:[%s4988_s5 + $0x390] sm:$0xff]  ;;  %v1780_v31 = vperm.slane %v4830_v47, 1 }
 0x265   : > { %v2035_v7 = vperm.slane %v1858_v36, 0  ;;  %v2036_v25 = vperm.slane %v1858_v36, 4  ;;  %v1831_v6 = vrot.slane %v1793_v19, 4  ;;  %v4784_v26 = vperm.slane %v1792_v14, 0  ;;  %2307 = vmatpush.msrb.mxu3 %v1979_v53 }
 0x266   : > { %v4786_v38 = vperm.slane %v1793_v19, 0  ;;  %v2007_v19 = vmul.f32 %v4729_v16, %v3682_v57  ;;  %2279 = vmatpush.msrb.mxu2 %v1962_v52  ;;  %v1832_v46 = vrot.slane %v4807_v39, 4  ;;  %2224 = vmatpush.msrb.mxu0 %v1927_v56 }
 0x267   : > { %v4763_v42 = vperm.slane %v2035_v7, 0  ;;  %v4765_v21 = vperm.slane %v2036_v25, 0  ;;  %v1835_v29 = vsel %vm899_vm1, %v1792_v14, %v1831_v6  ;;  %v2001_v8 = vmul.f32 %v4784_v26, %v3676_v2  ;;  %v1943_v14 = vld [vmem:[%s4988_s5 + $0x288] sm:$0xff] }
 0x268   : > { %v1843_v11 = vmul.f32 %v1835_v29, %v1819_v60  ;;  %v2002_v36 = vmul.f32 %v4786_v38, %v3678_v58  ;;  %v1781_v7 = vperm.slane %v4830_v47, 5  ;;  %v1812_v6 = vsel %vm899_vm1, %v4613_v62, %v1808_v15  ;;  %v1942_v62 = vld [vmem:[%s4988_s5 + $0x280] sm:$0xff]  ;;  %2253 = vmatpush.msrb.mxu1 %v1943_v14  ;;  %v1977_v29 = vld [vmem:[%s4988_s5 + $0x398] sm:$0xff]  ;;  %2280 = vmatpush.msrb.mxu2 %v1961_v27 }
 0x269   : > { %v2059_v40 = vadd.f32 %v4763_v42, %v1999_v17  ;;  %v2060_v18 = vadd.f32 %v4765_v21, %v2000_v51  ;;  %v2067_v25 = vadd.f32 %v4763_v42, %v2007_v19  ;;  %v2068_v57 = vadd.f32 %v4765_v21, %v2008_v23  ;;  %v1926_v17 = vld [vmem:[%s4988_s5 + $0x200] sm:$0xff]  ;;  %v1960_v51 = vld [vmem:[%s4988_s5 + $0x310] sm:$0xff]  ;;  %v5372_v14 = vld [vmem:[#allocation119_spill] sm:$0xff] }
 0x26a   : > { %v1859_v37 = vadd.f32 %v2500_v9, %v1843_v11  ;;  %v1767_v60 = vpop.f32.mrf.mxu3  ;;  %v1978_v9 = vld [vmem:[%s4988_s5 + $0x3a0] sm:$0xff]  ;;  %v1820_v45 = vsub.f32 %v4773_v20, %v1812_v6  ;;  %v1836_v35 = vsel %vm899_vm1, %v1794_v13, %v1832_v46  ;;  %2225 = vmatpush.msrb.mxu0 %v1926_v17  ;;  %2254 = vmatpush.msrb.mxu1 %v1942_v62  ;;  %v1747_v44 = vpop.f32.mrf.mxu2 }
 0x26b   : > { %2110 = vmatmul.f32.vlgmr.msra.gmra.mxu0 %v2059_v40  ;;  %2139 = vmatmul.f32.vlgmr.msra.gmra.mxu1 %v2060_v18  ;;  %v4863_v11 = vmul.f32 %v1781_v7, %v1767_v60  ;;  %v2009_v40 = vmul.f32 %v4784_v26, %v3751_v63  ;;  %v2010_v18 = vmul.f32 %v4786_v38, %v3753_v59  ;;  %v1974_v15 = vld [vmem:[%s4988_s5 + $0x380] sm:$0xff]  ;;  %v5374_v60 = vld [vmem:[#allocation121_spill] sm:$0xff] }
 0x26c   : > { %v2037_v22 = vperm.slane %v1859_v37, 0  ;;  %v2038_v10 = vperm.slane %v1859_v37, 4  ;;  %2308 = vmatpush.msrb.mxu3 %v1978_v9  ;;  %v1809_v37 = vrot.slane %v4671_v33, 4  ;;  %v2015_v63 = vmul.f32 %v4729_v16, %v3762_v55  ;;  %2281 = vmatpush.msrb.mxu2 %v1960_v51  ;;  %v1958_v55 = vld [vmem:[%s4988_s5 + $0x300] sm:$0xff] }
 0x26d   : > { %v2016_v59 = vmul.f32 %v4739_v12, %v3764_v54  ;;  %v1833_v33 = vrot.slane %v4863_v11, 4  ;;  %v1975_v54 = vld [vmem:[%s4988_s5 + $0x388] sm:$0xff]  ;;  %v1796_v43 = vmul.f32 %v1780_v31, %v1747_v44  ;;  %v2017_v52 = vmul.f32 %v4784_v26, %v3786_v50  ;;  %v5373_v46 = vld [vmem:[#allocation120_spill] sm:$0xff] }
 0x26e   : > { %v4812_v0 = vperm.slane %v2037_v22, 0  ;;  %v4814_v3 = vperm.slane %v2038_v10, 0  ;;  %2309 = vmatpush.msrb.mxu3 %v1977_v29  ;;  %v1844_v22 = vmul.f32 %v1836_v35, %v1820_v45  ;;  %v2075_v10 = vadd.f32 %v4763_v42, %v2015_v63  ;;  %2282 = vmatpush.msrb.mxu2 %v1959_v24  ;;  %v5375_v45 = vld [vmem:[#allocation123_spill] sm:$0xff]  ;;  %v5380_v44 = vld [vmem:[#allocation128_spill] sm:$0xff] }
 0x26f   : > { %v2076_v5 = vadd.f32 %v4765_v21, %v2016_v59  ;;  %v1813_v20 = vsel %vm899_vm1, %v4669_v30, %v1809_v37  ;;  %v2018_v30 = vmul.f32 %v4786_v38, %v3788_v49  ;;  %v2023_v19 = vmul.f32 %v4729_v16, %v3790_v48 }
 0x270   : > { %v2061_v2 = vadd.f32 %v4812_v0, %v2001_v8  ;;  %v2062_v58 = vadd.f32 %v4814_v3, %v2002_v36  ;;  %v2069_v32 = vadd.f32 %v4812_v0, %v2009_v40  ;;  %v2070_v41 = vadd.f32 %v4814_v3, %v2010_v18  ;;  %2310 = vmatpush.msrb.mxu3 %v1976_v61  ;;  %v5376_v40 = vld [vmem:[#allocation124_spill] sm:$0xff]  ;;  %v5377_v61 = vld [vmem:[#allocation125_spill] sm:$0xff] }
 0x271   : > { %2283 = vmatpush.msrb.mxu2 %v1958_v55  ;;  %v1860_v53 = vadd.f32 %v2501_v4, %v1844_v22  ;;  %v1837_v8 = vsel %vm899_vm1, %v1796_v43, %v1833_v33  ;;  %v1821_v36 = vsub.f32 %v4830_v47, %v1813_v20  ;;  %v2024_v23 = vmul.f32 %v4739_v12, %v3792_v1  ;;  %v5382_v33 = vld [vmem:[#allocation130_spill] sm:$0xff] }
 0x272   : > { %2168 = vmatmul.f32.vlgmr.msra.gmra.mxu2 %v2061_v2  ;;  %2197 = vmatmul.f32.vlgmr.msra.gmra.mxu3 %v2062_v58  ;;  %v2502_v2 = vrot.slane %v4830_v47, 10  ;;  %v2077_v58 = vadd.f32 %v4812_v0, %v2017_v52  ;;  %v2078_v34 = vadd.f32 %v4814_v3, %v2018_v30  ;;  %v2083_v50 = vadd.f32 %v4763_v42, %v2023_v19  ;;  %v5371_v47 = vld [vmem:[#allocation118_spill] sm:$0xff] }
 0x273   : > { %2113 = vmatmul.f32.gmra.mxu0 %v2067_v25  ;;  %2142 = vmatmul.f32.gmra.mxu1 %v2068_v57  ;;  %v1845_v28 = vmul.f32 %v1837_v8, %v1821_v36  ;;  %v2039_v7 = vperm.slane %v1860_v53, 0  ;;  %v2040_v25 = vperm.slane %v1860_v53, 4  ;;  %v2084_v49 = vadd.f32 %v4765_v21, %v2024_v23  ;;  %v5384_v53 = vld [vmem:[#allocation132_spill] sm:$0xff]  ;;  %v5385_v36 = vld [vmem:[#allocation133_spill] sm:$0xff]  ;;  %v5386_v30 = vld [vmem:[#allocation134_spill] sm:$0xff] }
 0x274   : > { %2311 = vmatpush.msrb.mxu3 %v1975_v54  ;;  %v1995_v57 = vperm.slane %v1794_v13, 0  ;;  %v1996_v48 = vperm.slane %v4807_v39, 0  ;;  %v2025_v56 = vmul.f32 %v4784_v26, %v5371_v47  ;;  %v2026_v6 = vmul.f32 %v4786_v38, %v5372_v14 }
 0x275   : > { %v1861_v1 = vadd.f32 %v2502_v2, %v1845_v28  ;;  %v2055_v16 = vperm.slane %v2039_v7, 0  ;;  %v2056_v12 = vperm.slane %v2040_v25, 0  ;;  %v1997_v29 = vperm.slane %v1796_v43, 0  ;;  %v5383_v43 = vld [vmem:[#allocation131_spill] sm:$0xff]  ;;  %v5388_v25 = vld [vmem:[#allocation13_spill] sm:$0xff] }
 0x276   : > { %2312 = vmatpush.msrb.mxu3 %v1974_v15  ;;  %v2003_v42 = vmul.f32 %v1995_v57, %v5373_v46  ;;  %v2004_v21 = vmul.f32 %v1996_v48, %v5374_v60  ;;  %v2085_v17 = vadd.f32 %v4812_v0, %v2025_v56  ;;  %v2086_v39 = vadd.f32 %v4814_v3, %v2026_v6  ;;  %v5378_v0 = vld [vmem:[#allocation126_spill] sm:$0xff]  ;;  %v2584_v60 = vld [vmem:[%s4989_s6] ss:$0 sm:$0xff] }
 0x277   : > { %v2041_v9 = vperm.slane %v1861_v1, 0  ;;  %v2042_v27 = vperm.slane %v1861_v1, 4  ;;  %v1998_v51 = vperm.slane %v4863_v11, 0  ;;  %v2005_v35 = vmul.f32 %v1997_v29, %v5375_v45  ;;  %v5379_v11 = vld [vmem:[#allocation127_spill] sm:$0xff] }
 0x278   : > { %v2063_v62 = vadd.f32 %v2055_v16, %v2003_v42  ;;  %v2064_v13 = vadd.f32 %v2056_v12, %v2004_v21  ;;  %v2011_v24 = vmul.f32 %v1995_v57, %v5377_v61  ;;  %v2012_v37 = vmul.f32 %v1996_v48, %v5378_v0 }
 0x279   : > { %v2057_v26 = vperm.slane %v2041_v9, 0  ;;  %v2058_v38 = vperm.slane %v2042_v27, 0  ;;  %v2006_v18 = vmul.f32 %v1998_v51, %v5376_v40  ;;  %v2013_v4 = vmul.f32 %v1997_v29, %v5379_v11 }
 0x27a   : > { %2171 = vmatmul.f32.gmra.mxu2 %v2069_v32  ;;  %2200 = vmatmul.f32.gmra.mxu3 %v2070_v41  ;;  %v2071_v63 = vadd.f32 %v2055_v16, %v2011_v24  ;;  %v2072_v59 = vadd.f32 %v2056_v12, %v2012_v37  ;;  %v2014_v32 = vmul.f32 %v1998_v51, %v5380_v44  ;;  %v5381_v41 = vld [vmem:[#allocation129_spill] sm:$0xff] }
 0x27b   : > { %2116 = vmatmul.f32.gmra.mxu0 %v2075_v10  ;;  %2145 = vmatmul.f32.gmra.mxu1 %v2076_v5  ;;  %v2065_v3 = vadd.f32 %v2057_v26, %v2005_v35  ;;  %v2066_v31 = vadd.f32 %v2058_v38, %v2006_v18  ;;  %v2019_v22 = vmul.f32 %v1995_v57, %v5381_v41 }
 0x27c   : > { %v2020_v10 = vmul.f32 %v1996_v48, %v5382_v33  ;;  %v2073_v5 = vadd.f32 %v2057_v26, %v2013_v4  ;;  %v2074_v54 = vadd.f32 %v2058_v38, %v2014_v32  ;;  %v2021_v15 = vmul.f32 %v1997_v29, %v5383_v43 }
 0x27d   : > { %v2079_v55 = vadd.f32 %v2055_v16, %v2019_v22  ;;  %v2022_v8 = vmul.f32 %v1998_v51, %v5384_v53  ;;  %v2027_v52 = vmul.f32 %v1995_v57, %v5385_v36  ;;  %v2028_v19 = vmul.f32 %v1996_v48, %v5386_v30 }
 0x27e   : > { %v2080_v20 = vadd.f32 %v2056_v12, %v2020_v10  ;;  %v2081_v23 = vadd.f32 %v2057_v26, %v2021_v15 }
 0x27f   : > { %v2082_v28 = vadd.f32 %v2058_v38, %v2022_v8  ;;  %v2087_v2 = vadd.f32 %v2055_v16, %v2027_v52 }
 0x282   : > { %2174 = vmatmul.f32.gmra.mxu2 %v2077_v58  ;;  %2203 = vmatmul.f32.gmra.mxu3 %v2078_v34  ;;  %v2088_v58 = vadd.f32 %v2056_v12, %v2028_v19  ;;  %v5387_v34 = vld [vmem:[#allocation12_spill] sm:$0xff] }
 0x283   : > { %2119 = vmatmul.f32.gmra.mxu0 %v2083_v50  ;;  %2148 = vmatmul.f32.gmra.mxu1 %v2084_v49  ;;  %v2029_v7 = vmul.f32 %v1997_v29, %v5387_v34  ;;  %v2030_v50 = vmul.f32 %v1998_v51, %v5388_v25 }
 0x285   : > { %v2089_v49 = vadd.f32 %v2057_v26, %v2029_v7  ;;  %v2090_v1 = vadd.f32 %v2058_v38, %v2030_v50 }
 0x28a   : > { %2177 = vmatmul.f32.gmra.mxu2 %v2085_v17  ;;  %2206 = vmatmul.f32.gmra.mxu3 %v2086_v39 }
 0x28b   : > { %2226 = vmatmul.f32.vlgmr.msrb.gmra.mxu0 %v2063_v62  ;;  %2255 = vmatmul.f32.vlgmr.msrb.gmra.mxu1 %v2064_v13 }
 0x292   : > { %2284 = vmatmul.f32.vlgmr.msrb.gmra.mxu2 %v2065_v3  ;;  %2313 = vmatmul.f32.vlgmr.msrb.gmra.mxu3 %v2066_v31 }
 0x293   : > { %2229 = vmatmul.f32.gmra.mxu0 %v2071_v63  ;;  %2258 = vmatmul.f32.gmra.mxu1 %v2072_v59 }
 0x29a   : > { %2287 = vmatmul.f32.gmra.mxu2 %v2073_v5  ;;  %2316 = vmatmul.f32.gmra.mxu3 %v2074_v54 }
 0x29b   : > { %2232 = vmatmul.f32.gmra.mxu0 %v2079_v55  ;;  %2261 = vmatmul.f32.gmra.mxu1 %v2080_v20 }
 0x2a2   : > { %2290 = vmatmul.f32.gmra.mxu2 %v2081_v23  ;;  %2319 = vmatmul.f32.gmra.mxu3 %v2082_v28 }
 0x2a3   : > { %2235 = vmatmul.f32.gmra.mxu0 %v2087_v2  ;;  %2264 = vmatmul.f32.gmra.mxu1 %v2088_v58 }
 0x2aa   : > { %2293 = vmatmul.f32.gmra.mxu2 %v2089_v49  ;;  %2322 = vmatmul.f32.gmra.mxu3 %v2090_v1 }
 0x2e8   : > { %v2111_v47 = vpop.f32.mrf.mxu0  ;;  %v2140_v57 = vpop.f32.mrf.mxu1 }
 0x2e9   : > { %v2112_v27 = vadd.f32 %v2584_v60, %v2111_v47 }
 0x2eb   : > { %v2141_v62 = vadd.f32 %v2140_v57, %v2112_v27 }
 0x2f0   : > { %v2114_v56 = vpop.f32.mrf.mxu0  ;;  %v2143_v48 = vpop.f32.mrf.mxu1 }
 0x2f1   : > { %v2115_v51 = vadd.f32 %v2584_v60, %v2114_v56 }
 0x2f3   : > { %v2144_v40 = vadd.f32 %v2143_v48, %v2115_v51 }
 0x2f5   : > { %v2169_v14 = vpop.f32.mrf.mxu2  ;;  %v2198_v6 = vpop.f32.mrf.mxu3 }
 0x2f6   : > { %v2170_v29 = vadd.f32 %v2169_v14, %v2141_v62 }
 0x2f8   : > { %v2117_v16 = vpop.f32.mrf.mxu0  ;;  %v2146_v12 = vpop.f32.mrf.mxu1  ;;  %v2199_v35 = vadd.f32 %v2198_v6, %v2170_v29 }
 0x2f9   : > { %v2118_v0 = vadd.f32 %v2584_v60, %v2117_v16 }
 0x2fb   : > { %v2147_v4 = vadd.f32 %v2146_v12, %v2118_v0 }
 0x2fd   : > { %v2172_v46 = vpop.f32.mrf.mxu2  ;;  %v2201_v42 = vpop.f32.mrf.mxu3 }
 0x2fe   : > { %v2173_v24 = vadd.f32 %v2172_v46, %v2144_v40 }
 0x300   : > { %v2120_v21 = vpop.f32.mrf.mxu0  ;;  %v2149_v9 = vpop.f32.mrf.mxu1  ;;  %v2202_v63 = vadd.f32 %v2201_v42, %v2173_v24 }
 0x301   : > { %v2121_v33 = vadd.f32 %v2584_v60, %v2120_v21 }
 0x303   : > { %v2150_v43 = vadd.f32 %v2149_v9, %v2121_v33 }
 0x305   : > { %v2175_v17 = vpop.f32.mrf.mxu2  ;;  %v2204_v39 = vpop.f32.mrf.mxu3 }
 0x306   : > { %v2176_v41 = vadd.f32 %v2175_v17, %v2147_v4 }
 0x308   : > { %v2227_v13 = vpop.f32.mrf.mxu0  ;;  %v2256_v26 = vpop.f32.mrf.mxu1  ;;  %v2205_v55 = vadd.f32 %v2204_v39, %v2176_v41 }
 0x309   : > { %v2228_v18 = vadd.f32 %v2227_v13, %v2199_v35 }
 0x30b   : > { %v2257_v37 = vadd.f32 %v2256_v26, %v2228_v18 }
 0x30d   : > { %v2178_v38 = vpop.f32.mrf.mxu2  ;;  %v2207_v45 = vpop.f32.mrf.mxu3 }
 0x30e   : > { %v2179_v36 = vadd.f32 %v2178_v38, %v2150_v43 }
 0x310   : > { %v2230_v61 = vpop.f32.mrf.mxu0  ;;  %v2259_v11 = vpop.f32.mrf.mxu1  ;;  %v2208_v28 = vadd.f32 %v2207_v45, %v2179_v36 }
 0x311   : > { %v2231_v44 = vadd.f32 %v2230_v61, %v2202_v63 }
 0x313   : > { %v2260_v10 = vadd.f32 %v2259_v11, %v2231_v44 }
 0x315   : > { %v2285_v3 = vpop.f32.mrf.mxu2  ;;  %v2314_v31 = vpop.f32.mrf.mxu3 }
 0x316   : > { %v2286_v59 = vadd.f32 %v2285_v3, %v2257_v37 }
 0x318   : > { %v2315_v32 = vadd.f32 %v2314_v31, %v2286_v59  ;;  %v2233_v22 = vpop.f32.mrf.mxu0  ;;  %v2262_v8 = vpop.f32.mrf.mxu1 }
 0x319   : > { %v2234_v15 = vadd.f32 %v2233_v22, %v2205_v55 }
 0x31a   : > { %2326 = vst [vmem:[%s4943_s15] sm:$0xff] %v2315_v32 }
 0x31b   : > { %v2263_v52 = vadd.f32 %v2262_v8, %v2234_v15 }
 0x31d   : > { %v2288_v5 = vpop.f32.mrf.mxu2  ;;  %v2317_v54 = vpop.f32.mrf.mxu3 }
 0x31e   : > { %v2289_v20 = vadd.f32 %v2288_v5, %v2260_v10 }
 0x320   : > { %v2318_v53 = vadd.f32 %v2317_v54, %v2289_v20  ;;  %v2236_v30 = vpop.f32.mrf.mxu0  ;;  %v2265_v7 = vpop.f32.mrf.mxu1 }
 0x321   : > { %v2237_v58 = vadd.f32 %v2236_v30, %v2208_v28 }
 0x322   : > { %2327 = vst [vmem:[%s4943_s15 + $0x8] sm:$0xff] %v2318_v53 }
 0x323   : > { %v2266_v25 = vadd.f32 %v2265_v7, %v2237_v58 }
 0x325   : > { %v2291_v19 = vpop.f32.mrf.mxu2  ;;  %v2320_v23 = vpop.f32.mrf.mxu3 }
 0x326   : > { %v2292_v2 = vadd.f32 %v2291_v19, %v2263_v52 }
 0x328   : > { %v2321_v34 = vadd.f32 %v2320_v23, %v2292_v2 }
 0x32a   : > { %2328 = vst [vmem:[%s4943_s15 + $0x10] sm:$0xff] %v2321_v34 }
 0x32d   : > { %v2294_v50 = vpop.f32.mrf.mxu2  ;;  %v2323_v1 = vpop.f32.mrf.mxu3 }
 0x32e   : > { %v2295_v49 = vadd.f32 %v2294_v50, %v2266_v25 }
 0x330   : > { %v2324_v47 = vadd.f32 %v2323_v1, %v2295_v49 }
 0x332   : > { %2329 = vst [vmem:[%s4943_s15 + $0x18] sm:$0xff] %v2324_v47 }
 0x333   : > { %2710 = shalt.err (!%p2707_p10)
}
 0x334   : > { %s2762_s14 = smov 128   ;;  %s2763_s15 = smov 8  }
 0x335   : > { %2520 = dma.vmem_to_hbm [thread:$0]  (%p2870_p3), %s2344_s18, 512, %s2346_s1, %s2331_s28, %s2762_s14, %s2762_s14, %s2763_s15  }
 0x336 PF: > { %s2360_s29 = sand.u32 1, %s2741_s24   ;;  %p5389_p12 = scmp.ge.s32.totalorder %s2753_s27, 2 }
 0x337   : > { %s2361_s16 = scalar_lea.sflag [#allocation4], %s2360_s29 }
 0x338   : > { %p2534_p13 = pnand %p5389_p12, %p2839_p6 }
 0x33a   : > { %p2535_p0 = pneg %p2534_p13 }
 0x33c   : > { %2736 = dma.done.wait (%p2535_p0), %s2361_s16, 512  }
 0x33d   : > { %2738 = vsyncadd (%p2535_p0), %s2361_s16, 4294966784  ;;  %p21_p5 = scmp.ge.s32.totalorder %s2860_s22, 4   ;;  %s5390_s24 = smov %s2745_s25 }
 0x33e   : > { %s5391_s25 = smov %s2749_s26  ;;  %s5392_s26 = smov %s2876_s10 }
 0x33f   : > { %s5393_s27 = smov %s2860_s22  ;;  %23 = sbr.rel (!%p21_p5) target bundleno = 8 (0x8), region = 101 }
 0x344   :  { %2367 = vsyncpa [#allocation3], 1 }
 0x345   :  { %2369 = vsyncpa [#allocation3 + $0x1], 1 }
 0x346   :  { %2370 = vsyncpa [#allocation6], 1 }
 0x347   :  { %2371 = vsyncpa [#allocation4], 1 }
 0x348   :  { %2373 = vsyncpa [#allocation4 + $0x1], 1 }

</bundles_post_ra>
